<compile_context>
chip_gen: v7x
topology: tpu7x:2x2x1
jax: 0.10.0
libtpu: 0.0.40
codegen_flags: <defaults>
</compile_context>

<pallas_src>
import functools

import jax
import jax.numpy as jnp
from jax import lax
from jax.experimental import pallas as pl
from jax.experimental.pallas import tpu as pltpu

LANE = 128                      # TPU lane width: channel dims are padded to this
_VMEM_LIMIT = 32 * 1024 * 1024  # explicit scoped-VMEM budget (safe on v5e/v6e/v7x)
_EPS = 1e-5


def _round_up(x, m):
    return (x + m - 1) // m * m


# ------------------------------- Pallas kernels -------------------------------

def _make_conv_bn_stats_kernel(n_src, taps, ho, wo, cin_p, cout_p):
    """Fused 3x3 conv (9 shifted MXU matmuls, f32 accumulator) + per-image BN stats."""

    def kernel(*refs):
        src_refs = refs[:n_src]                    # spatial view(s) of the padded input
        w_ref = refs[n_src]                        # (9, cin_p, cout_p) MXU operand
        c_ref, s_ref, q_ref = refs[n_src + 1:]

        acc = jnp.zeros((ho * wo, cout_p), jnp.float32)
        for t, (si, ro, co) in enumerate(taps):
            win = src_refs[si][0, ro:ro + ho, co:co + wo, :]       # (ho, wo, cin_p)
            a = win.reshape(ho * wo, cin_p).astype(w_ref.dtype)    # bf16/f32 MXU operand
            acc = acc + jnp.dot(a, w_ref[t], preferred_element_type=jnp.float32)

        c_ref[...] = acc.reshape(1, ho, wo, cout_p)
        # Per-image partial stats (reduced over the batch on the host) so the batch grid
        # axis can stay "parallel" (megacore-shardable on v7x).
        s_ref[...] = jnp.sum(acc, axis=0, keepdims=True).reshape(1, 1, cout_p)
        q_ref[...] = jnp.sum(acc * acc, axis=0, keepdims=True).reshape(1, 1, cout_p)

    return kernel


def _make_bn_relu_pad_kernel(ho, wo):
    """h = relu(c*scale + shift), written into the interior of a spatially padded
    (ho+2, wo+2) buffer so conv2 needs no separate XLA pad pass."""

    def kernel(c_ref, scale_ref, shift_ref, h_ref):
        y = jnp.maximum(c_ref[0] * scale_ref[...] + shift_ref[...], 0.0)
        h_ref[...] = jnp.zeros_like(h_ref)
        h_ref[0, 1:ho + 1, 1:wo + 1, :] = y.astype(h_ref.dtype)

    return kernel


def _bn_add_relu_kernel(c_ref, scale_ref, shift_ref, r_ref, o_ref):
    """out = relu(c*scale + shift + residual)  (fused BN2 + shortcut add + ReLU)."""
    y = c_ref[...] * scale_ref[...] + shift_ref[...]
    o_ref[...] = jnp.maximum(y + r_ref[...].astype(jnp.float32), 0.0)


# ------------------------------ pallas_call glue ------------------------------

def _conv_bn_stats(srcs, w_mat, taps, ho, wo, cout_p):
    n = srcs[0].shape[0]
    cin_p = srcs[0].shape[-1]
    kernel = _make_conv_bn_stats_kernel(len(srcs), taps, ho, wo, cin_p, cout_p)

    src_specs = [pl.BlockSpec((1,) + s.shape[1:], lambda b: (b, 0, 0, 0)) for s in srcs]
    w_spec = pl.BlockSpec(w_mat.shape, lambda b: (0, 0, 0))

    flops = 2 * n * ho * wo * 9 * cin_p * cout_p
    bytes_accessed = (sum(int(s.size) * s.dtype.itemsize for s in srcs)
                      + int(w_mat.size) * w_mat.dtype.itemsize
                      + (n * ho * wo * cout_p + 2 * n * cout_p) * 4)

    return pl.pallas_call(
        kernel,
        grid=(n,),
        in_specs=src_specs + [w_spec],
        out_specs=(pl.BlockSpec((1, ho, wo, cout_p), lambda b: (b, 0, 0, 0)),
                   pl.BlockSpec((1, 1, cout_p), lambda b: (b, 0, 0)),
                   pl.BlockSpec((1, 1, cout_p), lambda b: (b, 0, 0))),
        out_shape=(jax.ShapeDtypeStruct((n, ho, wo, cout_p), jnp.float32),
                   jax.ShapeDtypeStruct((n, 1, cout_p), jnp.float32),
                   jax.ShapeDtypeStruct((n, 1, cout_p), jnp.float32)),
        compiler_params=pltpu.CompilerParams(
            dimension_semantics=("parallel",),
            vmem_limit_bytes=_VMEM_LIMIT),
        cost_estimate=pl.CostEstimate(flops=flops, transcendentals=0,
                                      bytes_accessed=bytes_accessed),
    )(*srcs, w_mat)


def _bn_relu_pad(c, scale, shift):
    n, ho, wo, cp = c.shape
    return pl.pallas_call(
        _make_bn_relu_pad_kernel(ho, wo),
        grid=(n,),
        in_specs=[pl.BlockSpec((1, ho, wo, cp), lambda b: (b, 0, 0, 0)),
                  pl.BlockSpec((1, cp), lambda b: (0, 0)),
                  pl.BlockSpec((1, cp), lambda b: (0, 0))],
        out_specs=pl.BlockSpec((1, ho + 2, wo + 2, cp), lambda b: (b, 0, 0, 0)),
        out_shape=jax.ShapeDtypeStruct((n, ho + 2, wo + 2, cp), jnp.float32),
        compiler_params=pltpu.CompilerParams(
            dimension_semantics=("parallel",),
            vmem_limit_bytes=_VMEM_LIMIT),
    )(c, scale, shift)


def _bn_add_relu(c, scale, shift, residual):
    n, ho, wo, cp = c.shape
    return pl.pallas_call(
        _bn_add_relu_kernel,
        grid=(n,),
        in_specs=[pl.BlockSpec((1, ho, wo, cp), lambda b: (b, 0, 0, 0)),
                  pl.BlockSpec((1, cp), lambda b: (0, 0)),
                  pl.BlockSpec((1, cp), lambda b: (0, 0)),
                  pl.BlockSpec((1, ho, wo, cp), lambda b: (b, 0, 0, 0))],
        out_specs=pl.BlockSpec((1, ho, wo, cp), lambda b: (b, 0, 0, 0)),
        out_shape=jax.ShapeDtypeStruct((n, ho, wo, cp), jnp.float32),
        compiler_params=pltpu.CompilerParams(
            dimension_semantics=("parallel",),
            vmem_limit_bytes=_VMEM_LIMIT),
    )(c, scale, shift, residual)


# ------------------------------ host-side helpers ------------------------------

def _bn_affine(sums, sqs, gamma, beta, m, cout, cout_p):
    """Per-channel scale/shift so that y = x*scale + shift == PyTorch training-mode BN."""
    total = jnp.sum(sums, axis=(0, 1))
    total_sq = jnp.sum(sqs, axis=(0, 1))
    mean = total / m
    # Biased variance (PyTorch training-mode normalization); f32 accumulation and
    # zero-mean-ish conv outputs keep E[x^2]-E[x]^2 cancellation benign here.
    var = jnp.maximum(total_sq / m - mean * mean, 0.0)
    g = jnp.pad(gamma, (0, cout_p - cout))   # zero gamma on padded channels -> scale 0
    b = jnp.pad(beta, (0, cout_p - cout))
    scale = g / jnp.sqrt(var + _EPS)
    shift = b - mean * scale
    return scale.reshape(1, cout_p), shift.reshape(1, cout_p)


def _weight_matrix(w_oihw, cin_off, cin_p, cout_p, dtype):
    """(Cout, Cin, 3, 3) OIHW -> (9, cin_p, cout_p); input channels placed at cin_off."""
    cout, cin = w_oihw.shape[0], w_oihw.shape[1]
    w = jnp.transpose(w_oihw, (2, 3, 1, 0)).reshape(9, cin, cout)
    w = jnp.pad(w, ((0, 0), (cin_off, cin_p - cin - cin_off), (0, cout_p - cout)))
    return w.astype(dtype)


@functools.partial(jax.jit, static_argnums=(2, 3))
def building_block_forward(x_nchw, params, stride, mxu_dtype=jnp.float32):
    """Forward pass of BuildingBlock. x_nchw: (N, Cin, H, W) float32 -> (N, Cout, Ho, Wo)."""
    w1, w2 = params["w1"], params["w2"]
    cout, cin = w1.shape[0], w1.shape[1]
    n, _, h, w = x_nchw.shape

    option_a = (stride != 1) or (cin != cout)
    cin_off = (cout // 4) if option_a else 0            # option-A channel offset
    cin_p = _round_up(cin + cin_off, LANE)
    cout_p = _round_up(cout, LANE)

    ho = (h + 2 - 3) // stride + 1
    wo = (w + 2 - 3) // stride + 1
    m = n * ho * wo

    # Channels-last, lane-padded; real channels live at [cin_off, cin_off+cin).
    x_nhwc = jnp.transpose(x_nchw, (0, 2, 3, 1))
    x_cp = jnp.pad(x_nhwc, ((0, 0), (0, 0), (0, 0), (cin_off, cin_p - cin - cin_off)))

    # ---------------- conv1 + bn1 statistics (one fused kernel) ----------------
    xp1 = jnp.pad(x_cp, ((0, 0), (1, 1), (1, 1), (0, 0)))
    if stride == 1:
        srcs1 = [xp1]
        taps1 = [(0, kh, kw) for kh in range(3) for kw in range(3)]
    else:  # stride == 2: spatial parities make every tap a contiguous VMEM window
        srcs1 = [xp1[:, ph::2, pw::2, :] for ph in (0, 1) for pw in (0, 1)]
        taps1 = [((kh % 2) * 2 + (kw % 2), kh // 2, kw // 2)
                 for kh in range(3) for kw in range(3)]
    w1_mat = _weight_matrix(w1, cin_off, cin_p, cout_p, mxu_dtype)
    c1, s1, q1 = _conv_bn_stats(srcs1, w1_mat, taps1, ho, wo, cout_p)
    scale1, shift1 = _bn_affine(s1, q1, params["gamma1"], params["beta1"], m, cout, cout_p)

    # ---------------- bn1 + relu (+ spatial pad for conv2) ----------------
    h_pad = _bn_relu_pad(c1, scale1, shift1)

    # ---------------- conv2 + bn2 statistics (one fused kernel) ----------------
    w2_mat = _weight_matrix(w2, 0, cout_p, cout_p, mxu_dtype)
    taps2 = [(0, kh, kw) for kh in range(3) for kw in range(3)]
    c2, s2, q2 = _conv_bn_stats([h_pad], w2_mat, taps2, ho, wo, cout_p)
    scale2, shift2 = _bn_affine(s2, q2, params["gamma2"], params["beta2"], m, cout, cout_p)

    # ---------------- shortcut + bn2 + add + relu (one fused kernel) ----------------
    if option_a and stride == 2:
        # x[:, :, ::2, ::2] with the cout//4 channel offset is exactly the parity-(1,1)
        # view of the padded conv1 input -> reuse it, no extra residual tensor in HBM.
        residual = srcs1[3]
    elif option_a:
        residual = x_cp[:, ::2, ::2, :]   # reference hard-codes ::2 in this branch too
    else:
        residual = x_cp                   # identity shortcut
    if residual.shape[-1] != cout_p:
        residual = jnp.pad(
            residual, ((0, 0), (0, 0), (0, 0), (0, cout_p - residual.shape[-1])))

    out_p = _bn_add_relu(c2, scale2, shift2, residual)    # (n, ho, wo, cout_p) f32
    out = out_p[:, :, :, :cout]
    return jnp.transpose(out, (0, 3, 1, 2))               # NHWC -> NCHW


# ------------------------------ pure-JAX reference ------------------------------

def ref_forward(x_nchw, params, stride):
    w1, w2 = params["w1"], params["w2"]
    gamma1, beta1 = params["gamma1"], params["beta1"]
    gamma2, beta2 = params["gamma2"], params["beta2"]
    cout, cin = w1.shape[0], w1.shape[1]

    def conv(x, w, s):
        return lax.conv_general_dilated(
            x, w, window_strides=(s, s), padding=((1, 1), (1, 1)),
            dimension_numbers=("NCHW", "OIHW", "NCHW"))

    def bn(x, gamma, beta):
        mean = jnp.mean(x, axis=(0, 2, 3), keepdims=True)
        var = jnp.mean(x * x, axis=(0, 2, 3), keepdims=True) - mean * mean
        g = gamma[None, :, None, None]
        b = beta[None, :, None, None]
        return (x - mean) / jnp.sqrt(var + _EPS) * g + b

    r = jax.nn.relu(bn(conv(x_nchw, w1, stride), gamma1, beta1))
    r = bn(conv(r, w2, 1), gamma2, beta2)
    if stride != 1 or cin != cout:
        sc = x_nchw[:, :, ::2, ::2]
        p = cout // 4
        sc = jnp.pad(sc, ((0, 0), (p, p), (0, 0), (0, 0)))
    else:
        sc = x_nchw
    return jax.nn.relu(r + sc)


# ----------------------------------- main -----------------------------------

if __name__ == "__main__":
    cin, cout, stride = 4, 8, 2
    key = jax.random.PRNGKey(0)
    k1, k2, kx = jax.random.split(key, 3)

    bound1 = (cin * 9) ** -0.5
    bound2 = (cout * 9) ** -0.5
    params = {
        "w1": jax.random.uniform(k1, (cout, cin, 3, 3), jnp.float32, -bound1, bound1),
        "w2": jax.random.uniform(k2, (cout, cout, 3, 3), jnp.float32, -bound2, bound2),
        "gamma1": jnp.ones((cout,), jnp.float32),
        "beta1": jnp.zeros((cout,), jnp.float32),
        "gamma2": jnp.ones((cout,), jnp.float32),
        "beta2": jnp.zeros((cout,), jnp.float32),
    }

    x = jax.random.normal(kx, (2, cin, 16, 16), dtype=jnp.float32)

    ref = jax.block_until_ready(ref_forward(x, params, stride))

    # f32 MXU-operand path: matches the f32 reference tightly.
    out = jax.block_until_ready(building_block_forward(x, params, stride, jnp.float32))
    assert out.shape == ref.shape == (2, cout, 8, 8), (out.shape, ref.shape)
    err = float(jnp.max(jnp.abs(out - ref)))
    if err > 1e-3:
        raise SystemExit(f"f32 path mismatch vs reference: max abs err = {err}")

    # bf16 MXU-operand fast path (v5e/v6e/v7x): f32 accumulation + f32 BN math, so only
    # operand rounding error remains (loose tolerance vs the f32 reference).
    out_bf16 = jax.block_until_ready(
        building_block_forward(x, params, stride, jnp.bfloat16))
    err_bf16 = float(jnp.max(jnp.abs(out_bf16 - ref)))
    if err_bf16 > 0.1:
        raise SystemExit(f"bf16 path mismatch vs reference: max abs err = {err_bf16}")

    print("KERNEL_OK")
</pallas_src>

<mosaic_0001>
module attributes {stable_mosaic.version = 11 : i64} {
  func.func @kernel(%arg0: i32, %arg1: memref<1x9x9x128xf32, #tpu.memory_space<vmem>>, %arg2: memref<1x9x9x128xf32, #tpu.memory_space<vmem>>, %arg3: memref<1x9x9x128xf32, #tpu.memory_space<vmem>>, %arg4: memref<1x9x9x128xf32, #tpu.memory_space<vmem>>, %arg5: memref<9x128x128xf32, #tpu.memory_space<vmem>>, %arg6: memref<1x8x8x128xf32, #tpu.memory_space<vmem>>, %arg7: memref<1x1x128xf32, #tpu.memory_space<vmem>>, %arg8: memref<1x1x128xf32, #tpu.memory_space<vmem>>) attributes {dimension_semantics = [#tpu.dimension_semantics<parallel>], iteration_bounds = array<i64: 2>, scalar_prefetch = 0 : i64, scratch_operands = 0 : i64, tpu.core_type = #tpu.core_type<tc>, window_params = [{transform_indices = @transform_0, window_bounds = array<i64: 1, 9, 9, 128>}, {transform_indices = @transform_1, window_bounds = array<i64: 1, 9, 9, 128>}, {transform_indices = @transform_2, window_bounds = array<i64: 1, 9, 9, 128>}, {transform_indices = @transform_3, window_bounds = array<i64: 1, 9, 9, 128>}, {pipeline_mode = #tpu.pipeline_mode<synchronous>, transform_indices = @transform_4, window_bounds = array<i64: 9, 128, 128>}, {transform_indices = @transform_5, window_bounds = array<i64: 1, 8, 8, 128>}, {transform_indices = @transform_6, window_bounds = array<i64: 1, 1, 128>}, {transform_indices = @transform_7, window_bounds = array<i64: 1, 1, 128>}]} {
    %cst = arith.constant 0.000000e+00 : f32
    %0 = vector.broadcast %cst : f32 to vector<64x128xf32>
    %c0 = arith.constant 0 : index
    %c0_0 = arith.constant 0 : index
    %c0_1 = arith.constant 0 : index
    %c0_2 = arith.constant 0 : index
    %1 = vector.load %arg1[%c0, %c0_0, %c0_1, %c0_2] : memref<1x9x9x128xf32, #tpu.memory_space<vmem>>, vector<1x8x8x128xf32>
    %2 = vector.shape_cast %1 : vector<1x8x8x128xf32> to vector<8x8x128xf32>
    %3 = vector.shape_cast %2 : vector<8x8x128xf32> to vector<64x128xf32>
    %c0_3 = arith.constant 0 : index
    %c0_4 = arith.constant 0 : index
    %c0_5 = arith.constant 0 : index
    %4 = vector.load %arg5[%c0_3, %c0_4, %c0_5] : memref<9x128x128xf32, #tpu.memory_space<vmem>>, vector<1x128x128xf32>
    %5 = vector.shape_cast %4 : vector<1x128x128xf32> to vector<128x128xf32>
    %cst_6 = arith.constant dense<0.000000e+00> : vector<64x128xf32>
    %6 = tpu.matmul %3, %5, %cst_6 {dimension_numbers = #tpu.dot_dimension_numbers<[1], [0], [0], [1], [0, 0, 1, 1], [], []>} : vector<64x128xf32>, vector<128x128xf32>, vector<64x128xf32> -> vector<64x128xf32>
    %7 = arith.addf %0, %6 : vector<64x128xf32>
    %c0_7 = arith.constant 0 : index
    %c0_8 = arith.constant 0 : index
    %c0_9 = arith.constant 0 : index
    %c0_10 = arith.constant 0 : index
    %8 = vector.load %arg2[%c0_7, %c0_8, %c0_9, %c0_10] : memref<1x9x9x128xf32, #tpu.memory_space<vmem>>, vector<1x8x8x128xf32>
    %9 = vector.shape_cast %8 : vector<1x8x8x128xf32> to vector<8x8x128xf32>
    %10 = vector.shape_cast %9 : vector<8x8x128xf32> to vector<64x128xf32>
    %c1 = arith.constant 1 : index
    %c0_11 = arith.constant 0 : index
    %c0_12 = arith.constant 0 : index
    %11 = vector.load %arg5[%c1, %c0_11, %c0_12] : memref<9x128x128xf32, #tpu.memory_space<vmem>>, vector<1x128x128xf32>
    %12 = vector.shape_cast %11 : vector<1x128x128xf32> to vector<128x128xf32>
    %cst_13 = arith.constant dense<0.000000e+00> : vector<64x128xf32>
    %13 = tpu.matmul %10, %12, %cst_13 {dimension_numbers = #tpu.dot_dimension_numbers<[1], [0], [0], [1], [0, 0, 1, 1], [], []>} : vector<64x128xf32>, vector<128x128xf32>, vector<64x128xf32> -> vector<64x128xf32>
    %14 = arith.addf %7, %13 : vector<64x128xf32>
    %c0_14 = arith.constant 0 : index
    %c0_15 = arith.constant 0 : index
    %c1_16 = arith.constant 1 : index
    %c0_17 = arith.constant 0 : index
    %15 = vector.load %arg1[%c0_14, %c0_15, %c1_16, %c0_17] : memref<1x9x9x128xf32, #tpu.memory_space<vmem>>, vector<1x8x8x128xf32>
    %16 = vector.shape_cast %15 : vector<1x8x8x128xf32> to vector<8x8x128xf32>
    %17 = vector.shape_cast %16 : vector<8x8x128xf32> to vector<64x128xf32>
    %c2 = arith.constant 2 : index
    %c0_18 = arith.constant 0 : index
    %c0_19 = arith.constant 0 : index
    %18 = vector.load %arg5[%c2, %c0_18, %c0_19] : memref<9x128x128xf32, #tpu.memory_space<vmem>>, vector<1x128x128xf32>
    %19 = vector.shape_cast %18 : vector<1x128x128xf32> to vector<128x128xf32>
    %cst_20 = arith.constant dense<0.000000e+00> : vector<64x128xf32>
    %20 = tpu.matmul %17, %19, %cst_20 {dimension_numbers = #tpu.dot_dimension_numbers<[1], [0], [0], [1], [0, 0, 1, 1], [], []>} : vector<64x128xf32>, vector<128x128xf32>, vector<64x128xf32> -> vector<64x128xf32>
    %21 = arith.addf %14, %20 : vector<64x128xf32>
    %c0_21 = arith.constant 0 : index
    %c0_22 = arith.constant 0 : index
    %c0_23 = arith.constant 0 : index
    %c0_24 = arith.constant 0 : index
    %22 = vector.load %arg3[%c0_21, %c0_22, %c0_23, %c0_24] : memref<1x9x9x128xf32, #tpu.memory_space<vmem>>, vector<1x8x8x128xf32>
    %23 = vector.shape_cast %22 : vector<1x8x8x128xf32> to vector<8x8x128xf32>
    %24 = vector.shape_cast %23 : vector<8x8x128xf32> to vector<64x128xf32>
    %c3 = arith.constant 3 : index
    %c0_25 = arith.constant 0 : index
    %c0_26 = arith.constant 0 : index
    %25 = vector.load %arg5[%c3, %c0_25, %c0_26] : memref<9x128x128xf32, #tpu.memory_space<vmem>>, vector<1x128x128xf32>
    %26 = vector.shape_cast %25 : vector<1x128x128xf32> to vector<128x128xf32>
    %cst_27 = arith.constant dense<0.000000e+00> : vector<64x128xf32>
    %27 = tpu.matmul %24, %26, %cst_27 {dimension_numbers = #tpu.dot_dimension_numbers<[1], [0], [0], [1], [0, 0, 1, 1], [], []>} : vector<64x128xf32>, vector<128x128xf32>, vector<64x128xf32> -> vector<64x128xf32>
    %28 = arith.addf %21, %27 : vector<64x128xf32>
    %c0_28 = arith.constant 0 : index
    %c0_29 = arith.constant 0 : index
    %c0_30 = arith.constant 0 : index
    %c0_31 = arith.constant 0 : index
    %29 = vector.load %arg4[%c0_28, %c0_29, %c0_30, %c0_31] : memref<1x9x9x128xf32, #tpu.memory_space<vmem>>, vector<1x8x8x128xf32>
    %30 = vector.shape_cast %29 : vector<1x8x8x128xf32> to vector<8x8x128xf32>
    %31 = vector.shape_cast %30 : vector<8x8x128xf32> to vector<64x128xf32>
    %c4 = arith.constant 4 : index
    %c0_32 = arith.constant 0 : index
    %c0_33 = arith.constant 0 : index
    %32 = vector.load %arg5[%c4, %c0_32, %c0_33] : memref<9x128x128xf32, #tpu.memory_space<vmem>>, vector<1x128x128xf32>
    %33 = vector.shape_cast %32 : vector<1x128x128xf32> to vector<128x128xf32>
    %cst_34 = arith.constant dense<0.000000e+00> : vector<64x128xf32>
    %34 = tpu.matmul %31, %33, %cst_34 {dimension_numbers = #tpu.dot_dimension_numbers<[1], [0], [0], [1], [0, 0, 1, 1], [], []>} : vector<64x128xf32>, vector<128x128xf32>, vector<64x128xf32> -> vector<64x128xf32>
    %35 = arith.addf %28, %34 : vector<64x128xf32>
    %c0_35 = arith.constant 0 : index
    %c0_36 = arith.constant 0 : index
    %c1_37 = arith.constant 1 : index
    %c0_38 = arith.constant 0 : index
    %36 = vector.load %arg3[%c0_35, %c0_36, %c1_37, %c0_38] : memref<1x9x9x128xf32, #tpu.memory_space<vmem>>, vector<1x8x8x128xf32>
    %37 = vector.shape_cast %36 : vector<1x8x8x128xf32> to vector<8x8x128xf32>
    %38 = vector.shape_cast %37 : vector<8x8x128xf32> to vector<64x128xf32>
    %c5 = arith.constant 5 : index
    %c0_39 = arith.constant 0 : index
    %c0_40 = arith.constant 0 : index
    %39 = vector.load %arg5[%c5, %c0_39, %c0_40] : memref<9x128x128xf32, #tpu.memory_space<vmem>>, vector<1x128x128xf32>
    %40 = vector.shape_cast %39 : vector<1x128x128xf32> to vector<128x128xf32>
    %cst_41 = arith.constant dense<0.000000e+00> : vector<64x128xf32>
    %41 = tpu.matmul %38, %40, %cst_41 {dimension_numbers = #tpu.dot_dimension_numbers<[1], [0], [0], [1], [0, 0, 1, 1], [], []>} : vector<64x128xf32>, vector<128x128xf32>, vector<64x128xf32> -> vector<64x128xf32>
    %42 = arith.addf %35, %41 : vector<64x128xf32>
    %c0_42 = arith.constant 0 : index
    %c1_43 = arith.constant 1 : index
    %c0_44 = arith.constant 0 : index
    %c0_45 = arith.constant 0 : index
    %43 = vector.load %arg1[%c0_42, %c1_43, %c0_44, %c0_45] : memref<1x9x9x128xf32, #tpu.memory_space<vmem>>, vector<1x8x8x128xf32>
    %44 = vector.shape_cast %43 : vector<1x8x8x128xf32> to vector<8x8x128xf32>
    %45 = vector.shape_cast %44 : vector<8x8x128xf32> to vector<64x128xf32>
    %c6 = arith.constant 6 : index
    %c0_46 = arith.constant 0 : index
    %c0_47 = arith.constant 0 : index
    %46 = vector.load %arg5[%c6, %c0_46, %c0_47] : memref<9x128x128xf32, #tpu.memory_space<vmem>>, vector<1x128x128xf32>
    %47 = vector.shape_cast %46 : vector<1x128x128xf32> to vector<128x128xf32>
    %cst_48 = arith.constant dense<0.000000e+00> : vector<64x128xf32>
    %48 = tpu.matmul %45, %47, %cst_48 {dimension_numbers = #tpu.dot_dimension_numbers<[1], [0], [0], [1], [0, 0, 1, 1], [], []>} : vector<64x128xf32>, vector<128x128xf32>, vector<64x128xf32> -> vector<64x128xf32>
    %49 = arith.addf %42, %48 : vector<64x128xf32>
    %c0_49 = arith.constant 0 : index
    %c1_50 = arith.constant 1 : index
    %c0_51 = arith.constant 0 : index
    %c0_52 = arith.constant 0 : index
    %50 = vector.load %arg2[%c0_49, %c1_50, %c0_51, %c0_52] : memref<1x9x9x128xf32, #tpu.memory_space<vmem>>, vector<1x8x8x128xf32>
    %51 = vector.shape_cast %50 : vector<1x8x8x128xf32> to vector<8x8x128xf32>
    %52 = vector.shape_cast %51 : vector<8x8x128xf32> to vector<64x128xf32>
    %c7 = arith.constant 7 : index
    %c0_53 = arith.constant 0 : index
    %c0_54 = arith.constant 0 : index
    %53 = vector.load %arg5[%c7, %c0_53, %c0_54] : memref<9x128x128xf32, #tpu.memory_space<vmem>>, vector<1x128x128xf32>
    %54 = vector.shape_cast %53 : vector<1x128x128xf32> to vector<128x128xf32>
    %cst_55 = arith.constant dense<0.000000e+00> : vector<64x128xf32>
    %55 = tpu.matmul %52, %54, %cst_55 {dimension_numbers = #tpu.dot_dimension_numbers<[1], [0], [0], [1], [0, 0, 1, 1], [], []>} : vector<64x128xf32>, vector<128x128xf32>, vector<64x128xf32> -> vector<64x128xf32>
    %56 = arith.addf %49, %55 : vector<64x128xf32>
    %c0_56 = arith.constant 0 : index
    %c1_57 = arith.constant 1 : index
    %c1_58 = arith.constant 1 : index
    %c0_59 = arith.constant 0 : index
    %57 = vector.load %arg1[%c0_56, %c1_57, %c1_58, %c0_59] : memref<1x9x9x128xf32, #tpu.memory_space<vmem>>, vector<1x8x8x128xf32>
    %58 = vector.shape_cast %57 : vector<1x8x8x128xf32> to vector<8x8x128xf32>
    %59 = vector.shape_cast %58 : vector<8x8x128xf32> to vector<64x128xf32>
    %c8 = arith.constant 8 : index
    %c0_60 = arith.constant 0 : index
    %c0_61 = arith.constant 0 : index
    %60 = vector.load %arg5[%c8, %c0_60, %c0_61] : memref<9x128x128xf32, #tpu.memory_space<vmem>>, vector<1x128x128xf32>
    %61 = vector.shape_cast %60 : vector<1x128x128xf32> to vector<128x128xf32>
    %cst_62 = arith.constant dense<0.000000e+00> : vector<64x128xf32>
    %62 = tpu.matmul %59, %61, %cst_62 {dimension_numbers = #tpu.dot_dimension_numbers<[1], [0], [0], [1], [0, 0, 1, 1], [], []>} : vector<64x128xf32>, vector<128x128xf32>, vector<64x128xf32> -> vector<64x128xf32>
    %63 = arith.addf %56, %62 : vector<64x128xf32>
    %64 = vector.shape_cast %63 : vector<64x128xf32> to vector<1x8x8x128xf32>
    %c0_63 = arith.constant 0 : index
    %c0_64 = arith.constant 0 : index
    %c0_65 = arith.constant 0 : index
    %c0_66 = arith.constant 0 : index
    %65 = vector.load %arg6[%c0_63, %c0_64, %c0_65, %c0_66] : memref<1x8x8x128xf32, #tpu.memory_space<vmem>>, vector<1x8x8x128xf32>
    tpu.vector_store %arg6[%c0_63, %c0_64, %c0_65, %c0_66], %64 {strides = array<i32>} : memref<1x8x8x128xf32, #tpu.memory_space<vmem>>, vector<1x8x8x128xf32>,
    %cst_67 = arith.constant dense<0.000000e+00> : vector<128xf32>
    %66 = vector.multi_reduction <add>, %63, %cst_67 [0] : vector<64x128xf32> to vector<128xf32>
    %67 = vector.shape_cast %66 : vector<128xf32> to vector<1x128xf32>
    %68 = vector.shape_cast %67 : vector<1x128xf32> to vector<1x1x128xf32>
    %c0_68 = arith.constant 0 : index
    %c0_69 = arith.constant 0 : index
    %c0_70 = arith.constant 0 : index
    %69 = vector.load %arg7[%c0_68, %c0_69, %c0_70] : memref<1x1x128xf32, #tpu.memory_space<vmem>>, vector<1x1x128xf32>
    tpu.vector_store %arg7[%c0_68, %c0_69, %c0_70], %68 {strides = array<i32>} : memref<1x1x128xf32, #tpu.memory_space<vmem>>, vector<1x1x128xf32>,
    %70 = arith.mulf %63, %63 : vector<64x128xf32>
    %cst_71 = arith.constant dense<0.000000e+00> : vector<128xf32>
    %71 = vector.multi_reduction <add>, %70, %cst_71 [0] : vector<64x128xf32> to vector<128xf32>
    %72 = vector.shape_cast %71 : vector<128xf32> to vector<1x128xf32>
    %73 = vector.shape_cast %72 : vector<1x128xf32> to vector<1x1x128xf32>
    %c0_72 = arith.constant 0 : index
    %c0_73 = arith.constant 0 : index
    %c0_74 = arith.constant 0 : index
    %74 = vector.load %arg8[%c0_72, %c0_73, %c0_74] : memref<1x1x128xf32, #tpu.memory_space<vmem>>, vector<1x1x128xf32>
    tpu.vector_store %arg8[%c0_72, %c0_73, %c0_74], %73 {strides = array<i32>} : memref<1x1x128xf32, #tpu.memory_space<vmem>>, vector<1x1x128xf32>,
    return
  }
  func.func @transform_0(%arg0: i32) -> (i32, i32, i32, i32) {
    %c0_i32 = arith.constant 0 : i32
    %c0_i32_0 = arith.constant 0 : i32
    %c0_i32_1 = arith.constant 0 : i32
    %c0_i32_2 = arith.constant 0 : i32
    return %arg0, %c0_i32, %c0_i32_0, %c0_i32_1 : i32, i32, i32, i32
  }
  func.func @transform_1(%arg0: i32) -> (i32, i32, i32, i32) {
    %c0_i32 = arith.constant 0 : i32
    %c0_i32_0 = arith.constant 0 : i32
    %c0_i32_1 = arith.constant 0 : i32
    %c0_i32_2 = arith.constant 0 : i32
    return %arg0, %c0_i32, %c0_i32_0, %c0_i32_1 : i32, i32, i32, i32
  }
  func.func @transform_2(%arg0: i32) -> (i32, i32, i32, i32) {
    %c0_i32 = arith.constant 0 : i32
    %c0_i32_0 = arith.constant 0 : i32
    %c0_i32_1 = arith.constant 0 : i32
    %c0_i32_2 = arith.constant 0 : i32
    return %arg0, %c0_i32, %c0_i32_0, %c0_i32_1 : i32, i32, i32, i32
  }
  func.func @transform_3(%arg0: i32) -> (i32, i32, i32, i32) {
    %c0_i32 = arith.constant 0 : i32
    %c0_i32_0 = arith.constant 0 : i32
    %c0_i32_1 = arith.constant 0 : i32
    %c0_i32_2 = arith.constant 0 : i32
    return %arg0, %c0_i32, %c0_i32_0, %c0_i32_1 : i32, i32, i32, i32
  }
  func.func @transform_4(%arg0: i32) -> (i32, i32, i32) {
    %c0_i32 = arith.constant 0 : i32
    %c0_i32_0 = arith.constant 0 : i32
    %c0_i32_1 = arith.constant 0 : i32
    %c0_i32_2 = arith.constant 0 : i32
    return %c0_i32, %c0_i32_0, %c0_i32_1 : i32, i32, i32
  }
  func.func @transform_5(%arg0: i32) -> (i32, i32, i32, i32) {
    %c0_i32 = arith.constant 0 : i32
    %c0_i32_0 = arith.constant 0 : i32
    %c0_i32_1 = arith.constant 0 : i32
    %c0_i32_2 = arith.constant 0 : i32
    return %arg0, %c0_i32, %c0_i32_0, %c0_i32_1 : i32, i32, i32, i32
  }
  func.func @transform_6(%arg0: i32) -> (i32, i32, i32) {
    %c0_i32 = arith.constant 0 : i32
    %c0_i32_0 = arith.constant 0 : i32
    %c0_i32_1 = arith.constant 0 : i32
    return %arg0, %c0_i32, %c0_i32_0 : i32, i32, i32
  }
  func.func @transform_7(%arg0: i32) -> (i32, i32, i32) {
    %c0_i32 = arith.constant 0 : i32
    %c0_i32_0 = arith.constant 0 : i32
    %c0_i32_1 = arith.constant 0 : i32
    return %arg0, %c0_i32, %c0_i32_0 : i32, i32, i32
  }
}

module attributes {stable_mosaic.version = 11 : i64} {
  func.func @kernel(%arg0: i32, %arg1: memref<1x8x8x128xf32, #tpu.memory_space<vmem>>, %arg2: memref<1x128xf32, #tpu.memory_space<vmem>>, %arg3: memref<1x128xf32, #tpu.memory_space<vmem>>, %arg4: memref<1x10x10x128xf32, #tpu.memory_space<vmem>>) attributes {dimension_semantics = [#tpu.dimension_semantics<parallel>], iteration_bounds = array<i64: 2>, scalar_prefetch = 0 : i64, scratch_operands = 0 : i64, tpu.core_type = #tpu.core_type<tc>, window_params = [{transform_indices = @transform_0, window_bounds = array<i64: 1, 8, 8, 128>}, {pipeline_mode = #tpu.pipeline_mode<synchronous>, transform_indices = @transform_1, window_bounds = array<i64: 1, 128>}, {pipeline_mode = #tpu.pipeline_mode<synchronous>, transform_indices = @transform_2, window_bounds = array<i64: 1, 128>}, {transform_indices = @transform_3, window_bounds = array<i64: 1, 10, 10, 128>}]} {
    %c0 = arith.constant 0 : index
    %c0_0 = arith.constant 0 : index
    %c0_1 = arith.constant 0 : index
    %c0_2 = arith.constant 0 : index
    %0 = vector.load %arg1[%c0, %c0_0, %c0_1, %c0_2] : memref<1x8x8x128xf32, #tpu.memory_space<vmem>>, vector<1x8x8x128xf32>
    %1 = vector.shape_cast %0 : vector<1x8x8x128xf32> to vector<8x8x128xf32>
    %c0_3 = arith.constant 0 : index
    %c0_4 = arith.constant 0 : index
    %2 = vector.load %arg2[%c0_3, %c0_4] : memref<1x128xf32, #tpu.memory_space<vmem>>, vector<1x128xf32>
    %3 = vector.shape_cast %2 : vector<1x128xf32> to vector<1x1x128xf32>
    %4 = vector.broadcast %3 : vector<1x1x128xf32> to vector<8x8x128xf32>
    %5 = arith.mulf %1, %4 : vector<8x8x128xf32>
    %c0_5 = arith.constant 0 : index
    %c0_6 = arith.constant 0 : index
    %6 = vector.load %arg3[%c0_5, %c0_6] : memref<1x128xf32, #tpu.memory_space<vmem>>, vector<1x128xf32>
    %7 = vector.shape_cast %6 : vector<1x128xf32> to vector<1x1x128xf32>
    %8 = vector.broadcast %7 : vector<1x1x128xf32> to vector<8x8x128xf32>
    %9 = arith.addf %5, %8 : vector<8x8x128xf32>
    %cst = arith.constant 0.000000e+00 : f32
    %10 = vector.broadcast %cst : f32 to vector<8x8x128xf32>
    %11 = arith.maximumf %9, %10 : vector<8x8x128xf32>
    %cst_7 = arith.constant 0.000000e+00 : f32
    %12 = vector.broadcast %cst_7 : f32 to vector<1x10x10x128xf32>
    %c0_8 = arith.constant 0 : index
    %c0_9 = arith.constant 0 : index
    %c0_10 = arith.constant 0 : index
    %c0_11 = arith.constant 0 : index
    %13 = vector.load %arg4[%c0_8, %c0_9, %c0_10, %c0_11] : memref<1x10x10x128xf32, #tpu.memory_space<vmem>>, vector<1x10x10x128xf32>
    tpu.vector_store %arg4[%c0_8, %c0_9, %c0_10, %c0_11], %12 {strides = array<i32>} : memref<1x10x10x128xf32, #tpu.memory_space<vmem>>, vector<1x10x10x128xf32>,
    %c0_12 = arith.constant 0 : index
    %c1 = arith.constant 1 : index
    %c1_13 = arith.constant 1 : index
    %c0_14 = arith.constant 0 : index
    %14 = vector.load %arg4[%c0_12, %c1, %c1_13, %c0_14] : memref<1x10x10x128xf32, #tpu.memory_space<vmem>>, vector<1x8x8x128xf32>
    %15 = vector.shape_cast %14 : vector<1x8x8x128xf32> to vector<8x8x128xf32>
    %16 = vector.shape_cast %11 : vector<8x8x128xf32> to vector<1x8x8x128xf32>
    tpu.vector_store %arg4[%c0_12, %c1, %c1_13, %c0_14], %16 {strides = array<i32>} : memref<1x10x10x128xf32, #tpu.memory_space<vmem>>, vector<1x8x8x128xf32>,
    return
  }
  func.func @transform_0(%arg0: i32) -> (i32, i32, i32, i32) {
    %c0_i32 = arith.constant 0 : i32
    %c0_i32_0 = arith.constant 0 : i32
    %c0_i32_1 = arith.constant 0 : i32
    %c0_i32_2 = arith.constant 0 : i32
    return %arg0, %c0_i32, %c0_i32_0, %c0_i32_1 : i32, i32, i32, i32
  }
  func.func @transform_1(%arg0: i32) -> (i32, i32) {
    %c0_i32 = arith.constant 0 : i32
    %c0_i32_0 = arith.constant 0 : i32
    %c0_i32_1 = arith.constant 0 : i32
    return %c0_i32, %c0_i32_0 : i32, i32
  }
  func.func @transform_2(%arg0: i32) -> (i32, i32) {
    %c0_i32 = arith.constant 0 : i32
    %c0_i32_0 = arith.constant 0 : i32
    %c0_i32_1 = arith.constant 0 : i32
    return %c0_i32, %c0_i32_0 : i32, i32
  }
  func.func @transform_3(%arg0: i32) -> (i32, i32, i32, i32) {
    %c0_i32 = arith.constant 0 : i32
    %c0_i32_0 = arith.constant 0 : i32
    %c0_i32_1 = arith.constant 0 : i32
    %c0_i32_2 = arith.constant 0 : i32
    return %arg0, %c0_i32, %c0_i32_0, %c0_i32_1 : i32, i32, i32, i32
  }
}

module attributes {stable_mosaic.version = 11 : i64} {
  func.func @kernel(%arg0: i32, %arg1: memref<1x10x10x128xf32, #tpu.memory_space<vmem>>, %arg2: memref<9x128x128xf32, #tpu.memory_space<vmem>>, %arg3: memref<1x8x8x128xf32, #tpu.memory_space<vmem>>, %arg4: memref<1x1x128xf32, #tpu.memory_space<vmem>>, %arg5: memref<1x1x128xf32, #tpu.memory_space<vmem>>) attributes {dimension_semantics = [#tpu.dimension_semantics<parallel>], iteration_bounds = array<i64: 2>, scalar_prefetch = 0 : i64, scratch_operands = 0 : i64, tpu.core_type = #tpu.core_type<tc>, window_params = [{transform_indices = @transform_0, window_bounds = array<i64: 1, 10, 10, 128>}, {pipeline_mode = #tpu.pipeline_mode<synchronous>, transform_indices = @transform_1, window_bounds = array<i64: 9, 128, 128>}, {transform_indices = @transform_2, window_bounds = array<i64: 1, 8, 8, 128>}, {transform_indices = @transform_3, window_bounds = array<i64: 1, 1, 128>}, {transform_indices = @transform_4, window_bounds = array<i64: 1, 1, 128>}]} {
    %cst = arith.constant 0.000000e+00 : f32
    %0 = vector.broadcast %cst : f32 to vector<64x128xf32>
    %c0 = arith.constant 0 : index
    %c0_0 = arith.constant 0 : index
    %c0_1 = arith.constant 0 : index
    %c0_2 = arith.constant 0 : index
    %1 = vector.load %arg1[%c0, %c0_0, %c0_1, %c0_2] : memref<1x10x10x128xf32, #tpu.memory_space<vmem>>, vector<1x8x8x128xf32>
    %2 = vector.shape_cast %1 : vector<1x8x8x128xf32> to vector<8x8x128xf32>
    %3 = vector.shape_cast %2 : vector<8x8x128xf32> to vector<64x128xf32>
    %c0_3 = arith.constant 0 : index
    %c0_4 = arith.constant 0 : index
    %c0_5 = arith.constant 0 : index
    %4 = vector.load %arg2[%c0_3, %c0_4, %c0_5] : memref<9x128x128xf32, #tpu.memory_space<vmem>>, vector<1x128x128xf32>
    %5 = vector.shape_cast %4 : vector<1x128x128xf32> to vector<128x128xf32>
    %cst_6 = arith.constant dense<0.000000e+00> : vector<64x128xf32>
    %6 = tpu.matmul %3, %5, %cst_6 {dimension_numbers = #tpu.dot_dimension_numbers<[1], [0], [0], [1], [0, 0, 1, 1], [], []>} : vector<64x128xf32>, vector<128x128xf32>, vector<64x128xf32> -> vector<64x128xf32>
    %7 = arith.addf %0, %6 : vector<64x128xf32>
    %c0_7 = arith.constant 0 : index
    %c0_8 = arith.constant 0 : index
    %c1 = arith.constant 1 : index
    %c0_9 = arith.constant 0 : index
    %8 = vector.load %arg1[%c0_7, %c0_8, %c1, %c0_9] : memref<1x10x10x128xf32, #tpu.memory_space<vmem>>, vector<1x8x8x128xf32>
    %9 = vector.shape_cast %8 : vector<1x8x8x128xf32> to vector<8x8x128xf32>
    %10 = vector.shape_cast %9 : vector<8x8x128xf32> to vector<64x128xf32>
    %c1_10 = arith.constant 1 : index
    %c0_11 = arith.constant 0 : index
    %c0_12 = arith.constant 0 : index
    %11 = vector.load %arg2[%c1_10, %c0_11, %c0_12] : memref<9x128x128xf32, #tpu.memory_space<vmem>>, vector<1x128x128xf32>
    %12 = vector.shape_cast %11 : vector<1x128x128xf32> to vector<128x128xf32>
    %cst_13 = arith.constant dense<0.000000e+00> : vector<64x128xf32>
    %13 = tpu.matmul %10, %12, %cst_13 {dimension_numbers = #tpu.dot_dimension_numbers<[1], [0], [0], [1], [0, 0, 1, 1], [], []>} : vector<64x128xf32>, vector<128x128xf32>, vector<64x128xf32> -> vector<64x128xf32>
    %14 = arith.addf %7, %13 : vector<64x128xf32>
    %c0_14 = arith.constant 0 : index
    %c0_15 = arith.constant 0 : index
    %c2 = arith.constant 2 : index
    %c0_16 = arith.constant 0 : index
    %15 = vector.load %arg1[%c0_14, %c0_15, %c2, %c0_16] : memref<1x10x10x128xf32, #tpu.memory_space<vmem>>, vector<1x8x8x128xf32>
    %16 = vector.shape_cast %15 : vector<1x8x8x128xf32> to vector<8x8x128xf32>
    %17 = vector.shape_cast %16 : vector<8x8x128xf32> to vector<64x128xf32>
    %c2_17 = arith.constant 2 : index
    %c0_18 = arith.constant 0 : index
    %c0_19 = arith.constant 0 : index
    %18 = vector.load %arg2[%c2_17, %c0_18, %c0_19] : memref<9x128x128xf32, #tpu.memory_space<vmem>>, vector<1x128x128xf32>
    %19 = vector.shape_cast %18 : vector<1x128x128xf32> to vector<128x128xf32>
    %cst_20 = arith.constant dense<0.000000e+00> : vector<64x128xf32>
    %20 = tpu.matmul %17, %19, %cst_20 {dimension_numbers = #tpu.dot_dimension_numbers<[1], [0], [0], [1], [0, 0, 1, 1], [], []>} : vector<64x128xf32>, vector<128x128xf32>, vector<64x128xf32> -> vector<64x128xf32>
    %21 = arith.addf %14, %20 : vector<64x128xf32>
    %c0_21 = arith.constant 0 : index
    %c1_22 = arith.constant 1 : index
    %c0_23 = arith.constant 0 : index
    %c0_24 = arith.constant 0 : index
    %22 = vector.load %arg1[%c0_21, %c1_22, %c0_23, %c0_24] : memref<1x10x10x128xf32, #tpu.memory_space<vmem>>, vector<1x8x8x128xf32>
    %23 = vector.shape_cast %22 : vector<1x8x8x128xf32> to vector<8x8x128xf32>
    %24 = vector.shape_cast %23 : vector<8x8x128xf32> to vector<64x128xf32>
    %c3 = arith.constant 3 : index
    %c0_25 = arith.constant 0 : index
    %c0_26 = arith.constant 0 : index
    %25 = vector.load %arg2[%c3, %c0_25, %c0_26] : memref<9x128x128xf32, #tpu.memory_space<vmem>>, vector<1x128x128xf32>
    %26 = vector.shape_cast %25 : vector<1x128x128xf32> to vector<128x128xf32>
    %cst_27 = arith.constant dense<0.000000e+00> : vector<64x128xf32>
    %27 = tpu.matmul %24, %26, %cst_27 {dimension_numbers = #tpu.dot_dimension_numbers<[1], [0], [0], [1], [0, 0, 1, 1], [], []>} : vector<64x128xf32>, vector<128x128xf32>, vector<64x128xf32> -> vector<64x128xf32>
    %28 = arith.addf %21, %27 : vector<64x128xf32>
    %c0_28 = arith.constant 0 : index
    %c1_29 = arith.constant 1 : index
    %c1_30 = arith.constant 1 : index
    %c0_31 = arith.constant 0 : index
    %29 = vector.load %arg1[%c0_28, %c1_29, %c1_30, %c0_31] : memref<1x10x10x128xf32, #tpu.memory_space<vmem>>, vector<1x8x8x128xf32>
    %30 = vector.shape_cast %29 : vector<1x8x8x128xf32> to vector<8x8x128xf32>
    %31 = vector.shape_cast %30 : vector<8x8x128xf32> to vector<64x128xf32>
    %c4 = arith.constant 4 : index
    %c0_32 = arith.constant 0 : index
    %c0_33 = arith.constant 0 : index
    %32 = vector.load %arg2[%c4, %c0_32, %c0_33] : memref<9x128x128xf32, #tpu.memory_space<vmem>>, vector<1x128x128xf32>
    %33 = vector.shape_cast %32 : vector<1x128x128xf32> to vector<128x128xf32>
    %cst_34 = arith.constant dense<0.000000e+00> : vector<64x128xf32>
    %34 = tpu.matmul %31, %33, %cst_34 {dimension_numbers = #tpu.dot_dimension_numbers<[1], [0], [0], [1], [0, 0, 1, 1], [], []>} : vector<64x128xf32>, vector<128x128xf32>, vector<64x128xf32> -> vector<64x128xf32>
    %35 = arith.addf %28, %34 : vector<64x128xf32>
    %c0_35 = arith.constant 0 : index
    %c1_36 = arith.constant 1 : index
    %c2_37 = arith.constant 2 : index
    %c0_38 = arith.constant 0 : index
    %36 = vector.load %arg1[%c0_35, %c1_36, %c2_37, %c0_38] : memref<1x10x10x128xf32, #tpu.memory_space<vmem>>, vector<1x8x8x128xf32>
    %37 = vector.shape_cast %36 : vector<1x8x8x128xf32> to vector<8x8x128xf32>
    %38 = vector.shape_cast %37 : vector<8x8x128xf32> to vector<64x128xf32>
    %c5 = arith.constant 5 : index
    %c0_39 = arith.constant 0 : index
    %c0_40 = arith.constant 0 : index
    %39 = vector.load %arg2[%c5, %c0_39, %c0_40] : memref<9x128x128xf32, #tpu.memory_space<vmem>>, vector<1x128x128xf32>
    %40 = vector.shape_cast %39 : vector<1x128x128xf32> to vector<128x128xf32>
    %cst_41 = arith.constant dense<0.000000e+00> : vector<64x128xf32>
    %41 = tpu.matmul %38, %40, %cst_41 {dimension_numbers = #tpu.dot_dimension_numbers<[1], [0], [0], [1], [0, 0, 1, 1], [], []>} : vector<64x128xf32>, vector<128x128xf32>, vector<64x128xf32> -> vector<64x128xf32>
    %42 = arith.addf %35, %41 : vector<64x128xf32>
    %c0_42 = arith.constant 0 : index
    %c2_43 = arith.constant 2 : index
    %c0_44 = arith.constant 0 : index
    %c0_45 = arith.constant 0 : index
    %43 = vector.load %arg1[%c0_42, %c2_43, %c0_44, %c0_45] : memref<1x10x10x128xf32, #tpu.memory_space<vmem>>, vector<1x8x8x128xf32>
    %44 = vector.shape_cast %43 : vector<1x8x8x128xf32> to vector<8x8x128xf32>
    %45 = vector.shape_cast %44 : vector<8x8x128xf32> to vector<64x128xf32>
    %c6 = arith.constant 6 : index
    %c0_46 = arith.constant 0 : index
    %c0_47 = arith.constant 0 : index
    %46 = vector.load %arg2[%c6, %c0_46, %c0_47] : memref<9x128x128xf32, #tpu.memory_space<vmem>>, vector<1x128x128xf32>
    %47 = vector.shape_cast %46 : vector<1x128x128xf32> to vector<128x128xf32>
    %cst_48 = arith.constant dense<0.000000e+00> : vector<64x128xf32>
    %48 = tpu.matmul %45, %47, %cst_48 {dimension_numbers = #tpu.dot_dimension_numbers<[1], [0], [0], [1], [0, 0, 1, 1], [], []>} : vector<64x128xf32>, vector<128x128xf32>, vector<64x128xf32> -> vector<64x128xf32>
    %49 = arith.addf %42, %48 : vector<64x128xf32>
    %c0_49 = arith.constant 0 : index
    %c2_50 = arith.constant 2 : index
    %c1_51 = arith.constant 1 : index
    %c0_52 = arith.constant 0 : index
    %50 = vector.load %arg1[%c0_49, %c2_50, %c1_51, %c0_52] : memref<1x10x10x128xf32, #tpu.memory_space<vmem>>, vector<1x8x8x128xf32>
    %51 = vector.shape_cast %50 : vector<1x8x8x128xf32> to vector<8x8x128xf32>
    %52 = vector.shape_cast %51 : vector<8x8x128xf32> to vector<64x128xf32>
    %c7 = arith.constant 7 : index
    %c0_53 = arith.constant 0 : index
    %c0_54 = arith.constant 0 : index
    %53 = vector.load %arg2[%c7, %c0_53, %c0_54] : memref<9x128x128xf32, #tpu.memory_space<vmem>>, vector<1x128x128xf32>
    %54 = vector.shape_cast %53 : vector<1x128x128xf32> to vector<128x128xf32>
    %cst_55 = arith.constant dense<0.000000e+00> : vector<64x128xf32>
    %55 = tpu.matmul %52, %54, %cst_55 {dimension_numbers = #tpu.dot_dimension_numbers<[1], [0], [0], [1], [0, 0, 1, 1], [], []>} : vector<64x128xf32>, vector<128x128xf32>, vector<64x128xf32> -> vector<64x128xf32>
    %56 = arith.addf %49, %55 : vector<64x128xf32>
    %c0_56 = arith.constant 0 : index
    %c2_57 = arith.constant 2 : index
    %c2_58 = arith.constant 2 : index
    %c0_59 = arith.constant 0 : index
    %57 = vector.load %arg1[%c0_56, %c2_57, %c2_58, %c0_59] : memref<1x10x10x128xf32, #tpu.memory_space<vmem>>, vector<1x8x8x128xf32>
    %58 = vector.shape_cast %57 : vector<1x8x8x128xf32> to vector<8x8x128xf32>
    %59 = vector.shape_cast %58 : vector<8x8x128xf32> to vector<64x128xf32>
    %c8 = arith.constant 8 : index
    %c0_60 = arith.constant 0 : index
    %c0_61 = arith.constant 0 : index
    %60 = vector.load %arg2[%c8, %c0_60, %c0_61] : memref<9x128x128xf32, #tpu.memory_space<vmem>>, vector<1x128x128xf32>
    %61 = vector.shape_cast %60 : vector<1x128x128xf32> to vector<128x128xf32>
    %cst_62 = arith.constant dense<0.000000e+00> : vector<64x128xf32>
    %62 = tpu.matmul %59, %61, %cst_62 {dimension_numbers = #tpu.dot_dimension_numbers<[1], [0], [0], [1], [0, 0, 1, 1], [], []>} : vector<64x128xf32>, vector<128x128xf32>, vector<64x128xf32> -> vector<64x128xf32>
    %63 = arith.addf %56, %62 : vector<64x128xf32>
    %64 = vector.shape_cast %63 : vector<64x128xf32> to vector<1x8x8x128xf32>
    %c0_63 = arith.constant 0 : index
    %c0_64 = arith.constant 0 : index
    %c0_65 = arith.constant 0 : index
    %c0_66 = arith.constant 0 : index
    %65 = vector.load %arg3[%c0_63, %c0_64, %c0_65, %c0_66] : memref<1x8x8x128xf32, #tpu.memory_space<vmem>>, vector<1x8x8x128xf32>
    tpu.vector_store %arg3[%c0_63, %c0_64, %c0_65, %c0_66], %64 {strides = array<i32>} : memref<1x8x8x128xf32, #tpu.memory_space<vmem>>, vector<1x8x8x128xf32>,
    %cst_67 = arith.constant dense<0.000000e+00> : vector<128xf32>
    %66 = vector.multi_reduction <add>, %63, %cst_67 [0] : vector<64x128xf32> to vector<128xf32>
    %67 = vector.shape_cast %66 : vector<128xf32> to vector<1x128xf32>
    %68 = vector.shape_cast %67 : vector<1x128xf32> to vector<1x1x128xf32>
    %c0_68 = arith.constant 0 : index
    %c0_69 = arith.constant 0 : index
    %c0_70 = arith.constant 0 : index
    %69 = vector.load %arg4[%c0_68, %c0_69, %c0_70] : memref<1x1x128xf32, #tpu.memory_space<vmem>>, vector<1x1x128xf32>
    tpu.vector_store %arg4[%c0_68, %c0_69, %c0_70], %68 {strides = array<i32>} : memref<1x1x128xf32, #tpu.memory_space<vmem>>, vector<1x1x128xf32>,
    %70 = arith.mulf %63, %63 : vector<64x128xf32>
    %cst_71 = arith.constant dense<0.000000e+00> : vector<128xf32>
    %71 = vector.multi_reduction <add>, %70, %cst_71 [0] : vector<64x128xf32> to vector<128xf32>
    %72 = vector.shape_cast %71 : vector<128xf32> to vector<1x128xf32>
    %73 = vector.shape_cast %72 : vector<1x128xf32> to vector<1x1x128xf32>
    %c0_72 = arith.constant 0 : index
    %c0_73 = arith.constant 0 : index
    %c0_74 = arith.constant 0 : index
    %74 = vector.load %arg5[%c0_72, %c0_73, %c0_74] : memref<1x1x128xf32, #tpu.memory_space<vmem>>, vector<1x1x128xf32>
    tpu.vector_store %arg5[%c0_72, %c0_73, %c0_74], %73 {strides = array<i32>} : memref<1x1x128xf32, #tpu.memory_space<vmem>>, vector<1x1x128xf32>,
    return
  }
  func.func @transform_0(%arg0: i32) -> (i32, i32, i32, i32) {
    %c0_i32 = arith.constant 0 : i32
    %c0_i32_0 = arith.constant 0 : i32
    %c0_i32_1 = arith.constant 0 : i32
    %c0_i32_2 = arith.constant 0 : i32
    return %arg0, %c0_i32, %c0_i32_0, %c0_i32_1 : i32, i32, i32, i32
  }
  func.func @transform_1(%arg0: i32) -> (i32, i32, i32) {
    %c0_i32 = arith.constant 0 : i32
    %c0_i32_0 = arith.constant 0 : i32
    %c0_i32_1 = arith.constant 0 : i32
    %c0_i32_2 = arith.constant 0 : i32
    return %c0_i32, %c0_i32_0, %c0_i32_1 : i32, i32, i32
  }
  func.func @transform_2(%arg0: i32) -> (i32, i32, i32, i32) {
    %c0_i32 = arith.constant 0 : i32
    %c0_i32_0 = arith.constant 0 : i32
    %c0_i32_1 = arith.constant 0 : i32
    %c0_i32_2 = arith.constant 0 : i32
    return %arg0, %c0_i32, %c0_i32_0, %c0_i32_1 : i32, i32, i32, i32
  }
  func.func @transform_3(%arg0: i32) -> (i32, i32, i32) {
    %c0_i32 = arith.constant 0 : i32
    %c0_i32_0 = arith.constant 0 : i32
    %c0_i32_1 = arith.constant 0 : i32
    return %arg0, %c0_i32, %c0_i32_0 : i32, i32, i32
  }
  func.func @transform_4(%arg0: i32) -> (i32, i32, i32) {
    %c0_i32 = arith.constant 0 : i32
    %c0_i32_0 = arith.constant 0 : i32
    %c0_i32_1 = arith.constant 0 : i32
    return %arg0, %c0_i32, %c0_i32_0 : i32, i32, i32
  }
}

module attributes {stable_mosaic.version = 11 : i64} {
  func.func @_bn_add_relu_kernel(%arg0: i32, %arg1: memref<1x8x8x128xf32, #tpu.memory_space<vmem>>, %arg2: memref<1x128xf32, #tpu.memory_space<vmem>>, %arg3: memref<1x128xf32, #tpu.memory_space<vmem>>, %arg4: memref<1x8x8x128xf32, #tpu.memory_space<vmem>>, %arg5: memref<1x8x8x128xf32, #tpu.memory_space<vmem>>) attributes {dimension_semantics = [#tpu.dimension_semantics<parallel>], iteration_bounds = array<i64: 2>, scalar_prefetch = 0 : i64, scratch_operands = 0 : i64, tpu.core_type = #tpu.core_type<tc>, window_params = [{transform_indices = @transform_0, window_bounds = array<i64: 1, 8, 8, 128>}, {pipeline_mode = #tpu.pipeline_mode<synchronous>, transform_indices = @transform_1, window_bounds = array<i64: 1, 128>}, {pipeline_mode = #tpu.pipeline_mode<synchronous>, transform_indices = @transform_2, window_bounds = array<i64: 1, 128>}, {transform_indices = @transform_3, window_bounds = array<i64: 1, 8, 8, 128>}, {transform_indices = @transform_4, window_bounds = array<i64: 1, 8, 8, 128>}]} {
    %c0 = arith.constant 0 : index
    %c0_0 = arith.constant 0 : index
    %c0_1 = arith.constant 0 : index
    %c0_2 = arith.constant 0 : index
    %0 = vector.load %arg1[%c0, %c0_0, %c0_1, %c0_2] : memref<1x8x8x128xf32, #tpu.memory_space<vmem>>, vector<1x8x8x128xf32>
    %c0_3 = arith.constant 0 : index
    %c0_4 = arith.constant 0 : index
    %1 = vector.load %arg2[%c0_3, %c0_4] : memref<1x128xf32, #tpu.memory_space<vmem>>, vector<1x128xf32>
    %2 = vector.shape_cast %1 : vector<1x128xf32> to vector<1x1x1x128xf32>
    %3 = vector.broadcast %2 : vector<1x1x1x128xf32> to vector<1x8x8x128xf32>
    %4 = arith.mulf %0, %3 : vector<1x8x8x128xf32>
    %c0_5 = arith.constant 0 : index
    %c0_6 = arith.constant 0 : index
    %5 = vector.load %arg3[%c0_5, %c0_6] : memref<1x128xf32, #tpu.memory_space<vmem>>, vector<1x128xf32>
    %6 = vector.shape_cast %5 : vector<1x128xf32> to vector<1x1x1x128xf32>
    %7 = vector.broadcast %6 : vector<1x1x1x128xf32> to vector<1x8x8x128xf32>
    %8 = arith.addf %4, %7 : vector<1x8x8x128xf32>
    %c0_7 = arith.constant 0 : index
    %c0_8 = arith.constant 0 : index
    %c0_9 = arith.constant 0 : index
    %c0_10 = arith.constant 0 : index
    %9 = vector.load %arg4[%c0_7, %c0_8, %c0_9, %c0_10] : memref<1x8x8x128xf32, #tpu.memory_space<vmem>>, vector<1x8x8x128xf32>
    %10 = arith.addf %8, %9 : vector<1x8x8x128xf32>
    %cst = arith.constant 0.000000e+00 : f32
    %11 = vector.broadcast %cst : f32 to vector<1x8x8x128xf32>
    %12 = arith.maximumf %10, %11 : vector<1x8x8x128xf32>
    %c0_11 = arith.constant 0 : index
    %c0_12 = arith.constant 0 : index
    %c0_13 = arith.constant 0 : index
    %c0_14 = arith.constant 0 : index
    %13 = vector.load %arg5[%c0_11, %c0_12, %c0_13, %c0_14] : memref<1x8x8x128xf32, #tpu.memory_space<vmem>>, vector<1x8x8x128xf32>
    tpu.vector_store %arg5[%c0_11, %c0_12, %c0_13, %c0_14], %12 {strides = array<i32>} : memref<1x8x8x128xf32, #tpu.memory_space<vmem>>, vector<1x8x8x128xf32>,
    return
  }
  func.func @transform_0(%arg0: i32) -> (i32, i32, i32, i32) {
    %c0_i32 = arith.constant 0 : i32
    %c0_i32_0 = arith.constant 0 : i32
    %c0_i32_1 = arith.constant 0 : i32
    %c0_i32_2 = arith.constant 0 : i32
    return %arg0, %c0_i32, %c0_i32_0, %c0_i32_1 : i32, i32, i32, i32
  }
  func.func @transform_1(%arg0: i32) -> (i32, i32) {
    %c0_i32 = arith.constant 0 : i32
    %c0_i32_0 = arith.constant 0 : i32
    %c0_i32_1 = arith.constant 0 : i32
    return %c0_i32, %c0_i32_0 : i32, i32
  }
  func.func @transform_2(%arg0: i32) -> (i32, i32) {
    %c0_i32 = arith.constant 0 : i32
    %c0_i32_0 = arith.constant 0 : i32
    %c0_i32_1 = arith.constant 0 : i32
    return %c0_i32, %c0_i32_0 : i32, i32
  }
  func.func @transform_3(%arg0: i32) -> (i32, i32, i32, i32) {
    %c0_i32 = arith.constant 0 : i32
    %c0_i32_0 = arith.constant 0 : i32
    %c0_i32_1 = arith.constant 0 : i32
    %c0_i32_2 = arith.constant 0 : i32
    return %arg0, %c0_i32, %c0_i32_0, %c0_i32_1 : i32, i32, i32, i32
  }
  func.func @transform_4(%arg0: i32) -> (i32, i32, i32, i32) {
    %c0_i32 = arith.constant 0 : i32
    %c0_i32_0 = arith.constant 0 : i32
    %c0_i32_1 = arith.constant 0 : i32
    %c0_i32_2 = arith.constant 0 : i32
    return %arg0, %c0_i32, %c0_i32_0, %c0_i32_1 : i32, i32, i32, i32
  }
}

</mosaic_0001>

<bundles_post_ra>
// kernel: building_block_forward.5
= control target key start
LH: loop header
LB: loop body
LE: loop exit
PB: predicated region body
PF: predicated region fallthrough
CT: control target
= control target key end

     0   :  { %s361_s12 = smov 0   ;;  %s424_s0 = inlined_call_operand.vmem [shape: f32[2,8,8,128], index: 0, kind: input, shape index: {}]   ;;  %s425_s1 = inlined_call_operand.vmem [shape: f32[1,128], index: 1, kind: input, shape index: {}]   ;;  %s426_s2 = inlined_call_operand.vmem [shape: f32[1,128], index: 2, kind: input, shape index: {}]   ;;  %s427_s3 = inlined_call_operand.vmem [shape: f32[2,10,10,128], index: 3, kind: output, shape index: {}]  }
   0x1 LB: > { %s301_s13 = sadd.s32 4294967295, %s338_s12   ;;  %p305_p0 = scmp.ge.s32.totalorder %s338_s12, 1  ;;  %s338_s12 = sphi %s361_s12, %s13_s12  }
   0x2   : > { %p137_p1 = scmp.lt.s32.totalorder %s338_s12, 3 }
   0x4   : > { %p138_p2 = pnand %p305_p0, %p137_p1 }
   0x5   : > { %p161_p3 = scmp.lt.s32.totalorder (!%p138_p2), %s301_s13, 1  ;;  %v309_v0 = vld [vmem:[%s425_s1] ss:$0 sm:$0xff] (!%p138_p2)  ;;  %v340_v5 = vmov (!%p138_p2), 0.0  }
   0x6   : > { %141 = sbr.rel (%p138_p2) target bundleno = 31 (0x1f), region = 32  ;;  %v310_v1 = vld [vmem:[%s426_s2] ss:$0 sm:$0xff] (!%p138_p2) }
   0xd   : > { %s429_s13 = smov (!%p161_p3, %s301_s13), 1 }
   0xe   : > { %s322_s14 = smul.u32 160, %s429_s13  ;;  %s321_s15 = sshll.u32 %s429_s13, 6 }
   0xf   : > { %s375_s20 = scalar_lea.vmem %s424_s0, %s321_s15 }
  0x10   : > { %s383_s25 = scalar_lea.vmem %s427_s3, %s322_s14  ;;  %v171_v2 = vld [vmem:[%s375_s20] sm:$0xff]  ;;  %v172_v3 = vld [vmem:[%s375_s20 + $0x8] sm:$0xff]  ;;  %v173_v4 = vld [vmem:[%s375_s20 + $0x10] sm:$0xff] }
  0x11   : > { %219 = vst [vmem:[%s383_s25 + $0x10] sm:$0xff] %v340_v5  ;;  %217 = vst [vmem:[%s383_s25] sm:$0xff] %v340_v5  ;;  %v186_v6 = vmul.f32 %v309_v0, %v171_v2  ;;  %v187_v7 = vmul.f32 %v309_v0, %v172_v3  ;;  %v188_v8 = vmul.f32 %v309_v0, %v173_v4  ;;  %v174_v9 = vld [vmem:[%s375_s20 + $0x18] sm:$0xff]  ;;  %v175_v10 = vld [vmem:[%s375_s20 + $0x20] sm:$0xff] }
  0x12   : > { %218 = vst [vmem:[%s383_s25 + $0x8] sm:$0x3] %v340_v5  ;;  %220 = vst [vmem:[%s383_s25 + $0x18] sm:$0x3] %v340_v5  ;;  %v176_v11 = vld [vmem:[%s375_s20 + $0x28] sm:$0xff]  ;;  %v189_v12 = vmul.f32 %v309_v0, %v174_v9  ;;  %v190_v13 = vmul.f32 %v309_v0, %v175_v10  ;;  %v177_v15 = vld [vmem:[%s375_s20 + $0x30] sm:$0xff] }
  0x13   : > { %221 = vst [vmem:[%s383_s25 + $0x20] sm:$0xff] %v340_v5  ;;  %222 = vst [vmem:[%s383_s25 + $0x28] sm:$0x3] %v340_v5  ;;  %v191_v14 = vmul.f32 %v309_v0, %v176_v11  ;;  %v178_v16 = vld [vmem:[%s375_s20 + $0x38] sm:$0xff]  ;;  %v201_v17 = vadd.f32 %v310_v1, %v186_v6  ;;  %v202_v18 = vadd.f32 %v310_v1, %v187_v7 }
  0x14   : > { %223 = vst [vmem:[%s383_s25 + $0x30] sm:$0xff] %v340_v5  ;;  %224 = vst [vmem:[%s383_s25 + $0x38] sm:$0x3] %v340_v5  ;;  %v203_v19 = vadd.f32 %v310_v1, %v188_v8  ;;  %v192_v20 = vmul.f32 %v309_v0, %v177_v15  ;;  %v204_v21 = vadd.f32 %v310_v1, %v189_v12 }
  0x15   : > { %225 = vst [vmem:[%s383_s25 + $0x40] sm:$0xff] %v340_v5  ;;  %226 = vst [vmem:[%s383_s25 + $0x48] sm:$0x3] %v340_v5  ;;  %v205_v22 = vadd.f32 %v310_v1, %v190_v13  ;;  %v206_v23 = vadd.f32 %v310_v1, %v191_v14  ;;  %v193_v24 = vmul.f32 %v309_v0, %v178_v16  ;;  %v209_v25 = vmax.f32 %v201_v17, 0.0 }
  0x16   : > { %227 = vst [vmem:[%s383_s25 + $0x50] sm:$0xff] %v340_v5  ;;  %228 = vst [vmem:[%s383_s25 + $0x58] sm:$0x3] %v340_v5  ;;  %v210_v26 = vmax.f32 %v202_v18, 0.0  ;;  %v211_v27 = vmax.f32 %v203_v19, 0.0  ;;  %v207_v28 = vadd.f32 %v310_v1, %v192_v20  ;;  %v212_v29 = vmax.f32 %v204_v21, 0.0 }
  0x17   : > { %229 = vst [vmem:[%s383_s25 + $0x60] sm:$0xff] %v340_v5  ;;  %230 = vst [vmem:[%s383_s25 + $0x68] sm:$0x3] %v340_v5  ;;  %v213_v30 = vmax.f32 %v205_v22, 0.0  ;;  %v214_v31 = vmax.f32 %v206_v23, 0.0  ;;  %v208_v32 = vadd.f32 %v310_v1, %v193_v24 }
  0x18   : > { %231 = vst [vmem:[%s383_s25 + $0x70] sm:$0xff] %v340_v5  ;;  %232 = vst [vmem:[%s383_s25 + $0x78] sm:$0x3] %v340_v5  ;;  %v215_v33 = vmax.f32 %v207_v28, 0.0 }
  0x19   : > { %233 = vst [vmem:[%s383_s25 + $0x80] sm:$0xff] %v340_v5  ;;  %234 = vst [vmem:[%s383_s25 + $0x88] sm:$0x3] %v340_v5  ;;  %v216_v34 = vmax.f32 %v208_v32, 0.0 }
  0x1a   : > { %235 = vst [vmem:[%s383_s25 + $0x90] sm:$0xff] %v340_v5  ;;  %236 = vst [vmem:[%s383_s25 + $0x98] sm:$0x3] %v340_v5 }
  0x1b   : > { %311 = vst [vmem:[%s383_s25 + $0x11] sm:$0xff] %v209_v25  ;;  %312 = vst [vmem:[%s383_s25 + $0x21] sm:$0xff] %v210_v26 }
  0x1c   : > { %313 = vst [vmem:[%s383_s25 + $0x31] sm:$0xff] %v211_v27  ;;  %314 = vst [vmem:[%s383_s25 + $0x41] sm:$0xff] %v212_v29 }
  0x1d   : > { %315 = vst [vmem:[%s383_s25 + $0x51] sm:$0xff] %v213_v30  ;;  %316 = vst [vmem:[%s383_s25 + $0x61] sm:$0xff] %v214_v31 }
  0x1e   : > { %317 = vst [vmem:[%s383_s25 + $0x71] sm:$0xff] %v215_v33  ;;  %318 = vst [vmem:[%s383_s25 + $0x81] sm:$0xff] %v216_v34 }
  0x1f PF: > { %s13_s12 = sadd.s32 1, %s338_s12  }
  0x20   : > { %p10_p4 = scmp.ge.s32.totalorder %s13_s12, 4  }
  0x22   :  { %12 = sbr.rel (!%p10_p4) target bundleno = 1 (0x1), region = 63 }

// kernel: building_block_forward.7
= control target key start
LH: loop header
LB: loop body
LE: loop exit
PB: predicated region body
PF: predicated region fallthrough
CT: control target
= control target key end

     0   :  { %s516_s15 = smov 0   ;;  %s518_s16 = smov 0   ;;  %s596_s0 = inlined_call_operand.vmem [shape: f32[2,8,8,128], index: 0, kind: input, shape index: {}]   ;;  %s597_s1 = inlined_call_operand.vmem [shape: f32[1,128], index: 1, kind: input, shape index: {}]   ;;  %s598_s2 = inlined_call_operand.vmem [shape: f32[1,128], index: 2, kind: input, shape index: {}]   ;;  %s599_s3 = inlined_call_operand.vmem [shape: f32[2,9,9,128], index: 3, kind: input, shape index: {}]   ;;  %s600_s4 = inlined_call_operand.vmem [shape: f32[2,8,8,128], index: 4, kind: output, shape index: {}]  }
   0x1   :  { %s520_s17 = smov 0  }
   0x2 LB: > { %s424_s18 = sadd.s32 4294967295, %s489_s17   ;;  %s533_s19 = sadd.s32 1, %s489_s17   ;;  %s489_s17 = sphi %s520_s17, %s603_s17   ;;  %s485_s16 = sphi %s518_s16, %s602_s16   ;;  %s481_s15 = sphi %s516_s15, %s601_s15  }
   0x3   : > { %s86_s20 = ssub.s32 %s489_s17, %s533_s19  ;;  %s89_s21 = sadd.s32 1, %s485_s16 }
   0x4   : > { %p87_p0 = scmp.eq.s32.totalorder %s86_s20, 0  ;;  %p96_p1 = scmp.ne.s32.totalorder %s485_s16, %s481_s15 }
   0x5   : > { %p97_p2 = scmp.eq.s32.totalorder %s489_s17, 0  ;;  %p427_p4 = scmp.ge.s32.totalorder %s489_s17, 2 }
   0x6   : > { %s542_s22 = scalar_select %p87_p0, %s485_s16, %s89_s21  }
   0x7   : > { %p98_p3 = por %p97_p2, %p96_p1  ;;  %154 = sbr.rel (%p427_p4) target bundleno = 23 (0x17), region = 24 }
   0xe   : > { %165 = sbr.rel (!%p98_p3) target bundleno = 23 (0x17), region = 32  ;;  %s167_s23 = sand.u32 (%p98_p3), 1, %s485_s16  }
   0xf   : > { %s442_s24 = smul.u32 (%p98_p3), 144, %s489_s17  ;;  %s428_s25 = sshll.u32 (%p98_p3), %s167_s23, 6 }
  0x10   : > { %s169_s29 = scalar_lea.vmem (%p98_p3), [#allocation2], %s428_s25 }
  0x11   : > { %s172_s28 = scalar_lea.vmem (%p98_p3), %s599_s3, %s442_s24 }
  0x12   : > { %v214_v0 = vld [vmem:[%s172_s28] sm:$0xff] (%p98_p3)  ;;  %v216_v1 = vld [vmem:[%s172_s28 + $0x10] sm:$0xff] (%p98_p3) }
  0x13   : > { %v218_v2 = vld [vmem:[%s172_s28 + $0x20] sm:$0xff] (%p98_p3)  ;;  %215 = vst [vmem:[%s169_s29] sm:$0xff] (%p98_p3), %v214_v0  ;;  %217 = vst [vmem:[%s169_s29 + $0x8] sm:$0xff] (%p98_p3), %v216_v1  ;;  %v220_v3 = vld [vmem:[%s172_s28 + $0x30] sm:$0xff] (%p98_p3) }
  0x14   : > { %219 = vst [vmem:[%s169_s29 + $0x10] sm:$0xff] (%p98_p3), %v218_v2  ;;  %v222_v4 = vld [vmem:[%s172_s28 + $0x40] sm:$0xff] (%p98_p3)  ;;  %v224_v5 = vld [vmem:[%s172_s28 + $0x50] sm:$0xff] (%p98_p3)  ;;  %221 = vst [vmem:[%s169_s29 + $0x18] sm:$0xff] (%p98_p3), %v220_v3 }
  0x15   : > { %223 = vst [vmem:[%s169_s29 + $0x20] sm:$0xff] %v222_v4  ;;  %225 = vst [vmem:[%s169_s29 + $0x28] sm:$0xff] %v224_v5  ;;  %v226_v6 = vld [vmem:[%s172_s28 + $0x60] sm:$0xff]  ;;  %v228_v7 = vld [vmem:[%s172_s28 + $0x70] sm:$0xff] }
  0x16   : > { %227 = vst [vmem:[%s169_s29 + $0x30] sm:$0xff] %v226_v6  ;;  %229 = vst [vmem:[%s169_s29 + $0x38] sm:$0xff] %v228_v7 }
  0x17 PF: > { %p430_p5 = scmp.ge.s32.totalorder %s489_s17, 1  ;;  %p234_p6 = scmp.lt.s32.totalorder %s489_s17, 3 }
  0x19   : > { %p235_p7 = pnand %p430_p5, %p234_p6 }
  0x1a   : > { %s241_s30 = sand.u32 (!%p235_p7), 1, %s481_s15   ;;  %p271_p8 = scmp.lt.s32.totalorder (!%p235_p7), %s424_s18, 1  ;;  %v436_v8 = vld [vmem:[%s597_s1] ss:$0 sm:$0xff] (!%p235_p7) }
  0x1b   : > { %238 = sbr.rel (%p235_p7) target bundleno = 50 (0x32), region = 70  ;;  %s431_s5 = sshll.u32 (!%p235_p7), %s241_s30, 6  ;;  %v437_v9 = vld [vmem:[%s598_s2] ss:$0 sm:$0xff] (!%p235_p7) }
  0x1c   : > { %s571_s14 = scalar_lea.vmem (!%p235_p7), [#allocation2], %s431_s5 }
  0x1d   : > { %v319_v11 = vld [vmem:[%s571_s14] sm:$0xff] (!%p235_p7)  ;;  %v320_v13 = vld [vmem:[%s571_s14 + $0x8] sm:$0xff] (!%p235_p7)  ;;  %v321_v21 = vld [vmem:[%s571_s14 + $0x10] sm:$0xff] (!%p235_p7) }
  0x1e   : > { %v322_v30 = vld [vmem:[%s571_s14 + $0x18] sm:$0xff] (!%p235_p7)  ;;  %v323_v31 = vld [vmem:[%s571_s14 + $0x20] sm:$0xff] (!%p235_p7)  ;;  %v324_v32 = vld [vmem:[%s571_s14 + $0x28] sm:$0xff] (!%p235_p7) }
  0x1f   : > { %v325_v37 = vld [vmem:[%s571_s14 + $0x30] sm:$0xff] (!%p235_p7)  ;;  %v326_v43 = vld [vmem:[%s571_s14 + $0x38] sm:$0xff] (!%p235_p7) }
  0x22   : > { %s605_s18 = smov (!%p271_p8, %s424_s18), 1 }
  0x23   : > { %s440_s6 = sshll.u32 %s605_s18, 6 }
  0x24   : > { %s275_s11 = scalar_lea.vmem %s596_s0, %s440_s6  ;;  %s280_s20 = scalar_lea.vmem %s600_s4, %s440_s6 }
  0x25   : > { %v281_v10 = vld [vmem:[%s275_s11] sm:$0xff]  ;;  %v282_v12 = vld [vmem:[%s275_s11 + $0x8] sm:$0xff]  ;;  %v283_v14 = vld [vmem:[%s275_s11 + $0x10] sm:$0xff] }
  0x26   : > { %v296_v15 = vmul.f32 %v436_v8, %v281_v10  ;;  %v297_v16 = vmul.f32 %v436_v8, %v282_v12  ;;  %v298_v17 = vmul.f32 %v436_v8, %v283_v14  ;;  %v284_v18 = vld [vmem:[%s275_s11 + $0x18] sm:$0xff]  ;;  %v285_v19 = vld [vmem:[%s275_s11 + $0x20] sm:$0xff]  ;;  %v286_v20 = vld [vmem:[%s275_s11 + $0x28] sm:$0xff] }
  0x27   : > { %v299_v22 = vmul.f32 %v436_v8, %v284_v18  ;;  %v300_v23 = vmul.f32 %v436_v8, %v285_v19  ;;  %v301_v24 = vmul.f32 %v436_v8, %v286_v20  ;;  %v287_v25 = vld [vmem:[%s275_s11 + $0x30] sm:$0xff]  ;;  %v288_v26 = vld [vmem:[%s275_s11 + $0x38] sm:$0xff] }
  0x28   : > { %v311_v27 = vadd.f32 %v437_v9, %v296_v15  ;;  %v312_v28 = vadd.f32 %v437_v9, %v297_v16  ;;  %v313_v29 = vadd.f32 %v437_v9, %v298_v17  ;;  %v302_v33 = vmul.f32 %v436_v8, %v287_v25 }
  0x29   : > { %v314_v34 = vadd.f32 %v437_v9, %v299_v22  ;;  %v315_v35 = vadd.f32 %v437_v9, %v300_v23  ;;  %v316_v36 = vadd.f32 %v437_v9, %v301_v24  ;;  %v303_v38 = vmul.f32 %v436_v8, %v288_v26 }
  0x2a   : > { %v327_v39 = vadd.f32 %v319_v11, %v311_v27  ;;  %v328_v40 = vadd.f32 %v320_v13, %v312_v28  ;;  %v329_v41 = vadd.f32 %v321_v21, %v313_v29  ;;  %v317_v42 = vadd.f32 %v437_v9, %v302_v33 }
  0x2b   : > { %v330_v44 = vadd.f32 %v322_v30, %v314_v34  ;;  %v331_v45 = vadd.f32 %v323_v31, %v315_v35  ;;  %v332_v46 = vadd.f32 %v324_v32, %v316_v36  ;;  %v318_v47 = vadd.f32 %v437_v9, %v303_v38 }
  0x2c   : > { %v335_v48 = vmax.f32 %v327_v39, 0.0  ;;  %v336_v49 = vmax.f32 %v328_v40, 0.0  ;;  %v337_v50 = vmax.f32 %v329_v41, 0.0  ;;  %v333_v51 = vadd.f32 %v325_v37, %v317_v42 }
  0x2d   : > { %v338_v52 = vmax.f32 %v330_v44, 0.0  ;;  %v339_v53 = vmax.f32 %v331_v45, 0.0  ;;  %v340_v54 = vmax.f32 %v332_v46, 0.0  ;;  %v334_v55 = vadd.f32 %v326_v43, %v318_v47 }
  0x2e   : > { %343 = vst [vmem:[%s280_s20] sm:$0xff] %v335_v48  ;;  %344 = vst [vmem:[%s280_s20 + $0x8] sm:$0xff] %v336_v49  ;;  %v341_v56 = vmax.f32 %v333_v51, 0.0 }
  0x2f   : > { %345 = vst [vmem:[%s280_s20 + $0x10] sm:$0xff] %v337_v50  ;;  %346 = vst [vmem:[%s280_s20 + $0x18] sm:$0xff] %v338_v52  ;;  %v342_v57 = vmax.f32 %v334_v55, 0.0 }
  0x30   : > { %347 = vst [vmem:[%s280_s20 + $0x20] sm:$0xff] %v339_v53  ;;  %348 = vst [vmem:[%s280_s20 + $0x28] sm:$0xff] %v340_v54 }
  0x31   : > { %349 = vst [vmem:[%s280_s20 + $0x30] sm:$0xff] %v341_v56  ;;  %350 = vst [vmem:[%s280_s20 + $0x38] sm:$0xff] %v342_v57 }
  0x32 PF: > { %p11_p9 = scmp.ge.s32.totalorder %s533_s19, 4   ;;  %s601_s15 = smov %s485_s16 }
  0x33   : > { %s602_s16 = smov %s542_s22  ;;  %s603_s17 = smov %s533_s19 }
  0x34   :  { %13 = sbr.rel (!%p11_p9) target bundleno = 2 (0x2), region = 112 }

// kernel: building_block_forward.6
= control target key start
LH: loop header
LB: loop body
LE: loop exit
PB: predicated region body
PF: predicated region fallthrough
CT: control target
= control target key end

     0   :  { %s2800_s15 = smov 0   ;;  %s3403_s0 = inlined_call_operand.vmem [shape: f32[2,10,10,128], index: 0, kind: input, shape index: {}]   ;;  %s3404_s1 = inlined_call_operand.vmem [shape: f32[9,128,128], index: 1, kind: input, shape index: {}]   ;;  %s3405_s2 = inlined_call_operand.vmem [shape: f32[2,8,8,128], index: 2, kind: output, shape index: {0}]   ;;  %s3406_s3 = inlined_call_operand.vmem [shape: f32[2,1,128], index: 3, kind: output, shape index: {1}]   ;;  %s3407_s4 = inlined_call_operand.vmem [shape: f32[2,1,128], index: 4, kind: output, shape index: {2}]  }
   0x1 LB: > { %s1591_s16 = sadd.s32 4294967295, %s2773_s15   ;;  %p1595_p0 = scmp.ge.s32.totalorder %s2773_s15, 1  ;;  %s2773_s15 = sphi %s2800_s15, %s15_s15  }
   0x2   : > { %p167_p1 = scmp.lt.s32.totalorder %s2773_s15, 3 }
   0x4   : > { %p168_p2 = pnand %p1595_p0, %p167_p1 }
   0x5   : > { %v1599_v0 = vld [vmem:[%s3404_s1 + $0x80] sm:$0xff] (!%p168_p2)  ;;  %v1600_v1 = vld [vmem:[%s3404_s1 + $0x88] sm:$0xff] (!%p168_p2)  ;;  %p199_p3 = scmp.lt.s32.totalorder (!%p168_p2), %s1591_s16, 1  ;;  %v1601_v5 = vld [vmem:[%s3404_s1 + $0x90] sm:$0xff] (!%p168_p2) }
   0x6   : > { %171 = sbr.rel (%p168_p2) target bundleno = 416 (0x1a0), region = 28  ;;  %v1663_v2 = vld [vmem:[%s3404_s1 + $0x200] sm:$0xff] (!%p168_p2)  ;;  %v2390_v3 = vpack.c.bf16 (!%p168_p2), %v1600_v1, %v1599_v0  ;;  %v1664_v4 = vld [vmem:[%s3404_s1 + $0x208] sm:$0xff] (!%p168_p2)  ;;  %v1602_v6 = vld [vmem:[%s3404_s1 + $0x98] sm:$0xff] (!%p168_p2) }
   0x7   : > { %v2518_v7 = vpack.c.bf16 (!%p168_p2), %v1664_v4, %v1663_v2  ;;  %v2394_v8 = vpack.c.bf16 (!%p168_p2), %v1602_v6, %v1601_v5  ;;  %v1665_v9 = vld [vmem:[%s3404_s1 + $0x210] sm:$0xff] (!%p168_p2)  ;;  %v1666_v10 = vld [vmem:[%s3404_s1 + $0x218] sm:$0xff] (!%p168_p2)  ;;  %v1603_v11 = vld [vmem:[%s3404_s1 + $0xa0] sm:$0xff] (!%p168_p2) }
   0x8   : > { %2391 = vmatprep.subr.bf16.mxu1 (!%p168_p2), %v2390_v3  ;;  %v2522_v12 = vpack.c.bf16 (!%p168_p2), %v1666_v10, %v1665_v9  ;;  %v1604_v13 = vld [vmem:[%s3404_s1 + $0xa8] sm:$0xff] (!%p168_p2)  ;;  %v1667_v14 = vld [vmem:[%s3404_s1 + $0x220] sm:$0xff] (!%p168_p2)  ;;  %v1605_v18 = vld [vmem:[%s3404_s1 + $0xb0] sm:$0xff] (!%p168_p2) }
   0x9   : > { %v1668_v15 = vld [vmem:[%s3404_s1 + $0x228] sm:$0xff] (!%p168_p2)  ;;  %2519 = vmatprep.subr.bf16.mxu0 (!%p168_p2), %v2518_v7  ;;  %2393 = vmatpush3.bf16.msra.mxu1 (!%p168_p2), %v2390_v3  ;;  %v2398_v16 = vpack.c.bf16 (!%p168_p2), %v1604_v13, %v1603_v11  ;;  %v1606_v19 = vld [vmem:[%s3404_s1 + $0xb8] sm:$0xff] (!%p168_p2)  ;;  %v1669_v20 = vld [vmem:[%s3404_s1 + $0x230] sm:$0xff] (!%p168_p2) }
   0xa   : > { %2521 = vmatpush3.bf16.msra.mxu0 (!%p168_p2), %v2518_v7  ;;  %2395 = vmatprep.subr.bf16.mxu1 (!%p168_p2), %v2394_v8  ;;  %v2526_v17 = vpack.c.bf16 (!%p168_p2), %v1668_v15, %v1667_v14  ;;  %v1670_v21 = vld [vmem:[%s3404_s1 + $0x238] sm:$0xff] (!%p168_p2)  ;;  %v2402_v22 = vpack.c.bf16 (!%p168_p2), %v1606_v19, %v1605_v18  ;;  %v1607_v24 = vld [vmem:[%s3404_s1 + $0xc0] sm:$0xff] (!%p168_p2)  ;;  %v1608_v25 = vld [vmem:[%s3404_s1 + $0xc8] sm:$0xff] (!%p168_p2) }
   0xb   : > { %2523 = vmatprep.subr.bf16.mxu0 (!%p168_p2), %v2522_v12  ;;  %v2530_v23 = vpack.c.bf16 (!%p168_p2), %v1670_v21, %v1669_v20  ;;  %v1671_v27 = vld [vmem:[%s3404_s1 + $0x240] sm:$0xff] (!%p168_p2)  ;;  %v1672_v28 = vld [vmem:[%s3404_s1 + $0x248] sm:$0xff] (!%p168_p2)  ;;  %v2406_v30 = vpack.c.bf16 (!%p168_p2), %v1608_v25, %v1607_v24  ;;  %v1609_v32 = vld [vmem:[%s3404_s1 + $0xd0] sm:$0xff] (!%p168_p2) }
   0xc   : > { %v2534_v31 = vpack.c.bf16 (!%p168_p2), %v1672_v28, %v1671_v27  ;;  %v1610_v33 = vld [vmem:[%s3404_s1 + $0xd8] sm:$0xff] (!%p168_p2)  ;;  %v1673_v34 = vld [vmem:[%s3404_s1 + $0x250] sm:$0xff] (!%p168_p2)  ;;  %v1611_v38 = vld [vmem:[%s3404_s1 + $0xe0] sm:$0xff] (!%p168_p2) }
   0xd   : > { %s3409_s16 = smov (!%p199_p3, %s1591_s16), 1  ;;  %2397 = vmatpush3.bf16.msra.mxu1 %v2394_v8  ;;  %v1674_v35 = vld [vmem:[%s3404_s1 + $0x258] sm:$0xff]  ;;  %v2410_v36 = vpack.c.bf16 %v1610_v33, %v1609_v32  ;;  %v1612_v39 = vld [vmem:[%s3404_s1 + $0xe8] sm:$0xff]  ;;  %v1675_v40 = vld [vmem:[%s3404_s1 + $0x260] sm:$0xff] }
   0xe   : > { %s2758_s17 = smul.u32 160, %s3409_s16  ;;  %2525 = vmatpush3.bf16.msra.mxu0 %v2522_v12  ;;  %2399 = vmatprep.subr.bf16.mxu1 %v2398_v16  ;;  %v2538_v37 = vpack.c.bf16 %v1674_v35, %v1673_v34  ;;  %v1676_v41 = vld [vmem:[%s3404_s1 + $0x268] sm:$0xff]  ;;  %v2414_v42 = vpack.c.bf16 %v1612_v39, %v1611_v38  ;;  %v1613_v44 = vld [vmem:[%s3404_s1 + $0xf0] sm:$0xff]  ;;  %v1614_v45 = vld [vmem:[%s3404_s1 + $0xf8] sm:$0xff]  ;;  %s211_s11 = scalar_lea.vmem %s3406_s3, %s3409_s16 }
   0xf   : > { %2527 = vmatprep.subr.bf16.mxu0 %v2526_v17  ;;  %v2542_v43 = vpack.c.bf16 %v1676_v41, %v1675_v40  ;;  %v1677_v46 = vld [vmem:[%s3404_s1 + $0x270] sm:$0xff]  ;;  %v1678_v47 = vld [vmem:[%s3404_s1 + $0x278] sm:$0xff]  ;;  %v2418_v48 = vpack.c.bf16 %v1614_v45, %v1613_v44  ;;  %v223_v50 = vld [vmem:[%s3404_s1] sm:$0xff]  ;;  %s214_s14 = scalar_lea.vmem %s3407_s4, %s3409_s16 }
  0x10   : > { %s2862_s28 = scalar_lea.vmem %s3403_s0, %s2758_s17  ;;  %v2546_v49 = vpack.c.bf16 %v1678_v47, %v1677_v46  ;;  %v224_v51 = vld [vmem:[%s3404_s1 + $0x8] sm:$0xff]  ;;  %v1687_v52 = vld [vmem:[%s3404_s1 + $0x280] sm:$0xff]  ;;  %v225_v56 = vld [vmem:[%s3404_s1 + $0x10] sm:$0xff] }
  0x11   : > { %v239_v26 = vld [vmem:[%s2862_s28 + $0x1] sm:$0xff]  ;;  %v1655_v29 = vld [vmem:[%s2862_s28 + $0x11] sm:$0xff]  ;;  %2401 = vmatpush3.bf16.msra.mxu1 %v2398_v16  ;;  %v2422_v54 = vpack.c.bf16 %v224_v51, %v223_v50 }
  0x12   : > { %2026 = vmatprep.mubr.f32.mxu1 %v239_v26  ;;  %2202 = vmatprep.mubr.f32.mxu0 %v1655_v29  ;;  %v1688_v53 = vld [vmem:[%s3404_s1 + $0x288] sm:$0xff]  ;;  %v226_v57 = vld [vmem:[%s3404_s1 + $0x18] sm:$0xff]  ;;  %v1689_v58 = vld [vmem:[%s3404_s1 + $0x290] sm:$0xff] }
  0x13   : > { %2529 = vmatpush3.bf16.msra.mxu0 %v2526_v17  ;;  %2403 = vmatprep.subr.bf16.mxu1 %v2402_v22  ;;  %v2550_v55 = vpack.c.bf16 %v1688_v53, %v1687_v52  ;;  %v1690_v59 = vld [vmem:[%s3404_s1 + $0x298] sm:$0xff]  ;;  %v2939_v60 = vld [vmem:[%s2862_s28 + $0x21] sm:$0xff]  ;;  %v2426_v61 = vpack.c.bf16 %v226_v57, %v225_v56  ;;  %v229_v7 = vld [vmem:[%s3404_s1 + $0x30] sm:$0xff] }
  0x14   : > { %2531 = vmatprep.subr.bf16.mxu0 %v2530_v23  ;;  %v2554_v62 = vpack.c.bf16 %v1690_v59, %v1689_v58  ;;  %v227_v63 = vld [vmem:[%s3404_s1 + $0x20] sm:$0xff]  ;;  %v228_v0 = vld [vmem:[%s3404_s1 + $0x28] sm:$0xff]  ;;  %v2955_v3 = vld [vmem:[%s2862_s28 + $0x31] sm:$0xff] }
  0x15   : > { %2405 = vmatpush3.bf16.msra.mxu1 %v2402_v22  ;;  %v1691_v1 = vld [vmem:[%s3404_s1 + $0x2a0] sm:$0xff]  ;;  %v1692_v2 = vld [vmem:[%s3404_s1 + $0x2a8] sm:$0xff]  ;;  %v2430_v4 = vpack.c.bf16 %v228_v0, %v227_v63  ;;  %v230_v8 = vld [vmem:[%s3404_s1 + $0x38] sm:$0xff] }
  0x16   : > { %2407 = vmatprep.subr.bf16.mxu1 %v2406_v30  ;;  %v2958_v5 = vld [vmem:[%s2862_s28 + $0x41] sm:$0xff]  ;;  %v2558_v6 = vpack.c.bf16 %v1692_v2, %v1691_v1  ;;  %v1693_v9 = vld [vmem:[%s3404_s1 + $0x2b0] sm:$0xff]  ;;  %v1694_v10 = vld [vmem:[%s3404_s1 + $0x2b8] sm:$0xff]  ;;  %v2434_v12 = vpack.c.bf16 %v230_v8, %v229_v7 }
  0x17   : > { %2533 = vmatpush3.bf16.msra.mxu0 %v2530_v23  ;;  %v2977_v11 = vld [vmem:[%s2862_s28 + $0x51] sm:$0xff]  ;;  %v2980_v13 = vld [vmem:[%s2862_s28 + $0x61] sm:$0xff]  ;;  %v2562_v14 = vpack.c.bf16 %v1694_v10, %v1693_v9 }
  0x18   : > { %2535 = vmatprep.subr.bf16.mxu0 %v2534_v31  ;;  %v231_v15 = vld [vmem:[%s3404_s1 + $0x40] sm:$0xff]  ;;  %v232_v16 = vld [vmem:[%s3404_s1 + $0x48] sm:$0xff]  ;;  %v2999_v19 = vld [vmem:[%s2862_s28 + $0x71] sm:$0xff] }
  0x19   : > { %2409 = vmatpush3.bf16.msra.mxu1 %v2406_v30  ;;  %v1695_v17 = vld [vmem:[%s3404_s1 + $0x2c0] sm:$0xff]  ;;  %v1696_v18 = vld [vmem:[%s3404_s1 + $0x2c8] sm:$0xff]  ;;  %v2438_v20 = vpack.c.bf16 %v232_v16, %v231_v15  ;;  %v233_v23 = vld [vmem:[%s3404_s1 + $0x50] sm:$0xff] }
  0x1a   : > { %2411 = vmatprep.subr.bf16.mxu1 %v2410_v36  ;;  %v3002_v21 = vld [vmem:[%s2862_s28 + $0x81] sm:$0xff]  ;;  %v2566_v22 = vpack.c.bf16 %v1696_v18, %v1695_v17  ;;  %v234_v24 = vld [vmem:[%s3404_s1 + $0x58] sm:$0xff]  ;;  %v1697_v25 = vld [vmem:[%s3404_s1 + $0x2d0] sm:$0xff] }
  0x1b   : > { %2537 = vmatpush3.bf16.msra.mxu0 %v2534_v31  ;;  %v1698_v26 = vld [vmem:[%s3404_s1 + $0x2d8] sm:$0xff]  ;;  %v215_v27 = vld [vmem:[%s2862_s28] sm:$0xff]  ;;  %v236_v32 = vld [vmem:[%s3404_s1 + $0x68] sm:$0xff] }
  0x1c   : > { %2539 = vmatprep.subr.bf16.mxu0 %v2538_v37  ;;  %v3022_v28 = vld [vmem:[%s2862_s28 + $0x12] sm:$0xff]  ;;  %v2570_v30 = vpack.c.bf16 %v1698_v26, %v1697_v25  ;;  %v235_v31 = vld [vmem:[%s3404_s1 + $0x60] sm:$0xff]  ;;  %v1700_v34 = vld [vmem:[%s3404_s1 + $0x2e8] sm:$0xff] }
  0x1d   : > { %2413 = vmatpush3.bf16.msra.mxu1 %v2410_v36  ;;  %v1699_v33 = vld [vmem:[%s3404_s1 + $0x2e0] sm:$0xff]  ;;  %v2446_v35 = vpack.c.bf16 %v236_v32, %v235_v31  ;;  %v238_v38 = vld [vmem:[%s3404_s1 + $0x78] sm:$0xff]  ;;  %v1701_v39 = vld [vmem:[%s3404_s1 + $0x2f0] sm:$0xff] }
  0x1e   : > { %2415 = vmatprep.subr.bf16.mxu1 %v2414_v42  ;;  %v2574_v36 = vpack.c.bf16 %v1700_v34, %v1699_v33  ;;  %v1702_v40 = vld [vmem:[%s3404_s1 + $0x2f8] sm:$0xff]  ;;  %v1616_v44 = vld [vmem:[%s3404_s1 + $0x108] sm:$0xff]  ;;  %v1711_v45 = vld [vmem:[%s3404_s1 + $0x300] sm:$0xff] }
  0x1f   : > { %2541 = vmatpush3.bf16.msra.mxu0 %v2538_v37  ;;  %v237_v37 = vld [vmem:[%s3404_s1 + $0x70] sm:$0xff]  ;;  %v1712_v46 = vld [vmem:[%s3404_s1 + $0x308] sm:$0xff]  ;;  %v1618_v50 = vld [vmem:[%s3404_s1 + $0x118] sm:$0xff] }
  0x20   : > { %2543 = vmatprep.subr.bf16.mxu0 %v2542_v43  ;;  %v2450_v41 = vpack.c.bf16 %v238_v38, %v237_v37  ;;  %v1713_v51 = vld [vmem:[%s3404_s1 + $0x310] sm:$0xff]  ;;  %v1714_v52 = vld [vmem:[%s3404_s1 + $0x318] sm:$0xff]  ;;  %v1619_v57 = vld [vmem:[%s3404_s1 + $0x120] sm:$0xff] }
  0x21   : > { %2417 = vmatpush3.bf16.msra.mxu1 %v2414_v42  ;;  %v2578_v42 = vpack.c.bf16 %v1702_v40, %v1701_v39  ;;  %v3074_v53 = vld [vmem:[%s2862_s28 + $0x10] sm:$0xff]  ;;  %v2586_v56 = vpack.c.bf16 %v1714_v52, %v1713_v51  ;;  %v1620_v58 = vld [vmem:[%s3404_s1 + $0x128] sm:$0xff]  ;;  %v1715_v59 = vld [vmem:[%s3404_s1 + $0x320] sm:$0xff] }
  0x22   : > { %2419 = vmatprep.subr.bf16.mxu1 %v2418_v48  ;;  %v3097_v63 = vld [vmem:[%s2862_s28 + $0x32] sm:$0xff]  ;;  %v2462_v1 = vpack.c.bf16 %v1620_v58, %v1619_v57  ;;  %v3103_v2 = vld [vmem:[%s2862_s28 + $0x42] sm:$0xff] }
  0x23   : > { %2545 = vmatpush3.bf16.msra.mxu0 %v2542_v43  ;;  %v1615_v43 = vld [vmem:[%s3404_s1 + $0x100] sm:$0xff]  ;;  %v3100_v0 = vld [vmem:[%s2862_s28 + $0x30] sm:$0xff]  ;;  %v1622_v7 = vld [vmem:[%s3404_s1 + $0x138] sm:$0xff] }
  0x24   : > { %2547 = vmatprep.subr.bf16.mxu0 %v2546_v49  ;;  %v2454_v47 = vpack.c.bf16 %v1616_v44, %v1615_v43  ;;  %v1717_v8 = vld [vmem:[%s3404_s1 + $0x330] sm:$0xff]  ;;  %v1718_v9 = vld [vmem:[%s3404_s1 + $0x338] sm:$0xff]  ;;  %v3121_v10 = vld [vmem:[%s2862_s28 + $0x40] sm:$0xff] }
  0x25   : > { %2421 = vmatpush3.bf16.msra.mxu1 %v2418_v48  ;;  %v2582_v48 = vpack.c.bf16 %v1712_v46, %v1711_v45  ;;  %v3131_v16 = vld [vmem:[%s2862_s28 + $0x62] sm:$0xff]  ;;  %v2594_v17 = vpack.c.bf16 %v1718_v9, %v1717_v8  ;;  %v3153_v25 = vld [vmem:[%s2862_s28 + $0x72] sm:$0xff] }
  0x26   : > { %2423 = vmatprep.subr.bf16.mxu1 %v2422_v54  ;;  %v1623_v18 = vld [vmem:[%s3404_s1 + $0x140] sm:$0xff]  ;;  %v3156_v26 = vld [vmem:[%s2862_s28 + $0x70] sm:$0xff]  ;;  %v1626_v32 = vld [vmem:[%s3404_s1 + $0x158] sm:$0xff] }
  0x27   : > { %2549 = vmatpush3.bf16.msra.mxu0 %v2546_v49  ;;  %v1617_v49 = vld [vmem:[%s3404_s1 + $0x110] sm:$0xff]  ;;  %v1722_v34 = vld [vmem:[%s3404_s1 + $0x358] sm:$0xff]  ;;  %v1627_v38 = vld [vmem:[%s3404_s1 + $0x160] sm:$0xff] }
  0x28   : > { %2551 = vmatprep.subr.bf16.mxu0 %v2550_v55  ;;  %2027 = vmatmul.mubr.f32.vlgmr.msra.gmra.mrb[0].mxu1 %v1655_v29  ;;  %v2442_v29 = vpack.c.bf16 %v234_v24, %v233_v23  ;;  %v1720_v23 = vld [vmem:[%s3404_s1 + $0x348] sm:$0xff]  ;;  %v3149_v24 = vld [vmem:[%s2862_s28 + $0x60] sm:$0xff]  ;;  %v1625_v31 = vld [vmem:[%s3404_s1 + $0x150] sm:$0xff] }
  0x29   : > { %2425 = vmatpush3.bf16.msra.mxu1 %v2422_v54  ;;  %2029 = vmatprep.mubr.f32.mxu1 %v2939_v60  ;;  %v3077_v54 = vld [vmem:[%s2862_s28 + $0x22] sm:$0xff]  ;;  %v1721_v33 = vld [vmem:[%s3404_s1 + $0x350] sm:$0xff]  ;;  %v1630_v45 = vld [vmem:[%s3404_s1 + $0x178] sm:$0xff] }
  0x2a   : > { %2203 = vmatmul.mubr.f32.vlgmr.msra.gmra.mrb[0].mxu0 %v2939_v60  ;;  %2427 = vmatprep.subr.bf16.mxu1 %v2426_v61  ;;  %v2602_v37 = vpack.c.bf16 %v1722_v34, %v1721_v33  ;;  %v1628_v39 = vld [vmem:[%s3404_s1 + $0x168] sm:$0xff]  ;;  %v1723_v40 = vld [vmem:[%s3404_s1 + $0x360] sm:$0xff]  ;;  %v1629_v44 = vld [vmem:[%s3404_s1 + $0x170] sm:$0xff] }
  0x2b   : > { %2553 = vmatpush3.bf16.msra.mxu0 %v2550_v55  ;;  %2205 = vmatprep.mubr.f32.mxu0 %v2955_v3  ;;  %v2458_v55 = vpack.c.bf16 %v1618_v50, %v1617_v49  ;;  %v1725_v46 = vld [vmem:[%s3404_s1 + $0x370] sm:$0xff]  ;;  %v1639_v50 = vld [vmem:[%s3404_s1 + $0x180] sm:$0xff]  ;;  %v1640_v51 = vld [vmem:[%s3404_s1 + $0x188] sm:$0xff] }
  0x2c   : > { %2555 = vmatprep.subr.bf16.mxu0 %v2554_v62  ;;  %2030 = vmatmul.mubr.f32.gmra.mrb[2].mxu1 %v2955_v3  ;;  %v1735_v52 = vld [vmem:[%s3404_s1 + $0x380] sm:$0xff]  ;;  %v1641_v58 = vld [vmem:[%s3404_s1 + $0x190] sm:$0xff]  ;;  %v1644_v8 = vld [vmem:[%s3404_s1 + $0x1a8] sm:$0xff] }
  0x2d   : > { %2429 = vmatpush3.bf16.msra.mxu1 %v2426_v61  ;;  %2032 = vmatprep.mubr.f32.mxu1 %v2958_v5  ;;  %v1716_v61 = vld [vmem:[%s3404_s1 + $0x328] sm:$0xff]  ;;  %v1739_v9 = vld [vmem:[%s3404_s1 + $0x3a0] sm:$0xff] }
  0x2e   : > { %2206 = vmatmul.mubr.f32.gmra.mrb[2].mxu0 %v2958_v5  ;;  %2431 = vmatprep.subr.bf16.mxu1 %v2430_v4  ;;  %v1743_v33 = vld [vmem:[%s3404_s1 + $0x3c0] sm:$0xff]  ;;  %v1744_v34 = vld [vmem:[%s3404_s1 + $0x3c8] sm:$0xff] }
  0x2f   : > { %2557 = vmatpush3.bf16.msra.mxu0 %v2554_v62  ;;  %2208 = vmatprep.mubr.f32.mxu0 %v2977_v11  ;;  %v3093_v62 = vld [vmem:[%s2862_s28 + $0x20] sm:$0xff] }
  0x30   : > { %2559 = vmatprep.subr.bf16.mxu0 %v2558_v6  ;;  %2033 = vmatmul.mubr.f32.gmra.mrb[4].mxu1 %v2977_v11 }
  0x31   : > { %2433 = vmatpush3.bf16.msra.mxu1 %v2430_v4  ;;  %2035 = vmatprep.mubr.f32.mxu1 %v2980_v13  ;;  %v2590_v4 = vpack.c.bf16 %v1716_v61, %v1715_v59  ;;  %v1642_v59 = vld [vmem:[%s3404_s1 + $0x198] sm:$0xff]  ;;  %v1737_v61 = vld [vmem:[%s3404_s1 + $0x390] sm:$0xff] }
  0x32   : > { %2209 = vmatmul.mubr.f32.gmra.mrb[4].mxu0 %v2980_v13  ;;  %2435 = vmatprep.subr.bf16.mxu1 %v2434_v12 }
  0x33   : > { %2561 = vmatpush3.bf16.msra.mxu0 %v2558_v6  ;;  %2211 = vmatprep.mubr.f32.mxu0 %v2999_v19  ;;  %v1621_v6 = vld [vmem:[%s3404_s1 + $0x130] sm:$0xff] }
  0x34   : > { %2563 = vmatprep.subr.bf16.mxu0 %v2562_v14  ;;  %2036 = vmatmul.mubr.f32.gmra.mrb[6].mxu1 %v2999_v19  ;;  %v2466_v15 = vpack.c.bf16 %v1622_v7, %v1621_v6  ;;  %v1643_v7 = vld [vmem:[%s3404_s1 + $0x1a0] sm:$0xff] }
  0x35   : > { %2437 = vmatpush3.bf16.msra.mxu1 %v2434_v12  ;;  %2070 = vmatprep.mubr.f32.mxu1 %v215_v27  ;;  %v3125_v12 = vld [vmem:[%s2862_s28 + $0x52] sm:$0xff] }
  0x36   : > { %2212 = vmatmul.mubr.f32.gmra.mrb[6].mxu0 %v3002_v21  ;;  %2439 = vmatprep.subr.bf16.mxu1 %v2438_v20 }
  0x37   : > { %2565 = vmatpush3.bf16.msra.mxu0 %v2562_v14  ;;  %2246 = vmatprep.mubr.f32.mxu0 %v3022_v28  ;;  %v3128_v14 = vld [vmem:[%s2862_s28 + $0x50] sm:$0xff] }
  0x38   : > { %2567 = vmatprep.subr.bf16.mxu0 %v2566_v22 }
  0x39   : > { %2441 = vmatpush3.bf16.msra.mxu1 %v2438_v20  ;;  %v1624_v20 = vld [vmem:[%s3404_s1 + $0x148] sm:$0xff] }
  0x3a   : > { %2443 = vmatprep.subr.bf16.mxu1 %v2442_v29  ;;  %v2470_v27 = vpack.c.bf16 %v1624_v20, %v1623_v18  ;;  %v1646_v20 = vld [vmem:[%s3404_s1 + $0x1b8] sm:$0xff] }
  0x3b   : > { %2569 = vmatpush3.bf16.msra.mxu0 %v2566_v22  ;;  %v1719_v22 = vld [vmem:[%s3404_s1 + $0x340] sm:$0xff] }
  0x3c   : > { %2571 = vmatprep.subr.bf16.mxu0 %v2570_v30 }
  0x3d   : > { %2445 = vmatpush3.bf16.msra.mxu1 %v2442_v29  ;;  %v3159_v29 = vld [vmem:[%s2862_s28 + $0x82] sm:$0xff] }
  0x3e   : > { %2447 = vmatprep.subr.bf16.mxu1 %v2446_v35 }
  0x3f   : > { %2573 = vmatpush3.bf16.msra.mxu0 %v2570_v30  ;;  %v2598_v30 = vpack.c.bf16 %v1720_v23, %v1719_v22  ;;  %v1741_v22 = vld [vmem:[%s3404_s1 + $0x3b0] sm:$0xff]  ;;  %v1742_v23 = vld [vmem:[%s3404_s1 + $0x3b8] sm:$0xff] }
  0x40   : > { %2575 = vmatprep.subr.bf16.mxu0 %v2574_v36 }
  0x41   : > { %2449 = vmatpush3.bf16.msra.mxu1 %v2446_v35  ;;  %v474_v35 = vld [vmem:[%s2862_s28 + $0x2] sm:$0xff] }
  0x42   : > { %2451 = vmatprep.subr.bf16.mxu1 %v2450_v41 }
  0x43   : > { %2577 = vmatpush3.bf16.msra.mxu0 %v2574_v36  ;;  %v2474_v36 = vpack.c.bf16 %v1626_v32, %v1625_v31  ;;  %v1647_v31 = vld [vmem:[%s3404_s1 + $0x1c0] sm:$0xff]  ;;  %v1648_v32 = vld [vmem:[%s3404_s1 + $0x1c8] sm:$0xff] }
  0x44   : > { %2579 = vmatprep.subr.bf16.mxu0 %v2578_v42 }
  0x45   : > { %2453 = vmatpush3.bf16.msra.mxu1 %v2450_v41  ;;  %v1724_v41 = vld [vmem:[%s3404_s1 + $0x368] sm:$0xff] }
  0x46   : > { %2455 = vmatprep.subr.bf16.mxu1 %v2454_v47  ;;  %v2606_v43 = vpack.c.bf16 %v1724_v41, %v1723_v40  ;;  %v1650_v40 = vld [vmem:[%s3404_s1 + $0x1d8] sm:$0xff]  ;;  %v1745_v41 = vld [vmem:[%s3404_s1 + $0x3d0] sm:$0xff] }
  0x47   : > { %2581 = vmatpush3.bf16.msra.mxu0 %v2578_v42  ;;  %v2478_v42 = vpack.c.bf16 %v1628_v39, %v1627_v38  ;;  %v2630_v38 = vpack.c.bf16 %v1744_v34, %v1743_v33  ;;  %v1649_v39 = vld [vmem:[%s3404_s1 + $0x1d0] sm:$0xff] }
  0x48   : > { %2583 = vmatprep.subr.bf16.mxu0 %v2582_v48  ;;  %2071 = vmatmul.mubr.f32.vlgmr.msra.gmra.mrb[0].mxu1 %v3074_v53 }
  0x49   : > { %2457 = vmatpush3.bf16.msra.mxu1 %v2454_v47  ;;  %2073 = vmatprep.mubr.f32.mxu1 %v3093_v62  ;;  %v1726_v47 = vld [vmem:[%s3404_s1 + $0x378] sm:$0xff] }
  0x4a   : > { %2247 = vmatmul.mubr.f32.vlgmr.msra.gmra.mrb[0].mxu0 %v3077_v54  ;;  %2459 = vmatprep.subr.bf16.mxu1 %v2458_v55  ;;  %v2610_v49 = vpack.c.bf16 %v1726_v47, %v1725_v46  ;;  %v1652_v46 = vld [vmem:[%s3404_s1 + $0x1e8] sm:$0xff]  ;;  %v1747_v47 = vld [vmem:[%s3404_s1 + $0x3e0] sm:$0xff] }
  0x4b   : > { %2585 = vmatpush3.bf16.msra.mxu0 %v2582_v48  ;;  %2249 = vmatprep.mubr.f32.mxu0 %v3097_v63  ;;  %v2482_v48 = vpack.c.bf16 %v1630_v45, %v1629_v44  ;;  %v1651_v45 = vld [vmem:[%s3404_s1 + $0x1e0] sm:$0xff] }
  0x4c   : > { %2587 = vmatprep.subr.bf16.mxu0 %v2586_v56  ;;  %2074 = vmatmul.mubr.f32.gmra.mrb[2].mxu1 %v3100_v0 }
  0x4d   : > { %2461 = vmatpush3.bf16.msra.mxu1 %v2458_v55  ;;  %2076 = vmatprep.mubr.f32.mxu1 %v3121_v10  ;;  %v1736_v55 = vld [vmem:[%s3404_s1 + $0x388] sm:$0xff] }
  0x4e   : > { %2250 = vmatmul.mubr.f32.gmra.mrb[2].mxu0 %v3103_v2  ;;  %2463 = vmatprep.subr.bf16.mxu1 %v2462_v1  ;;  %v2614_v57 = vpack.c.bf16 %v1736_v55, %v1735_v52  ;;  %v1749_v52 = vld [vmem:[%s3404_s1 + $0x3f0] sm:$0xff] }
  0x4f   : > { %2589 = vmatpush3.bf16.msra.mxu0 %v2586_v56  ;;  %2252 = vmatprep.mubr.f32.mxu0 %v3125_v12  ;;  %v2486_v56 = vpack.c.bf16 %v1640_v51, %v1639_v50  ;;  %v1654_v51 = vld [vmem:[%s3404_s1 + $0x1f8] sm:$0xff] }
  0x50   : > { %2591 = vmatprep.subr.bf16.mxu0 %v2590_v4  ;;  %2077 = vmatmul.mubr.f32.gmra.mrb[4].mxu1 %v3128_v14 }
  0x51   : > { %2465 = vmatpush3.bf16.msra.mxu1 %v2462_v1  ;;  %2079 = vmatprep.mubr.f32.mxu1 %v3149_v24  ;;  %v1738_v1 = vld [vmem:[%s3404_s1 + $0x398] sm:$0xff] }
  0x52   : > { %2253 = vmatmul.mubr.f32.gmra.mrb[4].mxu0 %v3131_v16  ;;  %2467 = vmatprep.subr.bf16.mxu1 %v2466_v15  ;;  %v2618_v6 = vpack.c.bf16 %v1738_v1, %v1737_v61  ;;  %v1761_v61 = vld [vmem:[%s3404_s1 + $0x410] sm:$0xff]  ;;  %v1762_v1 = vld [vmem:[%s3404_s1 + $0x418] sm:$0xff] }
  0x53   : > { %2593 = vmatpush3.bf16.msra.mxu0 %v2590_v4  ;;  %2255 = vmatprep.mubr.f32.mxu0 %v3153_v25  ;;  %v2490_v4 = vpack.c.bf16 %v1642_v59, %v1641_v58  ;;  %v1760_v58 = vld [vmem:[%s3404_s1 + $0x408] sm:$0xff] }
  0x54   : > { %2595 = vmatprep.subr.bf16.mxu0 %v2594_v17  ;;  %2080 = vmatmul.mubr.f32.gmra.mrb[6].mxu1 %v3156_v26 }
  0x55   : > { %2469 = vmatpush3.bf16.msra.mxu1 %v2466_v15  ;;  %2114 = vmatprep.mubr.f32.mxu1 %v474_v35  ;;  %v1740_v15 = vld [vmem:[%s3404_s1 + $0x3a8] sm:$0xff]  ;;  %v3274_v35 = vld [vmem:[%s2862_s28 + $0x80] sm:$0xff] }
  0x56   : > { %2256 = vmatmul.mubr.f32.gmra.mrb[6].mxu0 %v3159_v29  ;;  %2471 = vmatprep.subr.bf16.mxu1 %v2470_v27  ;;  %v2622_v18 = vpack.c.bf16 %v1740_v15, %v1739_v9  ;;  %v1766_v9 = vld [vmem:[%s3404_s1 + $0x438] sm:$0xff]  ;;  %v1773_v15 = vld [vmem:[%s3404_s1 + $0x470] sm:$0xff] }
  0x57   : > { %2597 = vmatpush3.bf16.msra.mxu0 %v2594_v17  ;;  %2290 = vmatprep.mubr.f32.mxu0 %v3093_v62  ;;  %v2494_v17 = vpack.c.bf16 %v1644_v8, %v1643_v7  ;;  %v1764_v7 = vld [vmem:[%s3404_s1 + $0x428] sm:$0xff] }
  0x58   : > { %2599 = vmatprep.subr.bf16.mxu0 %v2598_v30 }
  0x59   : > { %2473 = vmatpush3.bf16.msra.mxu1 %v2470_v27 }
  0x5a   : > { %2475 = vmatprep.subr.bf16.mxu1 %v2474_v36 }
  0x5b   : > { %2601 = vmatpush3.bf16.msra.mxu0 %v2598_v30  ;;  %v2626_v30 = vpack.c.bf16 %v1742_v23, %v1741_v22 }
  0x5c   : > { %2603 = vmatprep.subr.bf16.mxu0 %v2602_v37 }
  0x5d   : > { %2477 = vmatpush3.bf16.msra.mxu1 %v2474_v36  ;;  %v2502_v36 = vpack.c.bf16 %v1648_v32, %v1647_v31 }
  0x5e   : > { %2479 = vmatprep.subr.bf16.mxu1 %v2478_v42 }
  0x5f   : > { %2605 = vmatpush3.bf16.msra.mxu0 %v2602_v37  ;;  %v1710_v37 = vld [vmem:[%s2862_s28 + $0x90] sm:$0xff] }
  0x60   : > { %2607 = vmatprep.subr.bf16.mxu0 %v2606_v43 }
  0x61   : > { %2481 = vmatpush3.bf16.msra.mxu1 %v2478_v42  ;;  %v1746_v42 = vld [vmem:[%s3404_s1 + $0x3d8] sm:$0xff] }
  0x62   : > { %2483 = vmatprep.subr.bf16.mxu1 %v2482_v48  ;;  %v2634_v44 = vpack.c.bf16 %v1746_v42, %v1745_v41 }
  0x63   : > { %2609 = vmatpush3.bf16.msra.mxu0 %v2606_v43  ;;  %v2506_v43 = vpack.c.bf16 %v1650_v40, %v1649_v39 }
  0x64   : > { %2611 = vmatprep.subr.bf16.mxu0 %v2610_v49 }
  0x65   : > { %2485 = vmatpush3.bf16.msra.mxu1 %v2482_v48  ;;  %v1748_v48 = vld [vmem:[%s3404_s1 + $0x3e8] sm:$0xff] }
  0x66   : > { %2487 = vmatprep.subr.bf16.mxu1 %v2486_v56  ;;  %v2638_v50 = vpack.c.bf16 %v1748_v48, %v1747_v47 }
  0x67   : > { %2613 = vmatpush3.bf16.msra.mxu0 %v2610_v49  ;;  %v2510_v49 = vpack.c.bf16 %v1652_v46, %v1651_v45 }
  0x68   : > { %2615 = vmatprep.subr.bf16.mxu0 %v2614_v57  ;;  %2115 = vmatmul.mubr.f32.vlgmr.msra.gmra.mrb[0].mxu1 %v3022_v28  ;;  %v1645_v28 = vld [vmem:[%s3404_s1 + $0x1b0] sm:$0xff] }
  0x69   : > { %2489 = vmatpush3.bf16.msra.mxu1 %v2486_v56  ;;  %2117 = vmatprep.mubr.f32.mxu1 %v3077_v54  ;;  %v2498_v27 = vpack.c.bf16 %v1646_v20, %v1645_v28 }
  0x6a   : > { %2291 = vmatmul.mubr.f32.vlgmr.msra.gmra.mrb[0].mxu0 %v3100_v0  ;;  %2491 = vmatprep.subr.bf16.mxu1 %v2490_v4 }
  0x6b   : > { %2617 = vmatpush3.bf16.msra.mxu0 %v2614_v57  ;;  %2293 = vmatprep.mubr.f32.mxu0 %v3121_v10  ;;  %v1759_v57 = vld [vmem:[%s3404_s1 + $0x400] sm:$0xff] }
  0x6c   : > { %2619 = vmatprep.subr.bf16.mxu0 %v2618_v6  ;;  %2118 = vmatmul.mubr.f32.gmra.mrb[2].mxu1 %v3097_v63  ;;  %v2646_v59 = vpack.c.bf16 %v1760_v58, %v1759_v57 }
  0x6d   : > { %2493 = vmatpush3.bf16.msra.mxu1 %v2490_v4  ;;  %2120 = vmatprep.mubr.f32.mxu1 %v3103_v2  ;;  %v2650_v4 = vpack.c.bf16 %v1762_v1, %v1761_v61 }
  0x6e   : > { %2294 = vmatmul.mubr.f32.gmra.mrb[2].mxu0 %v3128_v14  ;;  %2495 = vmatprep.subr.bf16.mxu1 %v2494_v17 }
  0x6f   : > { %2621 = vmatpush3.bf16.msra.mxu0 %v2618_v6  ;;  %2296 = vmatprep.mubr.f32.mxu0 %v3149_v24  ;;  %v1763_v6 = vld [vmem:[%s3404_s1 + $0x420] sm:$0xff] }
  0x70   : > { %2623 = vmatprep.subr.bf16.mxu0 %v2622_v18  ;;  %2121 = vmatmul.mubr.f32.gmra.mrb[4].mxu1 %v3125_v12  ;;  %v2654_v8 = vpack.c.bf16 %v1764_v7, %v1763_v6 }
  0x71   : > { %2497 = vmatpush3.bf16.msra.mxu1 %v2494_v17  ;;  %2123 = vmatprep.mubr.f32.mxu1 %v3131_v16  ;;  %v1774_v17 = vld [vmem:[%s3404_s1 + $0x478] sm:$0xff] }
  0x72   : > { %2297 = vmatmul.mubr.f32.gmra.mrb[4].mxu0 %v3156_v26  ;;  %2499 = vmatprep.subr.bf16.mxu1 %v2498_v27 }
  0x73   : > { %2625 = vmatpush3.bf16.msra.mxu0 %v2622_v18  ;;  %2299 = vmatprep.mubr.f32.mxu0 %v3274_v35 }
  0x74   : > { %2627 = vmatprep.subr.bf16.mxu0 %v2626_v30  ;;  %2124 = vmatmul.mubr.f32.gmra.mrb[6].mxu1 %v3153_v25 }
  0x75   : > { %2501 = vmatpush3.bf16.msra.mxu1 %v2498_v27  ;;  %2158 = vmatprep.mubr.f32.mxu1 %v3074_v53  ;;  %v1653_v53 = vld [vmem:[%s3404_s1 + $0x1f0] sm:$0xff] }
  0x76   : > { %2300 = vmatmul.mubr.f32.gmra.mrb[6].mxu0 %v1710_v37  ;;  %2503 = vmatprep.subr.bf16.mxu1 %v2502_v36  ;;  %v2514_v55 = vpack.c.bf16 %v1654_v51, %v1653_v53 }
  0x77   : > { %2629 = vmatpush3.bf16.msra.mxu0 %v2626_v30  ;;  %2334 = vmatprep.mubr.f32.mxu0 %v2939_v60  ;;  %v1750_v60 = vld [vmem:[%s3404_s1 + $0x3f8] sm:$0xff] }
  0x78   : > { %2631 = vmatprep.subr.bf16.mxu0 %v2630_v38  ;;  %v2642_v56 = vpack.c.bf16 %v1750_v60, %v1749_v52 }
  0x79   : > { %2505 = vmatpush3.bf16.msra.mxu1 %v2502_v36 }
  0x7a   : > { %2507 = vmatprep.subr.bf16.mxu1 %v2506_v43 }
  0x7b   : > { %2633 = vmatpush3.bf16.msra.mxu0 %v2630_v38 }
  0x7c   : > { %2635 = vmatprep.subr.bf16.mxu0 %v2634_v44 }
  0x7d   : > { %2509 = vmatpush3.bf16.msra.mxu1 %v2506_v43 }
  0x7e   : > { %2511 = vmatprep.subr.bf16.mxu1 %v2510_v49 }
  0x7f   : > { %2637 = vmatpush3.bf16.msra.mxu0 %v2634_v44 }
  0x80   : > { %2639 = vmatprep.subr.bf16.mxu0 %v2638_v50 }
  0x81   : > { %2513 = vmatpush3.bf16.msra.mxu1 %v2510_v49 }
  0x82   : > { %2515 = vmatprep.subr.bf16.mxu1 %v2514_v55 }
  0x83   : > { %2641 = vmatpush3.bf16.msra.mxu0 %v2638_v50 }
  0x84   : > { %2643 = vmatprep.subr.bf16.mxu0 %v2642_v56 }
  0x85   : > { %2517 = vmatpush3.bf16.msra.mxu1 %v2514_v55 }
  0x86   : > { %2678 = vmatprep.subr.bf16.mxu1 %v2646_v59 }
  0x87   : > { %2645 = vmatpush3.bf16.msra.mxu0 %v2642_v56 }
  0x88   : > { %2647 = vmatprep.subr.bf16.mxu0 %v2646_v59  ;;  %2159 = vmatmul.mubr.f32.vlgmr.msra.gmra.mrb[0].mxu1 %v3093_v62  ;;  %v1765_v62 = vld [vmem:[%s3404_s1 + $0x430] sm:$0xff] }
  0x89   : > { %2686 = vmatpush3.bf16.msra.mxu1 %v2646_v59  ;;  %2161 = vmatprep.mubr.f32.mxu1 %v3100_v0  ;;  %v1768_v0 = vld [vmem:[%s3404_s1 + $0x448] sm:$0xff] }
  0x8a   : > { %2335 = vmatmul.mubr.f32.vlgmr.msra.gmra.mrb[0].mxu0 %v2955_v3  ;;  %2679 = vmatprep.subr.bf16.mxu1 %v2650_v4  ;;  %v2658_v3 = vpack.c.bf16 %v1766_v9, %v1765_v62 }
  0x8b   : > { %2649 = vmatpush3.bf16.msra.mxu0 %v2646_v59  ;;  %2337 = vmatprep.mubr.f32.mxu0 %v2958_v5  ;;  %v1767_v5 = vld [vmem:[%s3404_s1 + $0x440] sm:$0xff] }
  0x8c   : > { %2651 = vmatprep.subr.bf16.mxu0 %v2650_v4  ;;  %2162 = vmatmul.mubr.f32.gmra.mrb[2].mxu1 %v3121_v10  ;;  %v1769_v10 = vld [vmem:[%s3404_s1 + $0x450] sm:$0xff] }
  0x8d   : > { %2687 = vmatpush3.bf16.msra.mxu1 %v2650_v4  ;;  %2164 = vmatprep.mubr.f32.mxu1 %v3128_v14  ;;  %v1770_v14 = vld [vmem:[%s3404_s1 + $0x458] sm:$0xff] }
  0x8e   : > { %2338 = vmatmul.mubr.f32.gmra.mrb[2].mxu0 %v2977_v11  ;;  %2680 = vmatprep.subr.bf16.mxu1 %v2654_v8  ;;  %v1734_v11 = vld [vmem:[%s2862_s28 + $0x91] sm:$0xff] }
  0x8f   : > { %2653 = vmatpush3.bf16.msra.mxu0 %v2650_v4  ;;  %2340 = vmatprep.mubr.f32.mxu0 %v2980_v13  ;;  %v2662_v13 = vpack.c.bf16 %v1768_v0, %v1767_v5 }
  0x90   : > { %2655 = vmatprep.subr.bf16.mxu0 %v2654_v8  ;;  %2165 = vmatmul.mubr.f32.gmra.mrb[4].mxu1 %v3149_v24  ;;  %v1772_v24 = vld [vmem:[%s3404_s1 + $0x468] sm:$0xff] }
  0x91   : > { %2688 = vmatpush3.bf16.msra.mxu1 %v2654_v8  ;;  %2167 = vmatprep.mubr.f32.mxu1 %v3156_v26 }
  0x92   : > { %2341 = vmatmul.mubr.f32.gmra.mrb[4].mxu0 %v2999_v19  ;;  %2681 = vmatprep.subr.bf16.mxu1 %v2658_v3  ;;  %v2666_v19 = vpack.c.bf16 %v1770_v14, %v1769_v10 }
  0x93   : > { %2657 = vmatpush3.bf16.msra.mxu0 %v2654_v8  ;;  %2343 = vmatprep.mubr.f32.mxu0 %v3002_v21  ;;  %v1771_v21 = vld [vmem:[%s3404_s1 + $0x460] sm:$0xff] }
  0x94   : > { %2659 = vmatprep.subr.bf16.mxu0 %v2658_v3  ;;  %2168 = vmatmul.mubr.f32.gmra.mrb[6].mxu1 %v3274_v35  ;;  %v2670_v26 = vpack.c.bf16 %v1772_v24, %v1771_v21 }
  0x95   : > { %2689 = vmatpush3.bf16.msra.mxu1 %v2658_v3  ;;  %2384 = vmatprep.mubr.f32.mxu1 %v3131_v16  ;;  %v1758_v16 = vld [vmem:[%s2862_s28 + $0x92] sm:$0xff]  ;;  %s1777_s28 = sshll.u32 %s3409_s16, 6 }
  0x96   : > { %2344 = vmatmul.mubr.f32.gmra.mrb[6].mxu0 %v1734_v11  ;;  %2682 = vmatprep.subr.bf16.mxu1 %v2662_v13  ;;  %s208_s8 = scalar_lea.vmem %s3405_s2, %s1777_s28 }
  0x97   : > { %2661 = vmatpush3.bf16.msra.mxu0 %v2658_v3  ;;  %2378 = vmatprep.mubr.f32.mxu0 %v3077_v54  ;;  %v2674_v54 = vpack.c.bf16 %v1774_v17, %v1773_v15 }
  0x98   : > { %2663 = vmatprep.subr.bf16.mxu0 %v2662_v13 }
  0x99   : > { %2690 = vmatpush3.bf16.msra.mxu1 %v2662_v13 }
  0x9a   : > { %2683 = vmatprep.subr.bf16.mxu1 %v2666_v19 }
  0x9b   : > { %2665 = vmatpush3.bf16.msra.mxu0 %v2662_v13 }
  0x9c   : > { %2667 = vmatprep.subr.bf16.mxu0 %v2666_v19 }
  0x9d   : > { %2691 = vmatpush3.bf16.msra.mxu1 %v2666_v19 }
  0x9e   : > { %2684 = vmatprep.subr.bf16.mxu1 %v2670_v26 }
  0x9f   : > { %2669 = vmatpush3.bf16.msra.mxu0 %v2666_v19 }
  0xa0   : > { %2671 = vmatprep.subr.bf16.mxu0 %v2670_v26 }
  0xa1   : > { %2692 = vmatpush3.bf16.msra.mxu1 %v2670_v26 }
  0xa2   : > { %2685 = vmatprep.subr.bf16.mxu1 %v2674_v54 }
  0xa3   : > { %2673 = vmatpush3.bf16.msra.mxu0 %v2670_v26 }
  0xa4   : > { %2675 = vmatprep.subr.bf16.mxu0 %v2674_v54 }
  0xa5   : > { %2693 = vmatpush3.bf16.msra.mxu1 %v2674_v54 }
  0xa7   : > { %2677 = vmatpush3.bf16.msra.mxu0 %v2674_v54 }
  0xa8   : > { %2385 = vmatmul.mubr.f32.vlgmr.msra.gmra.mrb[8].mxu1 %v3153_v25 }
  0xa9   : > { %2387 = vmatprep.mubr.f32.mxu1 %v3159_v29 }
  0xaa   : > { %2379 = vmatmul.mubr.f32.vlgmr.msra.gmra.mrb[0].mxu0 %v3097_v63 }
  0xab   : > { %2381 = vmatprep.mubr.f32.mxu0 %v3103_v2 }
  0xac   : > { %2388 = vmatmul.mubr.f32.gmra.mrb[10].mxu1 %v1758_v16 }
  0xae   : > { %2382 = vmatmul.mubr.f32.gmra.mrb[2].mxu0 %v3125_v12 }
 0x15b   : > { %v2160_v18 = vpop.f32.mrb[0].mxu1 }
 0x15c   : > { %v704_v28 = vpop.f32.mrb[1].mxu1 }
 0x15f   : > { %v2163_v20 = vpop.f32.mrb[2].mxu1 }
 0x160   : > { %v714_v22 = vpop.f32.mrb[3].mxu1 }
 0x163   : > { %v2166_v23 = vpop.f32.mrb[4].mxu1 }
 0x164   : > { %v724_v30 = vpop.f32.mrb[5].mxu1 }
 0x165   : > { %v2342_v27 = vpop.f32.mrb[4].mxu0 }
 0x166   : > { %v2698_v31 = vadd.f32 %v2342_v27, %v2166_v23  ;;  %v1277_v25 = vpop.f32.mrb[5].mxu0 }
 0x167   : > { %v2700_v32 = vadd.f32 %v1277_v25, %v724_v30  ;;  %v2169_v63 = vpop.f32.mrb[6].mxu1 }
 0x168   : > { %v734_v29 = vpop.f32.mrb[7].mxu1 }
 0x169   : > { %v2345_v33 = vpop.f32.mrb[6].mxu0 }
 0x16a   : > { %v2702_v34 = vadd.f32 %v2345_v33, %v2169_v63  ;;  %v1287_v35 = vpop.f32.mrb[7].mxu0 }
 0x16b   : > { %v2704_v2 = vadd.f32 %v1287_v35, %v734_v29 }
 0x17b   : > { %v2386_v12 = vpop.f32.mrb[8].mxu1 }
 0x17c   : > { %v2699_v37 = vadd.f32 %v2698_v31, %v2386_v12  ;;  %v1415_v38 = vpop.f32.mrb[9].mxu1 }
 0x17d   : > { %v2380_v36 = vpop.f32.mrb[0].mxu0  ;;  %v2701_v41 = vadd.f32 %v2700_v32, %v1415_v38 }
 0x17e   : > { %v2694_v39 = vadd.f32 %v2380_v36, %v2160_v18  ;;  %v1395_v40 = vpop.f32.mrb[1].mxu0  ;;  %1447 = vst [vmem:[%s208_s8 + $0x28] sm:$0xff] %v2699_v37  ;;  %v1469_v6 = vmul.f32 %v2699_v37, %v2699_v37 }
 0x17f   : > { %v2695_v42 = vadd.f32 %v1395_v40, %v704_v28  ;;  %1446 = vst [vmem:[%s208_s8 + $0x20] sm:$0xff] %v2701_v41  ;;  %v2389_v44 = vpop.f32.mrb[10].mxu1  ;;  %v1468_v61 = vmul.f32 %v2701_v41, %v2701_v41 }
 0x180   : > { %1443 = vst [vmem:[%s208_s8 + $0x8] sm:$0xff] %v2694_v39  ;;  %v1465_v43 = vmul.f32 %v2694_v39, %v2694_v39  ;;  %v2703_v48 = vadd.f32 %v2702_v34, %v2389_v44  ;;  %v1425_v49 = vpop.f32.mrb[11].mxu1 }
 0x181   : > { %1442 = vst [vmem:[%s208_s8] sm:$0xff] %v2695_v42  ;;  %v1450_v45 = vadd.f32 %v2695_v42, %v2694_v39  ;;  %v1464_v46 = vmul.f32 %v2695_v42, %v2695_v42  ;;  %v2383_v47 = vpop.f32.mrb[2].mxu0  ;;  %v2705_v51 = vadd.f32 %v2704_v2, %v1425_v49 }
 0x182   : > { %v2696_v50 = vadd.f32 %v2383_v47, %v2163_v20  ;;  %v1405_v53 = vpop.f32.mrb[3].mxu0  ;;  %1449 = vst [vmem:[%s208_s8 + $0x38] sm:$0xff] %v2703_v48  ;;  %v1471_v5 = vmul.f32 %v2703_v48, %v2703_v48 }
 0x183   : > { %v1472_v52 = vadd.f32 %v1465_v43, %v1464_v46  ;;  %v2697_v60 = vadd.f32 %v1405_v53, %v714_v22  ;;  %1448 = vst [vmem:[%s208_s8 + $0x30] sm:$0xff] %v2705_v51  ;;  %v1470_v9 = vmul.f32 %v2705_v51, %v2705_v51 }
 0x184   : > { %1445 = vst [vmem:[%s208_s8 + $0x18] sm:$0xff] %v2696_v50  ;;  %v1467_v57 = vmul.f32 %v2696_v50, %v2696_v50 }
 0x185   : > { %1444 = vst [vmem:[%s208_s8 + $0x10] sm:$0xff] %v2697_v60  ;;  %v1451_v55 = vadd.f32 %v2697_v60, %v1450_v45  ;;  %v1466_v56 = vmul.f32 %v2697_v60, %v2697_v60 }
 0x187   : > { %v1452_v58 = vadd.f32 %v2696_v50, %v1451_v55  ;;  %v1473_v59 = vadd.f32 %v1472_v52, %v1466_v56 }
 0x189   : > { %v1474_v1 = vadd.f32 %v1473_v59, %v1467_v57  ;;  %v1453_v4 = vadd.f32 %v2701_v41, %v1452_v58 }
 0x18b   : > { %v1454_v7 = vadd.f32 %v2699_v37, %v1453_v4  ;;  %v1475_v8 = vadd.f32 %v1474_v1, %v1468_v61 }
 0x18d   : > { %v1455_v62 = vadd.f32 %v2705_v51, %v1454_v7  ;;  %v1476_v3 = vadd.f32 %v1475_v8, %v1469_v6 }
 0x18f   : > { %v1456_v0 = vadd.f32 %v2703_v48, %v1455_v62  ;;  %v1477_v11 = vadd.f32 %v1476_v3, %v1470_v9 }
 0x191   : > { %v1457_v13 = vrot.slane %v1456_v0, 4  ;;  %v1478_v10 = vadd.f32 %v1477_v11, %v1471_v5 }
 0x193   : > { %v1458_v14 = vadd.f32 %v1457_v13, %v1456_v0  ;;  %v1479_v19 = vrot.slane %v1478_v10, 4 }
 0x195   : > { %v1459_v21 = vrot.slane %v1458_v14, 2  ;;  %v1480_v24 = vadd.f32 %v1479_v19, %v1478_v10 }
 0x197   : > { %v1460_v26 = vadd.f32 %v1459_v21, %v1458_v14  ;;  %v1481_v15 = vrot.slane %v1480_v24, 2 }
 0x199   : > { %v1461_v17 = vrot.slane %v1460_v26, 1  ;;  %v1482_v54 = vadd.f32 %v1481_v15, %v1480_v24 }
 0x19b   : > { %v1462_v16 = vadd.f32 %v1461_v17, %v1460_v26  ;;  %v1483_v18 = vrot.slane %v1482_v54, 1 }
 0x19d   : > { %1463 = vst [vmem:[%s211_s11] sm:$0x1] %v1462_v16  ;;  %v1484_v28 = vadd.f32 %v1483_v18, %v1482_v54 }
 0x19f   : > { %1485 = vst [vmem:[%s214_s14] sm:$0x1] %v1484_v28 }
 0x1a0 PF: > { %s15_s15 = sadd.s32 1, %s2773_s15  }
 0x1a1   : > { %p12_p4 = scmp.ge.s32.totalorder %s15_s15, 4  }
 0x1a3   :  { %14 = sbr.rel (!%p12_p4) target bundleno = 1 (0x1), region = 92 }

// kernel: building_block_forward.4
= control target key start
LH: loop header
LB: loop body
LE: loop exit
PB: predicated region body
PF: predicated region fallthrough
CT: control target
= control target key end

     0   :  { %s2971_s24 = smov 0   ;;  %s3590_s0 = inlined_call_operand.vmem [shape: f32[2,9,9,128], index: 0, kind: input, shape index: {}]   ;;  %s3591_s1 = inlined_call_operand.vmem [shape: f32[2,9,9,128], index: 1, kind: input, shape index: {}]   ;;  %s3592_s2 = inlined_call_operand.vmem [shape: f32[2,9,9,128], index: 2, kind: input, shape index: {}]   ;;  %s3593_s3 = inlined_call_operand.vmem [shape: f32[2,9,9,128], index: 3, kind: input, shape index: {}]   ;;  %s3594_s4 = inlined_call_operand.vmem [shape: f32[9,128,128], index: 4, kind: input, shape index: {}]   ;;  %s3595_s5 = inlined_call_operand.vmem [shape: f32[2,8,8,128], index: 5, kind: output, shape index: {0}]   ;;  %s3596_s6 = inlined_call_operand.vmem [shape: f32[2,1,128], index: 6, kind: output, shape index: {1}]   ;;  %s3597_s7 = inlined_call_operand.vmem [shape: f32[2,1,128], index: 7, kind: output, shape index: {2}]  }
   0x1 LB: > { %s1768_s25 = sadd.s32 4294967295, %s2929_s24   ;;  %p1772_p0 = scmp.ge.s32.totalorder %s2929_s24, 1  ;;  %s2929_s24 = sphi %s2971_s24, %s18_s24  }
   0x2   : > { %p272_p1 = scmp.lt.s32.totalorder %s2929_s24, 3 }
   0x4   : > { %p273_p2 = pnand %p1772_p0, %p272_p1 }
   0x5   : > { %v1779_v0 = vld [vmem:[%s3594_s4 + $0x80] sm:$0xff] (!%p273_p2)  ;;  %v1780_v1 = vld [vmem:[%s3594_s4 + $0x88] sm:$0xff] (!%p273_p2)  ;;  %p325_p3 = scmp.lt.s32.totalorder (!%p273_p2), %s1768_s25, 1  ;;  %v1781_v5 = vld [vmem:[%s3594_s4 + $0x90] sm:$0xff] (!%p273_p2) }
   0x6   : > { %276 = sbr.rel (%p273_p2) target bundleno = 415 (0x19f), region = 40  ;;  %v1827_v2 = vld [vmem:[%s3594_s4 + $0x200] sm:$0xff] (!%p273_p2)  ;;  %v2546_v3 = vpack.c.bf16 (!%p273_p2), %v1780_v1, %v1779_v0  ;;  %v1828_v4 = vld [vmem:[%s3594_s4 + $0x208] sm:$0xff] (!%p273_p2)  ;;  %v1782_v6 = vld [vmem:[%s3594_s4 + $0x98] sm:$0xff] (!%p273_p2) }
   0x7   : > { %v2674_v7 = vpack.c.bf16 (!%p273_p2), %v1828_v4, %v1827_v2  ;;  %v2550_v8 = vpack.c.bf16 (!%p273_p2), %v1782_v6, %v1781_v5  ;;  %v1829_v9 = vld [vmem:[%s3594_s4 + $0x210] sm:$0xff] (!%p273_p2)  ;;  %v1830_v10 = vld [vmem:[%s3594_s4 + $0x218] sm:$0xff] (!%p273_p2)  ;;  %v1783_v11 = vld [vmem:[%s3594_s4 + $0xa0] sm:$0xff] (!%p273_p2) }
   0x8   : > { %2547 = vmatprep.subr.bf16.mxu1 (!%p273_p2), %v2546_v3  ;;  %v2678_v12 = vpack.c.bf16 (!%p273_p2), %v1830_v10, %v1829_v9  ;;  %v1784_v13 = vld [vmem:[%s3594_s4 + $0xa8] sm:$0xff] (!%p273_p2)  ;;  %v1831_v14 = vld [vmem:[%s3594_s4 + $0x220] sm:$0xff] (!%p273_p2)  ;;  %v1785_v18 = vld [vmem:[%s3594_s4 + $0xb0] sm:$0xff] (!%p273_p2) }
   0x9   : > { %v1832_v15 = vld [vmem:[%s3594_s4 + $0x228] sm:$0xff] (!%p273_p2)  ;;  %2675 = vmatprep.subr.bf16.mxu0 (!%p273_p2), %v2674_v7  ;;  %2549 = vmatpush3.bf16.msra.mxu1 (!%p273_p2), %v2546_v3  ;;  %v2554_v16 = vpack.c.bf16 (!%p273_p2), %v1784_v13, %v1783_v11  ;;  %v1786_v19 = vld [vmem:[%s3594_s4 + $0xb8] sm:$0xff] (!%p273_p2)  ;;  %v1833_v20 = vld [vmem:[%s3594_s4 + $0x230] sm:$0xff] (!%p273_p2) }
   0xa   : > { %2677 = vmatpush3.bf16.msra.mxu0 (!%p273_p2), %v2674_v7  ;;  %2551 = vmatprep.subr.bf16.mxu1 (!%p273_p2), %v2550_v8  ;;  %v2682_v17 = vpack.c.bf16 (!%p273_p2), %v1832_v15, %v1831_v14  ;;  %v1834_v21 = vld [vmem:[%s3594_s4 + $0x238] sm:$0xff] (!%p273_p2)  ;;  %v2558_v22 = vpack.c.bf16 (!%p273_p2), %v1786_v19, %v1785_v18  ;;  %v1787_v24 = vld [vmem:[%s3594_s4 + $0xc0] sm:$0xff] (!%p273_p2)  ;;  %v1788_v25 = vld [vmem:[%s3594_s4 + $0xc8] sm:$0xff] (!%p273_p2) }
   0xb   : > { %2679 = vmatprep.subr.bf16.mxu0 (!%p273_p2), %v2678_v12  ;;  %v2686_v23 = vpack.c.bf16 (!%p273_p2), %v1834_v21, %v1833_v20  ;;  %v1835_v27 = vld [vmem:[%s3594_s4 + $0x240] sm:$0xff] (!%p273_p2)  ;;  %v1836_v28 = vld [vmem:[%s3594_s4 + $0x248] sm:$0xff] (!%p273_p2)  ;;  %v2562_v30 = vpack.c.bf16 (!%p273_p2), %v1788_v25, %v1787_v24  ;;  %v1789_v32 = vld [vmem:[%s3594_s4 + $0xd0] sm:$0xff] (!%p273_p2) }
   0xc   : > { %v2690_v31 = vpack.c.bf16 (!%p273_p2), %v1836_v28, %v1835_v27  ;;  %v1790_v33 = vld [vmem:[%s3594_s4 + $0xd8] sm:$0xff] (!%p273_p2)  ;;  %v1837_v34 = vld [vmem:[%s3594_s4 + $0x250] sm:$0xff] (!%p273_p2)  ;;  %v1791_v38 = vld [vmem:[%s3594_s4 + $0xe0] sm:$0xff] (!%p273_p2) }
   0xd   : > { %s3599_s25 = smov (!%p325_p3, %s1768_s25), 1  ;;  %2553 = vmatpush3.bf16.msra.mxu1 %v2550_v8  ;;  %v1838_v35 = vld [vmem:[%s3594_s4 + $0x258] sm:$0xff]  ;;  %v2566_v36 = vpack.c.bf16 %v1790_v33, %v1789_v32  ;;  %v1792_v39 = vld [vmem:[%s3594_s4 + $0xe8] sm:$0xff]  ;;  %v1839_v40 = vld [vmem:[%s3594_s4 + $0x260] sm:$0xff] }
   0xe   : > { %s3018_s29 = smul.u32 144, %s3599_s25  ;;  %2681 = vmatpush3.bf16.msra.mxu0 %v2678_v12  ;;  %2555 = vmatprep.subr.bf16.mxu1 %v2554_v16  ;;  %v2694_v37 = vpack.c.bf16 %v1838_v35, %v1837_v34  ;;  %v1840_v41 = vld [vmem:[%s3594_s4 + $0x268] sm:$0xff]  ;;  %v2570_v42 = vpack.c.bf16 %v1792_v39, %v1791_v38  ;;  %v1793_v44 = vld [vmem:[%s3594_s4 + $0xf0] sm:$0xff]  ;;  %v1794_v45 = vld [vmem:[%s3594_s4 + $0xf8] sm:$0xff]  ;;  %s355_s15 = scalar_lea.vmem %s3597_s7, %s3599_s25 }
   0xf   : > { %2683 = vmatprep.subr.bf16.mxu0 %v2682_v17  ;;  %v2698_v43 = vpack.c.bf16 %v1840_v41, %v1839_v40  ;;  %v1841_v46 = vld [vmem:[%s3594_s4 + $0x270] sm:$0xff]  ;;  %v1842_v47 = vld [vmem:[%s3594_s4 + $0x278] sm:$0xff]  ;;  %v2574_v48 = vpack.c.bf16 %v1794_v45, %v1793_v44  ;;  %v364_v50 = vld [vmem:[%s3594_s4] sm:$0xff] }
  0x10   : > { %s3036_s17 = scalar_lea.vmem %s3591_s1, %s3018_s29  ;;  %s3042_s20 = scalar_lea.vmem %s3593_s3, %s3018_s29  ;;  %v2702_v49 = vpack.c.bf16 %v1842_v47, %v1841_v46  ;;  %v365_v51 = vld [vmem:[%s3594_s4 + $0x8] sm:$0xff]  ;;  %v1843_v52 = vld [vmem:[%s3594_s4 + $0x280] sm:$0xff]  ;;  %v366_v56 = vld [vmem:[%s3594_s4 + $0x10] sm:$0xff] }
  0x11   : > { %v380_v26 = vld [vmem:[%s3036_s17] sm:$0xff]  ;;  %2557 = vmatpush3.bf16.msra.mxu1 %v2554_v16  ;;  %v1844_v53 = vld [vmem:[%s3594_s4 + $0x288] sm:$0xff]  ;;  %v2578_v54 = vpack.c.bf16 %v365_v51, %v364_v50  ;;  %v367_v57 = vld [vmem:[%s3594_s4 + $0x18] sm:$0xff]  ;;  %s3186_s23 = scalar_lea.vmem %s3590_s0, %s3018_s29  ;;  %s3197_s28 = scalar_lea.vmem %s3592_s2, %s3018_s29 }
  0x12   : > { %2182 = vmatprep.mubr.f32.mxu1 %v380_v26  ;;  %v891_v29 = vld [vmem:[%s3042_s20] sm:$0xff]  ;;  %2685 = vmatpush3.bf16.msra.mxu0 %v2682_v17  ;;  %v2706_v55 = vpack.c.bf16 %v1844_v53, %v1843_v52  ;;  %v1845_v58 = vld [vmem:[%s3594_s4 + $0x290] sm:$0xff]  ;;  %v1846_v59 = vld [vmem:[%s3594_s4 + $0x298] sm:$0xff]  ;;  %v2582_v62 = vpack.c.bf16 %v367_v57, %v366_v56  ;;  %s352_s29 = scalar_lea.vmem %s3596_s6, %s3599_s25 }
  0x13   : > { %2358 = vmatprep.mubr.f32.mxu0 %v891_v29  ;;  %2559 = vmatprep.subr.bf16.mxu1 %v2558_v22  ;;  %v3119_v60 = vld [vmem:[%s3036_s17 + $0x10] sm:$0xff]  ;;  %v2710_v63 = vpack.c.bf16 %v1846_v59, %v1845_v58  ;;  %v368_v0 = vld [vmem:[%s3594_s4 + $0x20] sm:$0xff]  ;;  %v369_v1 = vld [vmem:[%s3594_s4 + $0x28] sm:$0xff] }
  0x14   : > { %2687 = vmatprep.subr.bf16.mxu0 %v2686_v23  ;;  %v892_v61 = vld [vmem:[%s3042_s20 + $0x10] sm:$0xff]  ;;  %v1847_v2 = vld [vmem:[%s3594_s4 + $0x2a0] sm:$0xff]  ;;  %v1848_v3 = vld [vmem:[%s3594_s4 + $0x2a8] sm:$0xff]  ;;  %v2586_v7 = vpack.c.bf16 %v369_v1, %v368_v0 }
  0x15   : > { %2561 = vmatpush3.bf16.msra.mxu1 %v2558_v22  ;;  %v3136_v4 = vld [vmem:[%s3036_s17 + $0x20] sm:$0xff]  ;;  %v3140_v6 = vld [vmem:[%s3036_s17 + $0x30] sm:$0xff]  ;;  %v2714_v9 = vpack.c.bf16 %v1848_v3, %v1847_v2  ;;  %v371_v11 = vld [vmem:[%s3594_s4 + $0x38] sm:$0xff] }
  0x16   : > { %2689 = vmatpush3.bf16.msra.mxu0 %v2686_v23  ;;  %2563 = vmatprep.subr.bf16.mxu1 %v2562_v30  ;;  %v893_v5 = vld [vmem:[%s3042_s20 + $0x20] sm:$0xff]  ;;  %v894_v8 = vld [vmem:[%s3042_s20 + $0x30] sm:$0xff]  ;;  %v1850_v13 = vld [vmem:[%s3594_s4 + $0x2b8] sm:$0xff] }
  0x17   : > { %2691 = vmatprep.subr.bf16.mxu0 %v2690_v31  ;;  %v370_v10 = vld [vmem:[%s3594_s4 + $0x30] sm:$0xff]  ;;  %v3158_v14 = vld [vmem:[%s3036_s17 + $0x40] sm:$0xff]  ;;  %v373_v21 = vld [vmem:[%s3594_s4 + $0x48] sm:$0xff] }
  0x18   : > { %v1849_v12 = vld [vmem:[%s3594_s4 + $0x2b0] sm:$0xff]  ;;  %v895_v15 = vld [vmem:[%s3042_s20 + $0x40] sm:$0xff]  ;;  %v2590_v17 = vpack.c.bf16 %v371_v11, %v370_v10  ;;  %v1852_v23 = vld [vmem:[%s3594_s4 + $0x2c8] sm:$0xff] }
  0x19   : > { %2565 = vmatpush3.bf16.msra.mxu1 %v2562_v30  ;;  %v3162_v16 = vld [vmem:[%s3036_s17 + $0x50] sm:$0xff]  ;;  %v2718_v19 = vpack.c.bf16 %v1850_v13, %v1849_v12  ;;  %v372_v20 = vld [vmem:[%s3594_s4 + $0x40] sm:$0xff]  ;;  %v1854_v33 = vld [vmem:[%s3594_s4 + $0x2d8] sm:$0xff] }
  0x1a   : > { %2693 = vmatpush3.bf16.msra.mxu0 %v2690_v31  ;;  %2567 = vmatprep.subr.bf16.mxu1 %v2566_v36  ;;  %v896_v18 = vld [vmem:[%s3042_s20 + $0x50] sm:$0xff]  ;;  %v1851_v22 = vld [vmem:[%s3594_s4 + $0x2c0] sm:$0xff]  ;;  %v2594_v27 = vpack.c.bf16 %v373_v21, %v372_v20  ;;  %v375_v31 = vld [vmem:[%s3594_s4 + $0x58] sm:$0xff] }
  0x1b   : > { %2695 = vmatprep.subr.bf16.mxu0 %v2694_v37  ;;  %v3180_v24 = vld [vmem:[%s3036_s17 + $0x60] sm:$0xff]  ;;  %v3190_v26 = vld [vmem:[%s3036_s17 + $0x70] sm:$0xff]  ;;  %v2722_v29 = vpack.c.bf16 %v1852_v23, %v1851_v22  ;;  %v377_v39 = vld [vmem:[%s3594_s4 + $0x68] sm:$0xff] }
  0x1c   : > { %v897_v25 = vld [vmem:[%s3042_s20 + $0x60] sm:$0xff]  ;;  %v898_v28 = vld [vmem:[%s3042_s20 + $0x70] sm:$0xff]  ;;  %v1856_v41 = vld [vmem:[%s3594_s4 + $0x2e8] sm:$0xff] }
  0x1d   : > { %2569 = vmatpush3.bf16.msra.mxu1 %v2566_v36  ;;  %v374_v30 = vld [vmem:[%s3594_s4 + $0x50] sm:$0xff]  ;;  %v356_v34 = vld [vmem:[%s3186_s23] sm:$0xff]  ;;  %v379_v45 = vld [vmem:[%s3594_s4 + $0x78] sm:$0xff] }
  0x1e   : > { %2697 = vmatpush3.bf16.msra.mxu0 %v2694_v37  ;;  %2571 = vmatprep.subr.bf16.mxu1 %v2570_v42  ;;  %v1853_v32 = vld [vmem:[%s3594_s4 + $0x2d0] sm:$0xff]  ;;  %v1029_v35 = vld [vmem:[%s3197_s28 + $0x1] sm:$0xff]  ;;  %v2598_v36 = vpack.c.bf16 %v375_v31, %v374_v30  ;;  %v1858_v47 = vld [vmem:[%s3594_s4 + $0x2f8] sm:$0xff] }
  0x1f   : > { %2699 = vmatprep.subr.bf16.mxu0 %v2698_v43  ;;  %v2726_v37 = vpack.c.bf16 %v1854_v33, %v1853_v32  ;;  %v376_v38 = vld [vmem:[%s3594_s4 + $0x60] sm:$0xff]  ;;  %v378_v44 = vld [vmem:[%s3594_s4 + $0x70] sm:$0xff]  ;;  %v1796_v51 = vld [vmem:[%s3594_s4 + $0x108] sm:$0xff] }
  0x20   : > { %v1855_v40 = vld [vmem:[%s3594_s4 + $0x2e0] sm:$0xff]  ;;  %v1857_v46 = vld [vmem:[%s3594_s4 + $0x2f0] sm:$0xff]  ;;  %v1868_v53 = vld [vmem:[%s3594_s4 + $0x308] sm:$0xff] }
  0x21   : > { %2573 = vmatpush3.bf16.msra.mxu1 %v2570_v42  ;;  %v2602_v42 = vpack.c.bf16 %v377_v39, %v376_v38  ;;  %v1795_v50 = vld [vmem:[%s3594_s4 + $0x100] sm:$0xff]  ;;  %v1797_v56 = vld [vmem:[%s3594_s4 + $0x110] sm:$0xff]  ;;  %v1798_v57 = vld [vmem:[%s3594_s4 + $0x118] sm:$0xff] }
  0x22   : > { %2701 = vmatpush3.bf16.msra.mxu0 %v2698_v43  ;;  %2575 = vmatprep.subr.bf16.mxu1 %v2574_v48  ;;  %v2730_v43 = vpack.c.bf16 %v1856_v41, %v1855_v40  ;;  %v1867_v52 = vld [vmem:[%s3594_s4 + $0x300] sm:$0xff]  ;;  %v1869_v58 = vld [vmem:[%s3594_s4 + $0x310] sm:$0xff]  ;;  %v1870_v59 = vld [vmem:[%s3594_s4 + $0x318] sm:$0xff] }
  0x23   : > { %2703 = vmatprep.subr.bf16.mxu0 %v2702_v49  ;;  %v2742_v0 = vpack.c.bf16 %v1870_v59, %v1869_v58  ;;  %v1799_v1 = vld [vmem:[%s3594_s4 + $0x120] sm:$0xff]  ;;  %v1800_v2 = vld [vmem:[%s3594_s4 + $0x128] sm:$0xff]  ;;  %v1032_v11 = vld [vmem:[%s3197_s28 + $0x31] sm:$0xff] }
  0x24   : > { %v1871_v3 = vld [vmem:[%s3594_s4 + $0x320] sm:$0xff]  ;;  %v2618_v10 = vpack.c.bf16 %v1800_v2, %v1799_v1  ;;  %v1801_v13 = vld [vmem:[%s3594_s4 + $0x130] sm:$0xff]  ;;  %v1876_v30 = vld [vmem:[%s3594_s4 + $0x348] sm:$0xff] }
  0x25   : > { %2577 = vmatpush3.bf16.msra.mxu1 %v2574_v48  ;;  %v2606_v48 = vpack.c.bf16 %v379_v45, %v378_v44  ;;  %v1033_v20 = vld [vmem:[%s3197_s28 + $0x41] sm:$0xff]  ;;  %v3307_v21 = vld [vmem:[%s3186_s23 + $0x50] sm:$0xff]  ;;  %v1806_v38 = vld [vmem:[%s3594_s4 + $0x158] sm:$0xff] }
  0x26   : > { %2705 = vmatpush3.bf16.msra.mxu0 %v2702_v49  ;;  %2579 = vmatprep.subr.bf16.mxu1 %v2578_v54  ;;  %v2734_v49 = vpack.c.bf16 %v1858_v47, %v1857_v46  ;;  %v1034_v23 = vld [vmem:[%s3197_s28 + $0x51] sm:$0xff]  ;;  %v3325_v31 = vld [vmem:[%s3186_s23 + $0x60] sm:$0xff]  ;;  %v1808_v45 = vld [vmem:[%s3594_s4 + $0x168] sm:$0xff] }
  0x27   : > { %2707 = vmatprep.subr.bf16.mxu0 %v2706_v55  ;;  %v1035_v32 = vld [vmem:[%s3197_s28 + $0x61] sm:$0xff]  ;;  %v3329_v33 = vld [vmem:[%s3186_s23 + $0x70] sm:$0xff]  ;;  %v1878_v40 = vld [vmem:[%s3594_s4 + $0x358] sm:$0xff] }
  0x28   : > { %2183 = vmatmul.mubr.f32.vlgmr.msra.gmra.mrb[0].mxu1 %v3119_v60  ;;  %v1877_v39 = vld [vmem:[%s3594_s4 + $0x350] sm:$0xff]  ;;  %v615_v41 = vld [vmem:[%s3186_s23 + $0x1] sm:$0xff]  ;;  %v1894_v2 = vld [vmem:[%s3594_s4 + $0x398] sm:$0xff] }
  0x29   : > { %2581 = vmatpush3.bf16.msra.mxu1 %v2578_v54  ;;  %2359 = vmatmul.mubr.f32.vlgmr.msra.gmra.mrb[0].mxu0 %v892_v61  ;;  %v2610_v54 = vpack.c.bf16 %v1796_v51, %v1795_v50  ;;  %v3264_v61 = vld [vmem:[%s3186_s23 + $0x10] sm:$0xff]  ;;  %v1807_v44 = vld [vmem:[%s3594_s4 + $0x160] sm:$0xff]  ;;  %v1880_v47 = vld [vmem:[%s3594_s4 + $0x368] sm:$0xff] }
  0x2a   : > { %2709 = vmatpush3.bf16.msra.mxu0 %v2706_v55  ;;  %2583 = vmatprep.subr.bf16.mxu1 %v2582_v62  ;;  %v2738_v55 = vpack.c.bf16 %v1868_v53, %v1867_v52  ;;  %v1879_v46 = vld [vmem:[%s3594_s4 + $0x360] sm:$0xff]  ;;  %v1809_v50 = vld [vmem:[%s3594_s4 + $0x170] sm:$0xff]  ;;  %v1810_v51 = vld [vmem:[%s3594_s4 + $0x178] sm:$0xff] }
  0x2b   : > { %2711 = vmatprep.subr.bf16.mxu0 %v2710_v63  ;;  %2185 = vmatprep.mubr.f32.mxu1 %v3136_v4  ;;  %v1881_v52 = vld [vmem:[%s3594_s4 + $0x370] sm:$0xff]  ;;  %v1882_v53 = vld [vmem:[%s3594_s4 + $0x378] sm:$0xff]  ;;  %v1891_v58 = vld [vmem:[%s3594_s4 + $0x380] sm:$0xff] }
  0x2c   : > { %2361 = vmatprep.mubr.f32.mxu0 %v893_v5  ;;  %2186 = vmatmul.mubr.f32.gmra.mrb[2].mxu1 %v3140_v6  ;;  %v1872_v5 = vld [vmem:[%s3594_s4 + $0x328] sm:$0xff]  ;;  %v1893_v1 = vld [vmem:[%s3594_s4 + $0x390] sm:$0xff] }
  0x2d   : > { %2585 = vmatpush3.bf16.msra.mxu1 %v2582_v62  ;;  %2362 = vmatmul.mubr.f32.gmra.mrb[2].mxu0 %v894_v8  ;;  %v1030_v62 = vld [vmem:[%s3197_s28 + $0x11] sm:$0xff]  ;;  %v1031_v8 = vld [vmem:[%s3197_s28 + $0x21] sm:$0xff]  ;;  %v2746_v12 = vpack.c.bf16 %v1872_v5, %v1871_v3 }
  0x2e   : > { %2713 = vmatpush3.bf16.msra.mxu0 %v2710_v63  ;;  %2587 = vmatprep.subr.bf16.mxu1 %v2586_v7  ;;  %v2614_v63 = vpack.c.bf16 %v1798_v57, %v1797_v56  ;;  %v1811_v56 = vld [vmem:[%s3594_s4 + $0x180] sm:$0xff]  ;;  %v1812_v57 = vld [vmem:[%s3594_s4 + $0x188] sm:$0xff]  ;;  %v3397_v3 = vld [vmem:[%s3186_s23 + $0x11] sm:$0xff] }
  0x2f   : > { %2715 = vmatprep.subr.bf16.mxu0 %v2714_v9  ;;  %2188 = vmatprep.mubr.f32.mxu1 %v3158_v14  ;;  %v1892_v59 = vld [vmem:[%s3594_s4 + $0x388] sm:$0xff] }
  0x30   : > { %2364 = vmatprep.mubr.f32.mxu0 %v895_v15  ;;  %2189 = vmatmul.mubr.f32.gmra.mrb[4].mxu1 %v3162_v16  ;;  %v1802_v15 = vld [vmem:[%s3594_s4 + $0x138] sm:$0xff] }
  0x31   : > { %2589 = vmatpush3.bf16.msra.mxu1 %v2586_v7  ;;  %2365 = vmatmul.mubr.f32.gmra.mrb[4].mxu0 %v896_v18  ;;  %v3281_v7 = vld [vmem:[%s3186_s23 + $0x20] sm:$0xff]  ;;  %v1874_v18 = vld [vmem:[%s3594_s4 + $0x338] sm:$0xff]  ;;  %v2622_v22 = vpack.c.bf16 %v1802_v15, %v1801_v13  ;;  %v1896_v13 = vld [vmem:[%s3594_s4 + $0x3a8] sm:$0xff] }
  0x32   : > { %2717 = vmatpush3.bf16.msra.mxu0 %v2714_v9  ;;  %2591 = vmatprep.subr.bf16.mxu1 %v2590_v17  ;;  %v3285_v9 = vld [vmem:[%s3186_s23 + $0x30] sm:$0xff]  ;;  %v3413_v15 = vld [vmem:[%s3186_s23 + $0x21] sm:$0xff] }
  0x33   : > { %2719 = vmatprep.subr.bf16.mxu0 %v2718_v19  ;;  %2191 = vmatprep.mubr.f32.mxu1 %v3180_v24 }
  0x34   : > { %2367 = vmatprep.mubr.f32.mxu0 %v897_v25  ;;  %2192 = vmatmul.mubr.f32.gmra.mrb[6].mxu1 %v3190_v26 }
  0x35   : > { %2593 = vmatpush3.bf16.msra.mxu1 %v2590_v17  ;;  %2368 = vmatmul.mubr.f32.gmra.mrb[6].mxu0 %v898_v28  ;;  %v1873_v17 = vld [vmem:[%s3594_s4 + $0x330] sm:$0xff]  ;;  %v1804_v28 = vld [vmem:[%s3594_s4 + $0x148] sm:$0xff] }
  0x36   : > { %2721 = vmatpush3.bf16.msra.mxu0 %v2718_v19  ;;  %2595 = vmatprep.subr.bf16.mxu1 %v2594_v27  ;;  %v3303_v19 = vld [vmem:[%s3186_s23 + $0x40] sm:$0xff]  ;;  %v2750_v25 = vpack.c.bf16 %v1874_v18, %v1873_v17  ;;  %v3417_v17 = vld [vmem:[%s3186_s23 + $0x31] sm:$0xff] }
  0x37   : > { %2723 = vmatprep.subr.bf16.mxu0 %v2722_v29  ;;  %2226 = vmatprep.mubr.f32.mxu1 %v356_v34 }
  0x38   : > { %2402 = vmatprep.mubr.f32.mxu0 %v1029_v35  ;;  %v1036_v35 = vld [vmem:[%s3197_s28 + $0x71] sm:$0xff] }
  0x39   : > { %2597 = vmatpush3.bf16.msra.mxu1 %v2594_v27  ;;  %v1803_v27 = vld [vmem:[%s3594_s4 + $0x140] sm:$0xff] }
  0x3a   : > { %2725 = vmatpush3.bf16.msra.mxu0 %v2722_v29  ;;  %2599 = vmatprep.subr.bf16.mxu1 %v2598_v36  ;;  %v1875_v29 = vld [vmem:[%s3594_s4 + $0x340] sm:$0xff]  ;;  %v2626_v34 = vpack.c.bf16 %v1804_v28, %v1803_v27  ;;  %v3439_v28 = vld [vmem:[%s3186_s23 + $0x51] sm:$0xff] }
  0x3b   : > { %2727 = vmatprep.subr.bf16.mxu0 %v2726_v37  ;;  %v3435_v27 = vld [vmem:[%s3186_s23 + $0x41] sm:$0xff] }
  0x3d   : > { %2601 = vmatpush3.bf16.msra.mxu1 %v2598_v36  ;;  %v2754_v36 = vpack.c.bf16 %v1876_v30, %v1875_v29 }
  0x3e   : > { %2729 = vmatpush3.bf16.msra.mxu0 %v2726_v37  ;;  %2603 = vmatprep.subr.bf16.mxu1 %v2602_v42  ;;  %v1805_v37 = vld [vmem:[%s3594_s4 + $0x150] sm:$0xff] }
  0x3f   : > { %2731 = vmatprep.subr.bf16.mxu0 %v2730_v43 }
  0x41   : > { %2605 = vmatpush3.bf16.msra.mxu1 %v2602_v42  ;;  %v2630_v42 = vpack.c.bf16 %v1806_v38, %v1805_v37  ;;  %v1866_v38 = vld [vmem:[%s3186_s23 + $0x80] sm:$0xff] }
  0x42   : > { %2733 = vmatpush3.bf16.msra.mxu0 %v2730_v43  ;;  %2607 = vmatprep.subr.bf16.mxu1 %v2606_v48  ;;  %v2758_v43 = vpack.c.bf16 %v1878_v40, %v1877_v39  ;;  %v1822_v40 = vld [vmem:[%s3594_s4 + $0x1d8] sm:$0xff] }
  0x43   : > { %2735 = vmatprep.subr.bf16.mxu0 %v2734_v49 }
  0x45   : > { %2609 = vmatpush3.bf16.msra.mxu1 %v2606_v48  ;;  %v2634_v48 = vpack.c.bf16 %v1808_v45, %v1807_v44  ;;  %v1823_v45 = vld [vmem:[%s3594_s4 + $0x1e0] sm:$0xff] }
  0x46   : > { %2737 = vmatpush3.bf16.msra.mxu0 %v2734_v49  ;;  %2611 = vmatprep.subr.bf16.mxu1 %v2610_v54  ;;  %v2762_v49 = vpack.c.bf16 %v1880_v47, %v1879_v46  ;;  %v1824_v46 = vld [vmem:[%s3594_s4 + $0x1e8] sm:$0xff] }
  0x47   : > { %2739 = vmatprep.subr.bf16.mxu0 %v2738_v55  ;;  %v1904_v47 = vld [vmem:[%s3594_s4 + $0x3e8] sm:$0xff] }
  0x48   : > { %2227 = vmatmul.mubr.f32.vlgmr.msra.gmra.mrb[0].mxu1 %v3264_v61 }
  0x49   : > { %2613 = vmatpush3.bf16.msra.mxu1 %v2610_v54  ;;  %2403 = vmatmul.mubr.f32.vlgmr.msra.gmra.mrb[0].mxu0 %v1030_v62  ;;  %v2638_v54 = vpack.c.bf16 %v1810_v51, %v1809_v50  ;;  %v2770_v62 = vpack.c.bf16 %v1892_v59, %v1891_v58  ;;  %v1825_v50 = vld [vmem:[%s3594_s4 + $0x1f0] sm:$0xff]  ;;  %v1826_v51 = vld [vmem:[%s3594_s4 + $0x1f8] sm:$0xff] }
  0x4a   : > { %2741 = vmatpush3.bf16.msra.mxu0 %v2738_v55  ;;  %2615 = vmatprep.subr.bf16.mxu1 %v2614_v63  ;;  %v2766_v55 = vpack.c.bf16 %v1882_v53, %v1881_v52  ;;  %v1905_v52 = vld [vmem:[%s3594_s4 + $0x3f0] sm:$0xff]  ;;  %v2670_v53 = vpack.c.bf16 %v1826_v51, %v1825_v50  ;;  %v1918_v59 = vld [vmem:[%s3594_s4 + $0x418] sm:$0xff] }
  0x4b   : > { %2743 = vmatprep.subr.bf16.mxu0 %v2742_v0  ;;  %2229 = vmatprep.mubr.f32.mxu1 %v3281_v7  ;;  %v1917_v58 = vld [vmem:[%s3594_s4 + $0x410] sm:$0xff] }
  0x4c   : > { %2405 = vmatprep.mubr.f32.mxu0 %v1031_v8  ;;  %2230 = vmatmul.mubr.f32.gmra.mrb[2].mxu1 %v3285_v9  ;;  %v2774_v8 = vpack.c.bf16 %v1894_v2, %v1893_v1  ;;  %v1920_v1 = vld [vmem:[%s3594_s4 + $0x428] sm:$0xff]  ;;  %v756_v2 = vld [vmem:[%s3197_s28 + $0x30] sm:$0xff] }
  0x4d   : > { %2617 = vmatpush3.bf16.msra.mxu1 %v2614_v63  ;;  %2406 = vmatmul.mubr.f32.gmra.mrb[2].mxu0 %v1032_v11  ;;  %v1813_v63 = vld [vmem:[%s3594_s4 + $0x190] sm:$0xff]  ;;  %v1816_v11 = vld [vmem:[%s3594_s4 + $0x1a8] sm:$0xff] }
  0x4e   : > { %2745 = vmatpush3.bf16.msra.mxu0 %v2742_v0  ;;  %2619 = vmatprep.subr.bf16.mxu1 %v2618_v10  ;;  %v1814_v0 = vld [vmem:[%s3594_s4 + $0x198] sm:$0xff] }
  0x4f   : > { %2747 = vmatprep.subr.bf16.mxu0 %v2746_v12  ;;  %2232 = vmatprep.mubr.f32.mxu1 %v3303_v19  ;;  %v2646_v5 = vpack.c.bf16 %v1814_v0, %v1813_v63  ;;  %v2806_v63 = vpack.c.bf16 %v1918_v59, %v1917_v58  ;;  %v1919_v0 = vld [vmem:[%s3594_s4 + $0x420] sm:$0xff] }
  0x50   : > { %2408 = vmatprep.mubr.f32.mxu0 %v1033_v20  ;;  %2233 = vmatmul.mubr.f32.gmra.mrb[4].mxu1 %v3307_v21 }
  0x51   : > { %2621 = vmatpush3.bf16.msra.mxu1 %v2618_v10  ;;  %2409 = vmatmul.mubr.f32.gmra.mrb[4].mxu0 %v1034_v23  ;;  %v1815_v10 = vld [vmem:[%s3594_s4 + $0x1a0] sm:$0xff]  ;;  %v1818_v23 = vld [vmem:[%s3594_s4 + $0x1b8] sm:$0xff] }
  0x52   : > { %2749 = vmatpush3.bf16.msra.mxu0 %v2746_v12  ;;  %2623 = vmatprep.subr.bf16.mxu1 %v2622_v22  ;;  %v1895_v12 = vld [vmem:[%s3594_s4 + $0x3a0] sm:$0xff]  ;;  %v2650_v18 = vpack.c.bf16 %v1816_v11, %v1815_v10  ;;  %v1921_v10 = vld [vmem:[%s3594_s4 + $0x430] sm:$0xff] }
  0x53   : > { %2751 = vmatprep.subr.bf16.mxu0 %v2750_v25  ;;  %2235 = vmatprep.mubr.f32.mxu1 %v3325_v31  ;;  %v2778_v20 = vpack.c.bf16 %v1896_v13, %v1895_v12  ;;  %v758_v11 = vld [vmem:[%s3197_s28 + $0x50] sm:$0xff]  ;;  %v1923_v13 = vld [vmem:[%s3594_s4 + $0x440] sm:$0xff] }
  0x54   : > { %2411 = vmatprep.mubr.f32.mxu0 %v1035_v32  ;;  %2236 = vmatmul.mubr.f32.gmra.mrb[6].mxu1 %v3329_v33  ;;  %v1820_v32 = vld [vmem:[%s3594_s4 + $0x1c8] sm:$0xff] }
  0x55   : > { %2625 = vmatpush3.bf16.msra.mxu1 %v2622_v22  ;;  %2412 = vmatmul.mubr.f32.gmra.mrb[6].mxu0 %v1036_v35  ;;  %v1817_v22 = vld [vmem:[%s3594_s4 + $0x1b0] sm:$0xff]  ;;  %v3457_v35 = vld [vmem:[%s3186_s23 + $0x61] sm:$0xff] }
  0x56   : > { %2753 = vmatpush3.bf16.msra.mxu0 %v2750_v25  ;;  %2627 = vmatprep.subr.bf16.mxu1 %v2626_v34  ;;  %v1898_v25 = vld [vmem:[%s3594_s4 + $0x3b8] sm:$0xff]  ;;  %v2654_v29 = vpack.c.bf16 %v1818_v23, %v1817_v22  ;;  %v1925_v22 = vld [vmem:[%s3594_s4 + $0x450] sm:$0xff] }
  0x57   : > { %2755 = vmatprep.subr.bf16.mxu0 %v2754_v36  ;;  %2270 = vmatprep.mubr.f32.mxu1 %v615_v41  ;;  %v1902_v41 = vld [vmem:[%s3594_s4 + $0x3d8] sm:$0xff] }
  0x58   : > { %2446 = vmatprep.mubr.f32.mxu0 %v3264_v61  ;;  %v2642_v61 = vpack.c.bf16 %v1812_v57, %v1811_v56  ;;  %v1916_v56 = vld [vmem:[%s3594_s4 + $0x408] sm:$0xff]  ;;  %v1926_v23 = vld [vmem:[%s3594_s4 + $0x458] sm:$0xff] }
  0x59   : > { %2629 = vmatpush3.bf16.msra.mxu1 %v2626_v34  ;;  %v1900_v34 = vld [vmem:[%s3594_s4 + $0x3c8] sm:$0xff] }
  0x5a   : > { %2757 = vmatpush3.bf16.msra.mxu0 %v2754_v36  ;;  %2631 = vmatprep.subr.bf16.mxu1 %v2630_v42  ;;  %v3461_v36 = vld [vmem:[%s3186_s23 + $0x71] sm:$0xff] }
  0x5b   : > { %2759 = vmatprep.subr.bf16.mxu0 %v2758_v43 }
  0x5d   : > { %2633 = vmatpush3.bf16.msra.mxu1 %v2630_v42  ;;  %v753_v42 = vld [vmem:[%s3197_s28] sm:$0xff] }
  0x5e   : > { %2761 = vmatpush3.bf16.msra.mxu0 %v2758_v43  ;;  %2635 = vmatprep.subr.bf16.mxu1 %v2634_v48 }
  0x5f   : > { %2763 = vmatprep.subr.bf16.mxu0 %v2762_v49 }
  0x61   : > { %2637 = vmatpush3.bf16.msra.mxu1 %v2634_v48  ;;  %v2666_v48 = vpack.c.bf16 %v1824_v46, %v1823_v45 }
  0x62   : > { %2765 = vmatpush3.bf16.msra.mxu0 %v2762_v49  ;;  %2639 = vmatprep.subr.bf16.mxu1 %v2638_v54 }
  0x63   : > { %2767 = vmatprep.subr.bf16.mxu0 %v2766_v55 }
  0x65   : > { %2641 = vmatpush3.bf16.msra.mxu1 %v2638_v54 }
  0x66   : > { %2769 = vmatpush3.bf16.msra.mxu0 %v2766_v55  ;;  %2643 = vmatprep.subr.bf16.mxu1 %v2642_v61  ;;  %v1915_v55 = vld [vmem:[%s3594_s4 + $0x400] sm:$0xff] }
  0x67   : > { %2771 = vmatprep.subr.bf16.mxu0 %v2770_v62  ;;  %v2802_v57 = vpack.c.bf16 %v1916_v56, %v1915_v55 }
  0x68   : > { %2271 = vmatmul.mubr.f32.vlgmr.msra.gmra.mrb[0].mxu1 %v3397_v3 }
  0x69   : > { %2645 = vmatpush3.bf16.msra.mxu1 %v2642_v61  ;;  %2447 = vmatmul.mubr.f32.vlgmr.msra.gmra.mrb[0].mxu0 %v3281_v7  ;;  %v1897_v7 = vld [vmem:[%s3594_s4 + $0x3b0] sm:$0xff] }
  0x6a   : > { %2773 = vmatpush3.bf16.msra.mxu0 %v2770_v62  ;;  %2647 = vmatprep.subr.bf16.mxu1 %v2646_v5  ;;  %v2782_v30 = vpack.c.bf16 %v1898_v25, %v1897_v7  ;;  %v754_v61 = vld [vmem:[%s3197_s28 + $0x10] sm:$0xff]  ;;  %v755_v62 = vld [vmem:[%s3197_s28 + $0x20] sm:$0xff]  ;;  %v1928_v7 = vld [vmem:[%s3594_s4 + $0x468] sm:$0xff] }
  0x6b   : > { %2775 = vmatprep.subr.bf16.mxu0 %v2774_v8  ;;  %2273 = vmatprep.mubr.f32.mxu1 %v3413_v15 }
  0x6c   : > { %2449 = vmatprep.mubr.f32.mxu0 %v3285_v9  ;;  %2274 = vmatmul.mubr.f32.gmra.mrb[2].mxu1 %v3417_v17  ;;  %v1819_v9 = vld [vmem:[%s3594_s4 + $0x1c0] sm:$0xff] }
  0x6d   : > { %2649 = vmatpush3.bf16.msra.mxu1 %v2646_v5  ;;  %2450 = vmatmul.mubr.f32.gmra.mrb[2].mxu0 %v3303_v19  ;;  %v1899_v19 = vld [vmem:[%s3594_s4 + $0x3c0] sm:$0xff]  ;;  %v2658_v37 = vpack.c.bf16 %v1820_v32, %v1819_v9 }
  0x6e   : > { %2777 = vmatpush3.bf16.msra.mxu0 %v2774_v8  ;;  %2651 = vmatprep.subr.bf16.mxu1 %v2650_v18  ;;  %v2786_v39 = vpack.c.bf16 %v1900_v34, %v1899_v19  ;;  %v757_v5 = vld [vmem:[%s3197_s28 + $0x40] sm:$0xff]  ;;  %v2810_v8 = vpack.c.bf16 %v1920_v1, %v1919_v0 }
  0x6f   : > { %2779 = vmatprep.subr.bf16.mxu0 %v2778_v20  ;;  %2276 = vmatprep.mubr.f32.mxu1 %v3435_v27 }
  0x70   : > { %2452 = vmatprep.mubr.f32.mxu0 %v3307_v21  ;;  %2277 = vmatmul.mubr.f32.gmra.mrb[4].mxu1 %v3439_v28  ;;  %v1821_v21 = vld [vmem:[%s3594_s4 + $0x1d0] sm:$0xff] }
  0x71   : > { %2653 = vmatpush3.bf16.msra.mxu1 %v2650_v18  ;;  %2453 = vmatmul.mubr.f32.gmra.mrb[4].mxu0 %v3325_v31  ;;  %v1901_v31 = vld [vmem:[%s3594_s4 + $0x3d0] sm:$0xff]  ;;  %v2662_v43 = vpack.c.bf16 %v1822_v40, %v1821_v21  ;;  %v1924_v18 = vld [vmem:[%s3594_s4 + $0x448] sm:$0xff] }
  0x72   : > { %2781 = vmatpush3.bf16.msra.mxu0 %v2778_v20  ;;  %2655 = vmatprep.subr.bf16.mxu1 %v2654_v29  ;;  %v2790_v44 = vpack.c.bf16 %v1902_v41, %v1901_v31  ;;  %v2818_v20 = vpack.c.bf16 %v1924_v18, %v1923_v13 }
  0x73   : > { %2783 = vmatprep.subr.bf16.mxu0 %v2782_v30  ;;  %2279 = vmatprep.mubr.f32.mxu1 %v3457_v35 }
  0x74   : > { %2455 = vmatprep.mubr.f32.mxu0 %v3329_v33  ;;  %2280 = vmatmul.mubr.f32.gmra.mrb[6].mxu1 %v3461_v36  ;;  %v1903_v33 = vld [vmem:[%s3594_s4 + $0x3e0] sm:$0xff] }
  0x75   : > { %2657 = vmatpush3.bf16.msra.mxu1 %v2654_v29  ;;  %2456 = vmatmul.mubr.f32.gmra.mrb[6].mxu0 %v1866_v38  ;;  %v2794_v49 = vpack.c.bf16 %v1904_v47, %v1903_v33  ;;  %v1929_v29 = vld [vmem:[%s3594_s4 + $0x470] sm:$0xff] }
  0x76   : > { %2785 = vmatpush3.bf16.msra.mxu0 %v2782_v30  ;;  %2659 = vmatprep.subr.bf16.mxu1 %v2658_v37  ;;  %v1930_v30 = vld [vmem:[%s3594_s4 + $0x478] sm:$0xff] }
  0x77   : > { %2787 = vmatprep.subr.bf16.mxu0 %v2786_v39  ;;  %2314 = vmatprep.mubr.f32.mxu1 %v753_v42 }
  0x78   : > { %2490 = vmatprep.mubr.f32.mxu0 %v3119_v60  ;;  %v1906_v60 = vld [vmem:[%s3594_s4 + $0x3f8] sm:$0xff] }
  0x79   : > { %2661 = vmatpush3.bf16.msra.mxu1 %v2658_v37  ;;  %v2798_v54 = vpack.c.bf16 %v1906_v60, %v1905_v52 }
  0x7a   : > { %2789 = vmatpush3.bf16.msra.mxu0 %v2786_v39  ;;  %2663 = vmatprep.subr.bf16.mxu1 %v2662_v43 }
  0x7b   : > { %2791 = vmatprep.subr.bf16.mxu0 %v2790_v44 }
  0x7d   : > { %2665 = vmatpush3.bf16.msra.mxu1 %v2662_v43 }
  0x7e   : > { %2793 = vmatpush3.bf16.msra.mxu0 %v2790_v44  ;;  %2667 = vmatprep.subr.bf16.mxu1 %v2666_v48 }
  0x7f   : > { %2795 = vmatprep.subr.bf16.mxu0 %v2794_v49 }
  0x81   : > { %2669 = vmatpush3.bf16.msra.mxu1 %v2666_v48 }
  0x82   : > { %2797 = vmatpush3.bf16.msra.mxu0 %v2794_v49  ;;  %2671 = vmatprep.subr.bf16.mxu1 %v2670_v53 }
  0x83   : > { %2799 = vmatprep.subr.bf16.mxu0 %v2798_v54 }
  0x85   : > { %2673 = vmatpush3.bf16.msra.mxu1 %v2670_v53 }
  0x86   : > { %2801 = vmatpush3.bf16.msra.mxu0 %v2798_v54  ;;  %2834 = vmatprep.subr.bf16.mxu1 %v2802_v57 }
  0x87   : > { %2803 = vmatprep.subr.bf16.mxu0 %v2802_v57 }
  0x88   : > { %2315 = vmatmul.mubr.f32.vlgmr.msra.gmra.mrb[0].mxu1 %v754_v61 }
  0x89   : > { %2491 = vmatmul.mubr.f32.vlgmr.msra.gmra.mrb[0].mxu0 %v3136_v4  ;;  %2842 = vmatpush3.bf16.msra.mxu1 %v2802_v57  ;;  %v1922_v4 = vld [vmem:[%s3594_s4 + $0x438] sm:$0xff] }
  0x8a   : > { %2805 = vmatpush3.bf16.msra.mxu0 %v2802_v57  ;;  %2317 = vmatprep.mubr.f32.mxu1 %v755_v62  ;;  %v2814_v12 = vpack.c.bf16 %v1922_v4, %v1921_v10 }
  0x8b   : > { %2493 = vmatprep.mubr.f32.mxu0 %v3140_v6  ;;  %2807 = vmatprep.subr.bf16.mxu0 %v2806_v63  ;;  %v759_v6 = vld [vmem:[%s3197_s28 + $0x60] sm:$0xff] }
  0x8c   : > { %2318 = vmatmul.mubr.f32.gmra.mrb[2].mxu1 %v756_v2  ;;  %2835 = vmatprep.subr.bf16.mxu1 %v2806_v63 }
  0x8d   : > { %2494 = vmatmul.mubr.f32.gmra.mrb[2].mxu0 %v3158_v14  ;;  %2843 = vmatpush3.bf16.msra.mxu1 %v2806_v63  ;;  %v760_v14 = vld [vmem:[%s3197_s28 + $0x70] sm:$0xff] }
  0x8e   : > { %2809 = vmatpush3.bf16.msra.mxu0 %v2806_v63  ;;  %2320 = vmatprep.mubr.f32.mxu1 %v757_v5 }
  0x8f   : > { %2496 = vmatprep.mubr.f32.mxu0 %v3162_v16  ;;  %2811 = vmatprep.subr.bf16.mxu0 %v2810_v8  ;;  %v1890_v16 = vld [vmem:[%s3036_s17 + $0x80] sm:$0xff] }
  0x90   : > { %2321 = vmatmul.mubr.f32.gmra.mrb[4].mxu1 %v758_v11  ;;  %2836 = vmatprep.subr.bf16.mxu1 %v2810_v8 }
  0x91   : > { %2497 = vmatmul.mubr.f32.gmra.mrb[4].mxu0 %v3180_v24  ;;  %2844 = vmatpush3.bf16.msra.mxu1 %v2810_v8  ;;  %v2822_v24 = vpack.c.bf16 %v1926_v23, %v1925_v22 }
  0x92   : > { %2813 = vmatpush3.bf16.msra.mxu0 %v2810_v8  ;;  %2323 = vmatprep.mubr.f32.mxu1 %v759_v6 }
  0x93   : > { %2499 = vmatprep.mubr.f32.mxu0 %v3190_v26  ;;  %2815 = vmatprep.subr.bf16.mxu0 %v2814_v12  ;;  %v1927_v26 = vld [vmem:[%s3594_s4 + $0x460] sm:$0xff] }
  0x94   : > { %2324 = vmatmul.mubr.f32.gmra.mrb[6].mxu1 %v760_v14  ;;  %2837 = vmatprep.subr.bf16.mxu1 %v2814_v12  ;;  %v2826_v25 = vpack.c.bf16 %v1928_v7, %v1927_v26 }
  0x95   : > { %2500 = vmatmul.mubr.f32.gmra.mrb[6].mxu0 %v1890_v16  ;;  %2845 = vmatpush3.bf16.msra.mxu1 %v2814_v12 }
  0x96   : > { %2817 = vmatpush3.bf16.msra.mxu0 %v2814_v12  ;;  %2838 = vmatprep.subr.bf16.mxu1 %v2818_v20 }
  0x97   : > { %2819 = vmatprep.subr.bf16.mxu0 %v2818_v20  ;;  %2534 = vmatprep.mubr.f32.mxu0 %v3397_v3  ;;  %v2830_v3 = vpack.c.bf16 %v1930_v30, %v1929_v29 }
  0x98   : > { %2540 = vmatprep.mubr.f32.mxu1 %v3439_v28  ;;  %v1914_v28 = vld [vmem:[%s3186_s23 + $0x81] sm:$0xff]  ;;  %s1933_s23 = sshll.u32 %s3599_s25, 6 }
  0x99   : > { %2846 = vmatpush3.bf16.msra.mxu1 %v2818_v20  ;;  %s349_s11 = scalar_lea.vmem %s3595_s5, %s1933_s23 }
  0x9a   : > { %2821 = vmatpush3.bf16.msra.mxu0 %v2818_v20  ;;  %2839 = vmatprep.subr.bf16.mxu1 %v2822_v24 }
  0x9b   : > { %2823 = vmatprep.subr.bf16.mxu0 %v2822_v24 }
  0x9d   : > { %2847 = vmatpush3.bf16.msra.mxu1 %v2822_v24 }
  0x9e   : > { %2825 = vmatpush3.bf16.msra.mxu0 %v2822_v24  ;;  %2840 = vmatprep.subr.bf16.mxu1 %v2826_v25 }
  0x9f   : > { %2827 = vmatprep.subr.bf16.mxu0 %v2826_v25 }
  0xa1   : > { %2848 = vmatpush3.bf16.msra.mxu1 %v2826_v25 }
  0xa2   : > { %2829 = vmatpush3.bf16.msra.mxu0 %v2826_v25  ;;  %2841 = vmatprep.subr.bf16.mxu1 %v2830_v3 }
  0xa3   : > { %2831 = vmatprep.subr.bf16.mxu0 %v2830_v3 }
  0xa5   : > { %2849 = vmatpush3.bf16.msra.mxu1 %v2830_v3 }
  0xa6   : > { %2833 = vmatpush3.bf16.msra.mxu0 %v2830_v3 }
  0xa8   : > { %2541 = vmatmul.mubr.f32.vlgmr.msra.gmra.mrb[8].mxu1 %v3457_v35 }
  0xa9   : > { %2535 = vmatmul.mubr.f32.vlgmr.msra.gmra.mrb[0].mxu0 %v3413_v15  ;;  %2543 = vmatprep.mubr.f32.mxu1 %v3461_v36 }
  0xaa   : > { %2537 = vmatprep.mubr.f32.mxu0 %v3417_v17 }
  0xac   : > { %2544 = vmatmul.mubr.f32.gmra.mrb[10].mxu1 %v1914_v28 }
  0xad   : > { %2538 = vmatmul.mubr.f32.gmra.mrb[2].mxu0 %v3435_v27 }
 0x15b   : > { %v2316_v9 = vpop.f32.mrb[0].mxu1 }
 0x15c   : > { %v844_v32 = vpop.f32.mrb[1].mxu1 }
 0x15f   : > { %v2319_v19 = vpop.f32.mrb[2].mxu1 }
 0x160   : > { %v854_v34 = vpop.f32.mrb[3].mxu1 }
 0x163   : > { %v2322_v37 = vpop.f32.mrb[4].mxu1 }
 0x164   : > { %v2498_v38 = vpop.f32.mrb[4].mxu0  ;;  %v864_v39 = vpop.f32.mrb[5].mxu1 }
 0x165   : > { %v2854_v21 = vadd.f32 %v2498_v38, %v2322_v37  ;;  %v1418_v35 = vpop.f32.mrb[5].mxu0 }
 0x166   : > { %v2856_v40 = vadd.f32 %v1418_v35, %v864_v39 }
 0x167   : > { %v2325_v15 = vpop.f32.mrb[6].mxu1 }
 0x168   : > { %v2501_v31 = vpop.f32.mrb[6].mxu0  ;;  %v874_v36 = vpop.f32.mrb[7].mxu1 }
 0x169   : > { %v2858_v41 = vadd.f32 %v2501_v31, %v2325_v15  ;;  %v1428_v42 = vpop.f32.mrb[7].mxu0 }
 0x16a   : > { %v2860_v17 = vadd.f32 %v1428_v42, %v874_v36 }
 0x17b   : > { %v2542_v27 = vpop.f32.mrb[8].mxu1 }
 0x17c   : > { %v2536_v43 = vpop.f32.mrb[0].mxu0  ;;  %v2855_v44 = vadd.f32 %v2854_v21, %v2542_v27  ;;  %v1556_v45 = vpop.f32.mrb[9].mxu1 }
 0x17d   : > { %v2850_v46 = vadd.f32 %v2536_v43, %v2316_v9  ;;  %v1536_v33 = vpop.f32.mrb[1].mxu0  ;;  %v2857_v47 = vadd.f32 %v2856_v40, %v1556_v45 }
 0x17e   : > { %1588 = vst [vmem:[%s349_s11 + $0x28] sm:$0xff] %v2855_v44  ;;  %v2851_v48 = vadd.f32 %v1536_v33, %v844_v32  ;;  %v1610_v10 = vmul.f32 %v2855_v44, %v2855_v44 }
 0x17f   : > { %1584 = vst [vmem:[%s349_s11 + $0x8] sm:$0xff] %v2850_v46  ;;  %v1606_v49 = vmul.f32 %v2850_v46, %v2850_v46  ;;  %1587 = vst [vmem:[%s349_s11 + $0x20] sm:$0xff] %v2857_v47  ;;  %v2545_v50 = vpop.f32.mrb[10].mxu1  ;;  %v1609_v2 = vmul.f32 %v2857_v47, %v2857_v47 }
 0x180   : > { %1583 = vst [vmem:[%s349_s11] sm:$0xff] %v2851_v48  ;;  %v1591_v51 = vadd.f32 %v2851_v48, %v2850_v46  ;;  %v1605_v52 = vmul.f32 %v2851_v48, %v2851_v48  ;;  %v2539_v60 = vpop.f32.mrb[2].mxu0  ;;  %v2859_v53 = vadd.f32 %v2858_v41, %v2545_v50  ;;  %v1566_v54 = vpop.f32.mrb[11].mxu1 }
 0x181   : > { %v2852_v55 = vadd.f32 %v2539_v60, %v2319_v19  ;;  %v1546_v56 = vpop.f32.mrb[3].mxu0  ;;  %v2861_v57 = vadd.f32 %v2860_v17, %v1566_v54 }
 0x182   : > { %v1613_v58 = vadd.f32 %v1606_v49, %v1605_v52  ;;  %1590 = vst [vmem:[%s349_s11 + $0x38] sm:$0xff] %v2859_v53  ;;  %v2853_v59 = vadd.f32 %v1546_v56, %v854_v34  ;;  %v1612_v18 = vmul.f32 %v2859_v53, %v2859_v53 }
 0x183   : > { %1586 = vst [vmem:[%s349_s11 + $0x18] sm:$0xff] %v2852_v55  ;;  %1589 = vst [vmem:[%s349_s11 + $0x30] sm:$0xff] %v2861_v57  ;;  %v1608_v63 = vmul.f32 %v2852_v55, %v2852_v55  ;;  %v1611_v12 = vmul.f32 %v2861_v57, %v2861_v57 }
 0x184   : > { %1585 = vst [vmem:[%s349_s11 + $0x10] sm:$0xff] %v2853_v59  ;;  %v1592_v61 = vadd.f32 %v2853_v59, %v1591_v51  ;;  %v1607_v62 = vmul.f32 %v2853_v59, %v2853_v59 }
 0x186   : > { %v1593_v0 = vadd.f32 %v2852_v55, %v1592_v61  ;;  %v1614_v1 = vadd.f32 %v1613_v58, %v1607_v62 }
 0x188   : > { %v1615_v5 = vadd.f32 %v1614_v1, %v1608_v63  ;;  %v1594_v8 = vadd.f32 %v2857_v47, %v1593_v0 }
 0x18a   : > { %v1595_v4 = vadd.f32 %v2855_v44, %v1594_v8  ;;  %v1616_v11 = vadd.f32 %v1615_v5, %v1609_v2 }
 0x18c   : > { %v1596_v6 = vadd.f32 %v2861_v57, %v1595_v4  ;;  %v1617_v13 = vadd.f32 %v1616_v11, %v1610_v10 }
 0x18e   : > { %v1597_v14 = vadd.f32 %v2859_v53, %v1596_v6  ;;  %v1618_v16 = vadd.f32 %v1617_v13, %v1611_v12 }
 0x190   : > { %v1598_v20 = vrot.slane %v1597_v14, 4  ;;  %v1619_v22 = vadd.f32 %v1618_v16, %v1612_v18 }
 0x192   : > { %v1599_v23 = vadd.f32 %v1598_v20, %v1597_v14  ;;  %v1620_v24 = vrot.slane %v1619_v22, 4 }
 0x194   : > { %v1600_v26 = vrot.slane %v1599_v23, 2  ;;  %v1621_v7 = vadd.f32 %v1620_v24, %v1619_v22 }
 0x196   : > { %v1601_v25 = vadd.f32 %v1600_v26, %v1599_v23  ;;  %v1622_v29 = vrot.slane %v1621_v7, 2 }
 0x198   : > { %v1602_v30 = vrot.slane %v1601_v25, 1  ;;  %v1623_v3 = vadd.f32 %v1622_v29, %v1621_v7 }
 0x19a   : > { %v1603_v28 = vadd.f32 %v1602_v30, %v1601_v25  ;;  %v1624_v9 = vrot.slane %v1623_v3, 1 }
 0x19c   : > { %1604 = vst [vmem:[%s352_s29] sm:$0x1] %v1603_v28  ;;  %v1625_v32 = vadd.f32 %v1624_v9, %v1623_v3 }
 0x19e   : > { %1626 = vst [vmem:[%s355_s15] sm:$0x1] %v1625_v32 }
 0x19f PF: > { %s18_s24 = sadd.s32 1, %s2929_s24  }
 0x1a0   : > { %p15_p4 = scmp.ge.s32.totalorder %s18_s24, 4  }
 0x1a2   :  { %17 = sbr.rel (!%p15_p4) target bundleno = 1 (0x1), region = 113 }

</bundles_post_ra>
